<compile_context>
chip_gen: v7x
topology: tpu7x:2x2x1
jax: 0.10.0
libtpu: 0.0.40
codegen_flags: <defaults>
</compile_context>

<pallas_src>
import functools

import jax
import jax.numpy as jnp
from jax.experimental import pallas as pl
from jax.experimental.pallas import tpu as pltpu

K = 5     # Conv1d kernel size
PAD = 2   # Conv1d padding


# ----------------------------- in-kernel helpers ---------------------------

def _shift_matrix(width, seg, s):
    """(width, width) 0/1 matrix M such that (x @ M)[c, i] = x[c, i + s]
    within each length-`seg` batch segment of the lane axis, and 0 where
    i + s falls into the conv zero-padding."""
    j = jax.lax.broadcasted_iota(jnp.int32, (width, width), 0)   # source lane
    i = jax.lax.broadcasted_iota(jnp.int32, (width, width), 1)   # dest lane
    t = i & (seg - 1)                                            # pos in segment (seg is 2^k)
    hit = (j == i + s) & (t + s >= 0) & (t + s < seg)
    return jnp.where(hit, 1.0, 0.0)


def _conv_relu(x, w_ref, b_ref, seg):
    """Conv1d(kernel=5, padding=2, stride=1) + bias + ReLU.

    x:     (C_in, N*seg) f32 activations, batch folded into lanes (lane = n*seg + t)
    w_ref: (K, C_out, C_in) f32 weights
    b_ref: (C_out, 1)       f32 bias
    """
    c_in, width = x.shape
    acc = None
    for k in range(K):
        s = k - PAD                              # shift in [-2, 2]
        if s == 0:
            xs = x
        else:
            xs = jnp.dot(x, _shift_matrix(width, seg, s),
                         preferred_element_type=jnp.float32)
        if c_in == 1:
            # single input channel: outer product on the VPU, skip the MXU
            y = w_ref[k] * xs                    # (C_out,1) * (1,W) -> (C_out,W)
        else:
            y = jnp.dot(w_ref[k], xs, preferred_element_type=jnp.float32)
        acc = y if acc is None else acc + y
    return jnp.maximum(acc + b_ref[...], 0.0)


def _maxpool2(y):
    """MaxPool1d(kernel=2, stride=2) along lanes: (C, W) -> (C, W//2).

    Even/odd lanes are compacted with 0/1 selection matmuls to stay lane-dense."""
    width = y.shape[-1]
    j = jax.lax.broadcasted_iota(jnp.int32, (width, width // 2), 0)
    i = jax.lax.broadcasted_iota(jnp.int32, (width, width // 2), 1)
    sel_even = jnp.where(j == 2 * i, 1.0, 0.0)
    sel_odd = jnp.where(j == 2 * i + 1, 1.0, 0.0)
    e = jnp.dot(y, sel_even, preferred_element_type=jnp.float32)
    o = jnp.dot(y, sel_odd, preferred_element_type=jnp.float32)
    return jnp.maximum(e, o)


# --------------------------------- kernel ----------------------------------

def _encoder_kernel(x_ref, w1, b1, w2, b2, w3, b3, w4, b4, w5, b5, o_ref,
                    *, seg0):
    seg = seg0
    h = _conv_relu(x_ref[...], w1, b1, seg)      # layer 1:  1 -> 64
    h = _maxpool2(h); seg //= 2
    h = _conv_relu(h, w2, b2, seg)               # layer 2: 64 -> 64
    h = _maxpool2(h); seg //= 2
    h = _conv_relu(h, w3, b3, seg)               # layer 3: 64 -> 64
    h = _maxpool2(h); seg //= 2
    h = _conv_relu(h, w4, b4, seg)               # layer 4: 64 -> 64
    h = _maxpool2(h); seg //= 2
    h = _conv_relu(h, w5, b5, seg)               # layer 5: 64 -> 1 (+ final ReLU)
    o_ref[...] = h                               # (1, N * L/16)


# ------------------------------ host wrapper -------------------------------

def encoder_forward(x, params):
    """x: (N, 1, L) f32; params: tuple of 5 (w, b) with w (C_out, C_in, K), b (C_out,)."""
    n, c0, length = x.shape
    assert c0 == 1
    assert length % 16 == 0 and (length & (length - 1)) == 0, \
        "L must be a power of two divisible by 16"

    # fold batch into the lane axis: (N, 1, L) -> (C_in=1, N*L)
    x2d = x.reshape(1, n * length).astype(jnp.float32)

    flat = [x2d]
    for wgt, bias in params:
        flat.append(jnp.transpose(wgt, (2, 0, 1)).astype(jnp.float32))  # (K, C_out, C_in)
        flat.append(bias.reshape(-1, 1).astype(jnp.float32))            # (C_out, 1)

    l_out = length // 16
    out2d = pl.pallas_call(
        functools.partial(_encoder_kernel, seg0=length),
        out_shape=jax.ShapeDtypeStruct((1, n * l_out), jnp.float32),
        in_specs=[pl.BlockSpec(memory_space=pltpu.MemorySpace.VMEM)] * len(flat),
        out_specs=pl.BlockSpec(memory_space=pltpu.MemorySpace.VMEM),
    )(*flat)

    return out2d.reshape(n, 1, l_out)


# ------------------------- parameters & reference --------------------------

def init_conv_params(key, c_in, c_out, k):
    """Deterministic init mimicking PyTorch's default Conv1d init."""
    kw, kb = jax.random.split(key)
    bound = 1.0 / (c_in * k) ** 0.5
    w = jax.random.uniform(kw, (c_out, c_in, k), jnp.float32, -bound, bound)
    b = jax.random.uniform(kb, (c_out,), jnp.float32, -bound, bound)
    return w, b


def build_encoder_params(key):
    cfg = [(1, 64), (64, 64), (64, 64), (64, 64), (64, 1)]
    keys = jax.random.split(key, len(cfg))
    return tuple(init_conv_params(k, ci, co, K) for (ci, co), k in zip(cfg, keys))


def reference_encoder(x, params):
    """Pure-XLA reference of the encoder path (for an in-script check)."""
    h = x
    for idx, (wgt, bias) in enumerate(params):
        y = jax.lax.conv_general_dilated(
            h, wgt, window_strides=(1,), padding=((PAD, PAD),),
            dimension_numbers=("NCH", "OIH", "NCH"),
            precision=jax.lax.Precision.HIGHEST)
        y = jnp.maximum(y + bias[None, :, None], 0.0)
        if idx < len(params) - 1:                       # MaxPool1d(2, 2)
            y = jnp.maximum(y[:, :, 0::2], y[:, :, 1::2])
        h = y
    return h


# ---------------------------------- main -----------------------------------

if __name__ == "__main__":
    key = jax.random.PRNGKey(0)
    k_params, k_x = jax.random.split(key)

    params = build_encoder_params(k_params)

    # Input: batch=2, 1 channel, length=64 (divisible by 16 so the four
    # MaxPool1d(2,2) stages divide evenly).
    x = jax.random.normal(k_x, (2, 1, 64), dtype=jnp.float32)

    fwd = jax.jit(encoder_forward)
    out = jax.block_until_ready(fwd(x, params))

    assert out.shape == (2, 1, 4), out.shape
    assert bool(jnp.all(out >= 0.0))                    # encoder ends with ReLU

    ref = reference_encoder(x, params)
    err = float(jnp.max(jnp.abs(out - ref)))
    assert err < 5e-2, f"mismatch vs XLA reference: max abs err {err}"

    print("KERNEL_OK")
</pallas_src>

<mosaic_0001>
module attributes {stable_mosaic.version = 11 : i64} {
  func.func @_encoder_kernel(%arg0: memref<1x128xf32, #tpu.memory_space<vmem>>, %arg1: memref<5x64x1xf32, #tpu.memory_space<vmem>>, %arg2: memref<64x1xf32, #tpu.memory_space<vmem>>, %arg3: memref<5x64x64xf32, #tpu.memory_space<vmem>>, %arg4: memref<64x1xf32, #tpu.memory_space<vmem>>, %arg5: memref<5x64x64xf32, #tpu.memory_space<vmem>>, %arg6: memref<64x1xf32, #tpu.memory_space<vmem>>, %arg7: memref<5x64x64xf32, #tpu.memory_space<vmem>>, %arg8: memref<64x1xf32, #tpu.memory_space<vmem>>, %arg9: memref<5x1x64xf32, #tpu.memory_space<vmem>>, %arg10: memref<1x1xf32, #tpu.memory_space<vmem>>, %arg11: memref<1x8xf32, #tpu.memory_space<vmem>>) attributes {dimension_semantics = [], scalar_prefetch = 0 : i64, scratch_operands = 0 : i64, tpu.core_type = #tpu.core_type<tc>} {
    %c0 = arith.constant 0 : index
    %c0_0 = arith.constant 0 : index
    %0 = vector.load %arg0[%c0, %c0_0] : memref<1x128xf32, #tpu.memory_space<vmem>>, vector<1x128xf32>
    %1 = tpu.iota {dimensions = array<i32: 0>} : vector<128x128xi32>
    %2 = tpu.iota {dimensions = array<i32: 1>} : vector<128x128xi32>
    %c63_i32 = arith.constant 63 : i32
    %3 = vector.broadcast %c63_i32 : i32 to vector<128x128xi32>
    %4 = arith.andi %2, %3 : vector<128x128xi32>
    %c-2_i32 = arith.constant -2 : i32
    %5 = vector.broadcast %c-2_i32 : i32 to vector<128x128xi32>
    %6 = arith.addi %2, %5 : vector<128x128xi32>
    %7 = arith.cmpi eq, %1, %6 : vector<128x128xi32>
    %c-2_i32_1 = arith.constant -2 : i32
    %8 = vector.broadcast %c-2_i32_1 : i32 to vector<128x128xi32>
    %9 = arith.addi %4, %8 : vector<128x128xi32>
    %c0_i32 = arith.constant 0 : i32
    %10 = vector.broadcast %c0_i32 : i32 to vector<128x128xi32>
    %11 = arith.cmpi sge, %9, %10 : vector<128x128xi32>
    %12 = arith.andi %7, %11 : vector<128x128xi1>
    %c-2_i32_2 = arith.constant -2 : i32
    %13 = vector.broadcast %c-2_i32_2 : i32 to vector<128x128xi32>
    %14 = arith.addi %4, %13 : vector<128x128xi32>
    %c64_i32 = arith.constant 64 : i32
    %15 = vector.broadcast %c64_i32 : i32 to vector<128x128xi32>
    %16 = arith.cmpi slt, %14, %15 : vector<128x128xi32>
    %17 = arith.andi %12, %16 : vector<128x128xi1>
    %cst = arith.constant 1.000000e+00 : f32
    %cst_3 = arith.constant 0.000000e+00 : f32
    %18 = vector.broadcast %cst : f32 to vector<128x128xf32>
    %19 = vector.broadcast %cst_3 : f32 to vector<128x128xf32>
    %20 = arith.select %17, %18, %19 : vector<128x128xi1>, vector<128x128xf32>
    %cst_4 = arith.constant dense<0.000000e+00> : vector<1x128xf32>
    %21 = tpu.matmul %0, %20, %cst_4 {dimension_numbers = #tpu.dot_dimension_numbers<[1], [0], [0], [1], [0, 0, 1, 1], [], []>} : vector<1x128xf32>, vector<128x128xf32>, vector<1x128xf32> -> vector<1x128xf32>
    %c0_5 = arith.constant 0 : index
    %c0_6 = arith.constant 0 : index
    %c0_7 = arith.constant 0 : index
    %22 = vector.load %arg1[%c0_5, %c0_6, %c0_7] : memref<5x64x1xf32, #tpu.memory_space<vmem>>, vector<1x64x1xf32>
    %23 = vector.shape_cast %22 : vector<1x64x1xf32> to vector<64x1xf32>
    %24 = vector.broadcast %23 : vector<64x1xf32> to vector<64x128xf32>
    %25 = vector.broadcast %21 : vector<1x128xf32> to vector<64x128xf32>
    %26 = arith.mulf %24, %25 : vector<64x128xf32>
    %27 = tpu.iota {dimensions = array<i32: 0>} : vector<128x128xi32>
    %28 = tpu.iota {dimensions = array<i32: 1>} : vector<128x128xi32>
    %c63_i32_8 = arith.constant 63 : i32
    %29 = vector.broadcast %c63_i32_8 : i32 to vector<128x128xi32>
    %30 = arith.andi %28, %29 : vector<128x128xi32>
    %c-1_i32 = arith.constant -1 : i32
    %31 = vector.broadcast %c-1_i32 : i32 to vector<128x128xi32>
    %32 = arith.addi %28, %31 : vector<128x128xi32>
    %33 = arith.cmpi eq, %27, %32 : vector<128x128xi32>
    %c-1_i32_9 = arith.constant -1 : i32
    %34 = vector.broadcast %c-1_i32_9 : i32 to vector<128x128xi32>
    %35 = arith.addi %30, %34 : vector<128x128xi32>
    %c0_i32_10 = arith.constant 0 : i32
    %36 = vector.broadcast %c0_i32_10 : i32 to vector<128x128xi32>
    %37 = arith.cmpi sge, %35, %36 : vector<128x128xi32>
    %38 = arith.andi %33, %37 : vector<128x128xi1>
    %c-1_i32_11 = arith.constant -1 : i32
    %39 = vector.broadcast %c-1_i32_11 : i32 to vector<128x128xi32>
    %40 = arith.addi %30, %39 : vector<128x128xi32>
    %c64_i32_12 = arith.constant 64 : i32
    %41 = vector.broadcast %c64_i32_12 : i32 to vector<128x128xi32>
    %42 = arith.cmpi slt, %40, %41 : vector<128x128xi32>
    %43 = arith.andi %38, %42 : vector<128x128xi1>
    %cst_13 = arith.constant 1.000000e+00 : f32
    %cst_14 = arith.constant 0.000000e+00 : f32
    %44 = vector.broadcast %cst_13 : f32 to vector<128x128xf32>
    %45 = vector.broadcast %cst_14 : f32 to vector<128x128xf32>
    %46 = arith.select %43, %44, %45 : vector<128x128xi1>, vector<128x128xf32>
    %cst_15 = arith.constant dense<0.000000e+00> : vector<1x128xf32>
    %47 = tpu.matmul %0, %46, %cst_15 {dimension_numbers = #tpu.dot_dimension_numbers<[1], [0], [0], [1], [0, 0, 1, 1], [], []>} : vector<1x128xf32>, vector<128x128xf32>, vector<1x128xf32> -> vector<1x128xf32>
    %c1 = arith.constant 1 : index
    %c0_16 = arith.constant 0 : index
    %c0_17 = arith.constant 0 : index
    %48 = vector.load %arg1[%c1, %c0_16, %c0_17] : memref<5x64x1xf32, #tpu.memory_space<vmem>>, vector<1x64x1xf32>
    %49 = vector.shape_cast %48 : vector<1x64x1xf32> to vector<64x1xf32>
    %50 = vector.broadcast %49 : vector<64x1xf32> to vector<64x128xf32>
    %51 = vector.broadcast %47 : vector<1x128xf32> to vector<64x128xf32>
    %52 = arith.mulf %50, %51 : vector<64x128xf32>
    %53 = arith.addf %26, %52 : vector<64x128xf32>
    %c2 = arith.constant 2 : index
    %c0_18 = arith.constant 0 : index
    %c0_19 = arith.constant 0 : index
    %54 = vector.load %arg1[%c2, %c0_18, %c0_19] : memref<5x64x1xf32, #tpu.memory_space<vmem>>, vector<1x64x1xf32>
    %55 = vector.shape_cast %54 : vector<1x64x1xf32> to vector<64x1xf32>
    %56 = vector.broadcast %55 : vector<64x1xf32> to vector<64x128xf32>
    %57 = vector.broadcast %0 : vector<1x128xf32> to vector<64x128xf32>
    %58 = arith.mulf %56, %57 : vector<64x128xf32>
    %59 = arith.addf %53, %58 : vector<64x128xf32>
    %60 = tpu.iota {dimensions = array<i32: 0>} : vector<128x128xi32>
    %61 = tpu.iota {dimensions = array<i32: 1>} : vector<128x128xi32>
    %c63_i32_20 = arith.constant 63 : i32
    %62 = vector.broadcast %c63_i32_20 : i32 to vector<128x128xi32>
    %63 = arith.andi %61, %62 : vector<128x128xi32>
    %c1_i32 = arith.constant 1 : i32
    %64 = vector.broadcast %c1_i32 : i32 to vector<128x128xi32>
    %65 = arith.addi %61, %64 : vector<128x128xi32>
    %66 = arith.cmpi eq, %60, %65 : vector<128x128xi32>
    %c1_i32_21 = arith.constant 1 : i32
    %67 = vector.broadcast %c1_i32_21 : i32 to vector<128x128xi32>
    %68 = arith.addi %63, %67 : vector<128x128xi32>
    %c0_i32_22 = arith.constant 0 : i32
    %69 = vector.broadcast %c0_i32_22 : i32 to vector<128x128xi32>
    %70 = arith.cmpi sge, %68, %69 : vector<128x128xi32>
    %71 = arith.andi %66, %70 : vector<128x128xi1>
    %c1_i32_23 = arith.constant 1 : i32
    %72 = vector.broadcast %c1_i32_23 : i32 to vector<128x128xi32>
    %73 = arith.addi %63, %72 : vector<128x128xi32>
    %c64_i32_24 = arith.constant 64 : i32
    %74 = vector.broadcast %c64_i32_24 : i32 to vector<128x128xi32>
    %75 = arith.cmpi slt, %73, %74 : vector<128x128xi32>
    %76 = arith.andi %71, %75 : vector<128x128xi1>
    %cst_25 = arith.constant 1.000000e+00 : f32
    %cst_26 = arith.constant 0.000000e+00 : f32
    %77 = vector.broadcast %cst_25 : f32 to vector<128x128xf32>
    %78 = vector.broadcast %cst_26 : f32 to vector<128x128xf32>
    %79 = arith.select %76, %77, %78 : vector<128x128xi1>, vector<128x128xf32>
    %cst_27 = arith.constant dense<0.000000e+00> : vector<1x128xf32>
    %80 = tpu.matmul %0, %79, %cst_27 {dimension_numbers = #tpu.dot_dimension_numbers<[1], [0], [0], [1], [0, 0, 1, 1], [], []>} : vector<1x128xf32>, vector<128x128xf32>, vector<1x128xf32> -> vector<1x128xf32>
    %c3 = arith.constant 3 : index
    %c0_28 = arith.constant 0 : index
    %c0_29 = arith.constant 0 : index
    %81 = vector.load %arg1[%c3, %c0_28, %c0_29] : memref<5x64x1xf32, #tpu.memory_space<vmem>>, vector<1x64x1xf32>
    %82 = vector.shape_cast %81 : vector<1x64x1xf32> to vector<64x1xf32>
    %83 = vector.broadcast %82 : vector<64x1xf32> to vector<64x128xf32>
    %84 = vector.broadcast %80 : vector<1x128xf32> to vector<64x128xf32>
    %85 = arith.mulf %83, %84 : vector<64x128xf32>
    %86 = arith.addf %59, %85 : vector<64x128xf32>
    %87 = tpu.iota {dimensions = array<i32: 0>} : vector<128x128xi32>
    %88 = tpu.iota {dimensions = array<i32: 1>} : vector<128x128xi32>
    %c63_i32_30 = arith.constant 63 : i32
    %89 = vector.broadcast %c63_i32_30 : i32 to vector<128x128xi32>
    %90 = arith.andi %88, %89 : vector<128x128xi32>
    %c2_i32 = arith.constant 2 : i32
    %91 = vector.broadcast %c2_i32 : i32 to vector<128x128xi32>
    %92 = arith.addi %88, %91 : vector<128x128xi32>
    %93 = arith.cmpi eq, %87, %92 : vector<128x128xi32>
    %c2_i32_31 = arith.constant 2 : i32
    %94 = vector.broadcast %c2_i32_31 : i32 to vector<128x128xi32>
    %95 = arith.addi %90, %94 : vector<128x128xi32>
    %c0_i32_32 = arith.constant 0 : i32
    %96 = vector.broadcast %c0_i32_32 : i32 to vector<128x128xi32>
    %97 = arith.cmpi sge, %95, %96 : vector<128x128xi32>
    %98 = arith.andi %93, %97 : vector<128x128xi1>
    %c2_i32_33 = arith.constant 2 : i32
    %99 = vector.broadcast %c2_i32_33 : i32 to vector<128x128xi32>
    %100 = arith.addi %90, %99 : vector<128x128xi32>
    %c64_i32_34 = arith.constant 64 : i32
    %101 = vector.broadcast %c64_i32_34 : i32 to vector<128x128xi32>
    %102 = arith.cmpi slt, %100, %101 : vector<128x128xi32>
    %103 = arith.andi %98, %102 : vector<128x128xi1>
    %cst_35 = arith.constant 1.000000e+00 : f32
    %cst_36 = arith.constant 0.000000e+00 : f32
    %104 = vector.broadcast %cst_35 : f32 to vector<128x128xf32>
    %105 = vector.broadcast %cst_36 : f32 to vector<128x128xf32>
    %106 = arith.select %103, %104, %105 : vector<128x128xi1>, vector<128x128xf32>
    %cst_37 = arith.constant dense<0.000000e+00> : vector<1x128xf32>
    %107 = tpu.matmul %0, %106, %cst_37 {dimension_numbers = #tpu.dot_dimension_numbers<[1], [0], [0], [1], [0, 0, 1, 1], [], []>} : vector<1x128xf32>, vector<128x128xf32>, vector<1x128xf32> -> vector<1x128xf32>
    %c4 = arith.constant 4 : index
    %c0_38 = arith.constant 0 : index
    %c0_39 = arith.constant 0 : index
    %108 = vector.load %arg1[%c4, %c0_38, %c0_39] : memref<5x64x1xf32, #tpu.memory_space<vmem>>, vector<1x64x1xf32>
    %109 = vector.shape_cast %108 : vector<1x64x1xf32> to vector<64x1xf32>
    %110 = vector.broadcast %109 : vector<64x1xf32> to vector<64x128xf32>
    %111 = vector.broadcast %107 : vector<1x128xf32> to vector<64x128xf32>
    %112 = arith.mulf %110, %111 : vector<64x128xf32>
    %113 = arith.addf %86, %112 : vector<64x128xf32>
    %c0_40 = arith.constant 0 : index
    %c0_41 = arith.constant 0 : index
    %114 = vector.load %arg2[%c0_40, %c0_41] : memref<64x1xf32, #tpu.memory_space<vmem>>, vector<64x1xf32>
    %115 = vector.broadcast %114 : vector<64x1xf32> to vector<64x128xf32>
    %116 = arith.addf %113, %115 : vector<64x128xf32>
    %cst_42 = arith.constant 0.000000e+00 : f32
    %117 = vector.broadcast %cst_42 : f32 to vector<64x128xf32>
    %118 = arith.maximumf %116, %117 : vector<64x128xf32>
    %119 = tpu.iota {dimensions = array<i32: 0>} : vector<128x64xi32>
    %120 = tpu.iota {dimensions = array<i32: 1>} : vector<128x64xi32>
    %c2_i32_43 = arith.constant 2 : i32
    %121 = vector.broadcast %c2_i32_43 : i32 to vector<128x64xi32>
    %122 = arith.muli %121, %120 : vector<128x64xi32>
    %123 = arith.cmpi eq, %119, %122 : vector<128x64xi32>
    %cst_44 = arith.constant 1.000000e+00 : f32
    %cst_45 = arith.constant 0.000000e+00 : f32
    %124 = vector.broadcast %cst_44 : f32 to vector<128x64xf32>
    %125 = vector.broadcast %cst_45 : f32 to vector<128x64xf32>
    %126 = arith.select %123, %124, %125 : vector<128x64xi1>, vector<128x64xf32>
    %c2_i32_46 = arith.constant 2 : i32
    %127 = vector.broadcast %c2_i32_46 : i32 to vector<128x64xi32>
    %128 = arith.muli %127, %120 : vector<128x64xi32>
    %c1_i32_47 = arith.constant 1 : i32
    %129 = vector.broadcast %c1_i32_47 : i32 to vector<128x64xi32>
    %130 = arith.addi %128, %129 : vector<128x64xi32>
    %131 = arith.cmpi eq, %119, %130 : vector<128x64xi32>
    %cst_48 = arith.constant 1.000000e+00 : f32
    %cst_49 = arith.constant 0.000000e+00 : f32
    %132 = vector.broadcast %cst_48 : f32 to vector<128x64xf32>
    %133 = vector.broadcast %cst_49 : f32 to vector<128x64xf32>
    %134 = arith.select %131, %132, %133 : vector<128x64xi1>, vector<128x64xf32>
    %cst_50 = arith.constant dense<0.000000e+00> : vector<64x64xf32>
    %135 = tpu.matmul %118, %126, %cst_50 {dimension_numbers = #tpu.dot_dimension_numbers<[1], [0], [0], [1], [0, 0, 1, 1], [], []>} : vector<64x128xf32>, vector<128x64xf32>, vector<64x64xf32> -> vector<64x64xf32>
    %cst_51 = arith.constant dense<0.000000e+00> : vector<64x64xf32>
    %136 = tpu.matmul %118, %134, %cst_51 {dimension_numbers = #tpu.dot_dimension_numbers<[1], [0], [0], [1], [0, 0, 1, 1], [], []>} : vector<64x128xf32>, vector<128x64xf32>, vector<64x64xf32> -> vector<64x64xf32>
    %137 = arith.maximumf %135, %136 : vector<64x64xf32>
    %138 = tpu.iota {dimensions = array<i32: 0>} : vector<64x64xi32>
    %139 = tpu.iota {dimensions = array<i32: 1>} : vector<64x64xi32>
    %c31_i32 = arith.constant 31 : i32
    %140 = vector.broadcast %c31_i32 : i32 to vector<64x64xi32>
    %141 = arith.andi %139, %140 : vector<64x64xi32>
    %c-2_i32_52 = arith.constant -2 : i32
    %142 = vector.broadcast %c-2_i32_52 : i32 to vector<64x64xi32>
    %143 = arith.addi %139, %142 : vector<64x64xi32>
    %144 = arith.cmpi eq, %138, %143 : vector<64x64xi32>
    %c-2_i32_53 = arith.constant -2 : i32
    %145 = vector.broadcast %c-2_i32_53 : i32 to vector<64x64xi32>
    %146 = arith.addi %141, %145 : vector<64x64xi32>
    %c0_i32_54 = arith.constant 0 : i32
    %147 = vector.broadcast %c0_i32_54 : i32 to vector<64x64xi32>
    %148 = arith.cmpi sge, %146, %147 : vector<64x64xi32>
    %149 = arith.andi %144, %148 : vector<64x64xi1>
    %c-2_i32_55 = arith.constant -2 : i32
    %150 = vector.broadcast %c-2_i32_55 : i32 to vector<64x64xi32>
    %151 = arith.addi %141, %150 : vector<64x64xi32>
    %c32_i32 = arith.constant 32 : i32
    %152 = vector.broadcast %c32_i32 : i32 to vector<64x64xi32>
    %153 = arith.cmpi slt, %151, %152 : vector<64x64xi32>
    %154 = arith.andi %149, %153 : vector<64x64xi1>
    %cst_56 = arith.constant 1.000000e+00 : f32
    %cst_57 = arith.constant 0.000000e+00 : f32
    %155 = vector.broadcast %cst_56 : f32 to vector<64x64xf32>
    %156 = vector.broadcast %cst_57 : f32 to vector<64x64xf32>
    %157 = arith.select %154, %155, %156 : vector<64x64xi1>, vector<64x64xf32>
    %cst_58 = arith.constant dense<0.000000e+00> : vector<64x64xf32>
    %158 = tpu.matmul %137, %157, %cst_58 {dimension_numbers = #tpu.dot_dimension_numbers<[1], [0], [0], [1], [0, 0, 1, 1], [], []>} : vector<64x64xf32>, vector<64x64xf32>, vector<64x64xf32> -> vector<64x64xf32>
    %c0_59 = arith.constant 0 : index
    %c0_60 = arith.constant 0 : index
    %c0_61 = arith.constant 0 : index
    %159 = vector.load %arg3[%c0_59, %c0_60, %c0_61] : memref<5x64x64xf32, #tpu.memory_space<vmem>>, vector<1x64x64xf32>
    %160 = vector.shape_cast %159 : vector<1x64x64xf32> to vector<64x64xf32>
    %cst_62 = arith.constant dense<0.000000e+00> : vector<64x64xf32>
    %161 = tpu.matmul %160, %158, %cst_62 {dimension_numbers = #tpu.dot_dimension_numbers<[1], [0], [0], [1], [0, 0, 1, 1], [], []>} : vector<64x64xf32>, vector<64x64xf32>, vector<64x64xf32> -> vector<64x64xf32>
    %162 = tpu.iota {dimensions = array<i32: 0>} : vector<64x64xi32>
    %163 = tpu.iota {dimensions = array<i32: 1>} : vector<64x64xi32>
    %c31_i32_63 = arith.constant 31 : i32
    %164 = vector.broadcast %c31_i32_63 : i32 to vector<64x64xi32>
    %165 = arith.andi %163, %164 : vector<64x64xi32>
    %c-1_i32_64 = arith.constant -1 : i32
    %166 = vector.broadcast %c-1_i32_64 : i32 to vector<64x64xi32>
    %167 = arith.addi %163, %166 : vector<64x64xi32>
    %168 = arith.cmpi eq, %162, %167 : vector<64x64xi32>
    %c-1_i32_65 = arith.constant -1 : i32
    %169 = vector.broadcast %c-1_i32_65 : i32 to vector<64x64xi32>
    %170 = arith.addi %165, %169 : vector<64x64xi32>
    %c0_i32_66 = arith.constant 0 : i32
    %171 = vector.broadcast %c0_i32_66 : i32 to vector<64x64xi32>
    %172 = arith.cmpi sge, %170, %171 : vector<64x64xi32>
    %173 = arith.andi %168, %172 : vector<64x64xi1>
    %c-1_i32_67 = arith.constant -1 : i32
    %174 = vector.broadcast %c-1_i32_67 : i32 to vector<64x64xi32>
    %175 = arith.addi %165, %174 : vector<64x64xi32>
    %c32_i32_68 = arith.constant 32 : i32
    %176 = vector.broadcast %c32_i32_68 : i32 to vector<64x64xi32>
    %177 = arith.cmpi slt, %175, %176 : vector<64x64xi32>
    %178 = arith.andi %173, %177 : vector<64x64xi1>
    %cst_69 = arith.constant 1.000000e+00 : f32
    %cst_70 = arith.constant 0.000000e+00 : f32
    %179 = vector.broadcast %cst_69 : f32 to vector<64x64xf32>
    %180 = vector.broadcast %cst_70 : f32 to vector<64x64xf32>
    %181 = arith.select %178, %179, %180 : vector<64x64xi1>, vector<64x64xf32>
    %cst_71 = arith.constant dense<0.000000e+00> : vector<64x64xf32>
    %182 = tpu.matmul %137, %181, %cst_71 {dimension_numbers = #tpu.dot_dimension_numbers<[1], [0], [0], [1], [0, 0, 1, 1], [], []>} : vector<64x64xf32>, vector<64x64xf32>, vector<64x64xf32> -> vector<64x64xf32>
    %c1_72 = arith.constant 1 : index
    %c0_73 = arith.constant 0 : index
    %c0_74 = arith.constant 0 : index
    %183 = vector.load %arg3[%c1_72, %c0_73, %c0_74] : memref<5x64x64xf32, #tpu.memory_space<vmem>>, vector<1x64x64xf32>
    %184 = vector.shape_cast %183 : vector<1x64x64xf32> to vector<64x64xf32>
    %cst_75 = arith.constant dense<0.000000e+00> : vector<64x64xf32>
    %185 = tpu.matmul %184, %182, %cst_75 {dimension_numbers = #tpu.dot_dimension_numbers<[1], [0], [0], [1], [0, 0, 1, 1], [], []>} : vector<64x64xf32>, vector<64x64xf32>, vector<64x64xf32> -> vector<64x64xf32>
    %186 = arith.addf %161, %185 : vector<64x64xf32>
    %c2_76 = arith.constant 2 : index
    %c0_77 = arith.constant 0 : index
    %c0_78 = arith.constant 0 : index
    %187 = vector.load %arg3[%c2_76, %c0_77, %c0_78] : memref<5x64x64xf32, #tpu.memory_space<vmem>>, vector<1x64x64xf32>
    %188 = vector.shape_cast %187 : vector<1x64x64xf32> to vector<64x64xf32>
    %cst_79 = arith.constant dense<0.000000e+00> : vector<64x64xf32>
    %189 = tpu.matmul %188, %137, %cst_79 {dimension_numbers = #tpu.dot_dimension_numbers<[1], [0], [0], [1], [0, 0, 1, 1], [], []>} : vector<64x64xf32>, vector<64x64xf32>, vector<64x64xf32> -> vector<64x64xf32>
    %190 = arith.addf %186, %189 : vector<64x64xf32>
    %191 = tpu.iota {dimensions = array<i32: 0>} : vector<64x64xi32>
    %192 = tpu.iota {dimensions = array<i32: 1>} : vector<64x64xi32>
    %c31_i32_80 = arith.constant 31 : i32
    %193 = vector.broadcast %c31_i32_80 : i32 to vector<64x64xi32>
    %194 = arith.andi %192, %193 : vector<64x64xi32>
    %c1_i32_81 = arith.constant 1 : i32
    %195 = vector.broadcast %c1_i32_81 : i32 to vector<64x64xi32>
    %196 = arith.addi %192, %195 : vector<64x64xi32>
    %197 = arith.cmpi eq, %191, %196 : vector<64x64xi32>
    %c1_i32_82 = arith.constant 1 : i32
    %198 = vector.broadcast %c1_i32_82 : i32 to vector<64x64xi32>
    %199 = arith.addi %194, %198 : vector<64x64xi32>
    %c0_i32_83 = arith.constant 0 : i32
    %200 = vector.broadcast %c0_i32_83 : i32 to vector<64x64xi32>
    %201 = arith.cmpi sge, %199, %200 : vector<64x64xi32>
    %202 = arith.andi %197, %201 : vector<64x64xi1>
    %c1_i32_84 = arith.constant 1 : i32
    %203 = vector.broadcast %c1_i32_84 : i32 to vector<64x64xi32>
    %204 = arith.addi %194, %203 : vector<64x64xi32>
    %c32_i32_85 = arith.constant 32 : i32
    %205 = vector.broadcast %c32_i32_85 : i32 to vector<64x64xi32>
    %206 = arith.cmpi slt, %204, %205 : vector<64x64xi32>
    %207 = arith.andi %202, %206 : vector<64x64xi1>
    %cst_86 = arith.constant 1.000000e+00 : f32
    %cst_87 = arith.constant 0.000000e+00 : f32
    %208 = vector.broadcast %cst_86 : f32 to vector<64x64xf32>
    %209 = vector.broadcast %cst_87 : f32 to vector<64x64xf32>
    %210 = arith.select %207, %208, %209 : vector<64x64xi1>, vector<64x64xf32>
    %cst_88 = arith.constant dense<0.000000e+00> : vector<64x64xf32>
    %211 = tpu.matmul %137, %210, %cst_88 {dimension_numbers = #tpu.dot_dimension_numbers<[1], [0], [0], [1], [0, 0, 1, 1], [], []>} : vector<64x64xf32>, vector<64x64xf32>, vector<64x64xf32> -> vector<64x64xf32>
    %c3_89 = arith.constant 3 : index
    %c0_90 = arith.constant 0 : index
    %c0_91 = arith.constant 0 : index
    %212 = vector.load %arg3[%c3_89, %c0_90, %c0_91] : memref<5x64x64xf32, #tpu.memory_space<vmem>>, vector<1x64x64xf32>
    %213 = vector.shape_cast %212 : vector<1x64x64xf32> to vector<64x64xf32>
    %cst_92 = arith.constant dense<0.000000e+00> : vector<64x64xf32>
    %214 = tpu.matmul %213, %211, %cst_92 {dimension_numbers = #tpu.dot_dimension_numbers<[1], [0], [0], [1], [0, 0, 1, 1], [], []>} : vector<64x64xf32>, vector<64x64xf32>, vector<64x64xf32> -> vector<64x64xf32>
    %215 = arith.addf %190, %214 : vector<64x64xf32>
    %216 = tpu.iota {dimensions = array<i32: 0>} : vector<64x64xi32>
    %217 = tpu.iota {dimensions = array<i32: 1>} : vector<64x64xi32>
    %c31_i32_93 = arith.constant 31 : i32
    %218 = vector.broadcast %c31_i32_93 : i32 to vector<64x64xi32>
    %219 = arith.andi %217, %218 : vector<64x64xi32>
    %c2_i32_94 = arith.constant 2 : i32
    %220 = vector.broadcast %c2_i32_94 : i32 to vector<64x64xi32>
    %221 = arith.addi %217, %220 : vector<64x64xi32>
    %222 = arith.cmpi eq, %216, %221 : vector<64x64xi32>
    %c2_i32_95 = arith.constant 2 : i32
    %223 = vector.broadcast %c2_i32_95 : i32 to vector<64x64xi32>
    %224 = arith.addi %219, %223 : vector<64x64xi32>
    %c0_i32_96 = arith.constant 0 : i32
    %225 = vector.broadcast %c0_i32_96 : i32 to vector<64x64xi32>
    %226 = arith.cmpi sge, %224, %225 : vector<64x64xi32>
    %227 = arith.andi %222, %226 : vector<64x64xi1>
    %c2_i32_97 = arith.constant 2 : i32
    %228 = vector.broadcast %c2_i32_97 : i32 to vector<64x64xi32>
    %229 = arith.addi %219, %228 : vector<64x64xi32>
    %c32_i32_98 = arith.constant 32 : i32
    %230 = vector.broadcast %c32_i32_98 : i32 to vector<64x64xi32>
    %231 = arith.cmpi slt, %229, %230 : vector<64x64xi32>
    %232 = arith.andi %227, %231 : vector<64x64xi1>
    %cst_99 = arith.constant 1.000000e+00 : f32
    %cst_100 = arith.constant 0.000000e+00 : f32
    %233 = vector.broadcast %cst_99 : f32 to vector<64x64xf32>
    %234 = vector.broadcast %cst_100 : f32 to vector<64x64xf32>
    %235 = arith.select %232, %233, %234 : vector<64x64xi1>, vector<64x64xf32>
    %cst_101 = arith.constant dense<0.000000e+00> : vector<64x64xf32>
    %236 = tpu.matmul %137, %235, %cst_101 {dimension_numbers = #tpu.dot_dimension_numbers<[1], [0], [0], [1], [0, 0, 1, 1], [], []>} : vector<64x64xf32>, vector<64x64xf32>, vector<64x64xf32> -> vector<64x64xf32>
    %c4_102 = arith.constant 4 : index
    %c0_103 = arith.constant 0 : index
    %c0_104 = arith.constant 0 : index
    %237 = vector.load %arg3[%c4_102, %c0_103, %c0_104] : memref<5x64x64xf32, #tpu.memory_space<vmem>>, vector<1x64x64xf32>
    %238 = vector.shape_cast %237 : vector<1x64x64xf32> to vector<64x64xf32>
    %cst_105 = arith.constant dense<0.000000e+00> : vector<64x64xf32>
    %239 = tpu.matmul %238, %236, %cst_105 {dimension_numbers = #tpu.dot_dimension_numbers<[1], [0], [0], [1], [0, 0, 1, 1], [], []>} : vector<64x64xf32>, vector<64x64xf32>, vector<64x64xf32> -> vector<64x64xf32>
    %240 = arith.addf %215, %239 : vector<64x64xf32>
    %c0_106 = arith.constant 0 : index
    %c0_107 = arith.constant 0 : index
    %241 = vector.load %arg4[%c0_106, %c0_107] : memref<64x1xf32, #tpu.memory_space<vmem>>, vector<64x1xf32>
    %242 = vector.broadcast %241 : vector<64x1xf32> to vector<64x64xf32>
    %243 = arith.addf %240, %242 : vector<64x64xf32>
    %cst_108 = arith.constant 0.000000e+00 : f32
    %244 = vector.broadcast %cst_108 : f32 to vector<64x64xf32>
    %245 = arith.maximumf %243, %244 : vector<64x64xf32>
    %246 = tpu.iota {dimensions = array<i32: 0>} : vector<64x32xi32>
    %247 = tpu.iota {dimensions = array<i32: 1>} : vector<64x32xi32>
    %c2_i32_109 = arith.constant 2 : i32
    %248 = vector.broadcast %c2_i32_109 : i32 to vector<64x32xi32>
    %249 = arith.muli %248, %247 : vector<64x32xi32>
    %250 = arith.cmpi eq, %246, %249 : vector<64x32xi32>
    %cst_110 = arith.constant 1.000000e+00 : f32
    %cst_111 = arith.constant 0.000000e+00 : f32
    %251 = vector.broadcast %cst_110 : f32 to vector<64x32xf32>
    %252 = vector.broadcast %cst_111 : f32 to vector<64x32xf32>
    %253 = arith.select %250, %251, %252 : vector<64x32xi1>, vector<64x32xf32>
    %c2_i32_112 = arith.constant 2 : i32
    %254 = vector.broadcast %c2_i32_112 : i32 to vector<64x32xi32>
    %255 = arith.muli %254, %247 : vector<64x32xi32>
    %c1_i32_113 = arith.constant 1 : i32
    %256 = vector.broadcast %c1_i32_113 : i32 to vector<64x32xi32>
    %257 = arith.addi %255, %256 : vector<64x32xi32>
    %258 = arith.cmpi eq, %246, %257 : vector<64x32xi32>
    %cst_114 = arith.constant 1.000000e+00 : f32
    %cst_115 = arith.constant 0.000000e+00 : f32
    %259 = vector.broadcast %cst_114 : f32 to vector<64x32xf32>
    %260 = vector.broadcast %cst_115 : f32 to vector<64x32xf32>
    %261 = arith.select %258, %259, %260 : vector<64x32xi1>, vector<64x32xf32>
    %cst_116 = arith.constant dense<0.000000e+00> : vector<64x32xf32>
    %262 = tpu.matmul %245, %253, %cst_116 {dimension_numbers = #tpu.dot_dimension_numbers<[1], [0], [0], [1], [0, 0, 1, 1], [], []>} : vector<64x64xf32>, vector<64x32xf32>, vector<64x32xf32> -> vector<64x32xf32>
    %cst_117 = arith.constant dense<0.000000e+00> : vector<64x32xf32>
    %263 = tpu.matmul %245, %261, %cst_117 {dimension_numbers = #tpu.dot_dimension_numbers<[1], [0], [0], [1], [0, 0, 1, 1], [], []>} : vector<64x64xf32>, vector<64x32xf32>, vector<64x32xf32> -> vector<64x32xf32>
    %264 = arith.maximumf %262, %263 : vector<64x32xf32>
    %265 = tpu.iota {dimensions = array<i32: 0>} : vector<32x32xi32>
    %266 = tpu.iota {dimensions = array<i32: 1>} : vector<32x32xi32>
    %c15_i32 = arith.constant 15 : i32
    %267 = vector.broadcast %c15_i32 : i32 to vector<32x32xi32>
    %268 = arith.andi %266, %267 : vector<32x32xi32>
    %c-2_i32_118 = arith.constant -2 : i32
    %269 = vector.broadcast %c-2_i32_118 : i32 to vector<32x32xi32>
    %270 = arith.addi %266, %269 : vector<32x32xi32>
    %271 = arith.cmpi eq, %265, %270 : vector<32x32xi32>
    %c-2_i32_119 = arith.constant -2 : i32
    %272 = vector.broadcast %c-2_i32_119 : i32 to vector<32x32xi32>
    %273 = arith.addi %268, %272 : vector<32x32xi32>
    %c0_i32_120 = arith.constant 0 : i32
    %274 = vector.broadcast %c0_i32_120 : i32 to vector<32x32xi32>
    %275 = arith.cmpi sge, %273, %274 : vector<32x32xi32>
    %276 = arith.andi %271, %275 : vector<32x32xi1>
    %c-2_i32_121 = arith.constant -2 : i32
    %277 = vector.broadcast %c-2_i32_121 : i32 to vector<32x32xi32>
    %278 = arith.addi %268, %277 : vector<32x32xi32>
    %c16_i32 = arith.constant 16 : i32
    %279 = vector.broadcast %c16_i32 : i32 to vector<32x32xi32>
    %280 = arith.cmpi slt, %278, %279 : vector<32x32xi32>
    %281 = arith.andi %276, %280 : vector<32x32xi1>
    %cst_122 = arith.constant 1.000000e+00 : f32
    %cst_123 = arith.constant 0.000000e+00 : f32
    %282 = vector.broadcast %cst_122 : f32 to vector<32x32xf32>
    %283 = vector.broadcast %cst_123 : f32 to vector<32x32xf32>
    %284 = arith.select %281, %282, %283 : vector<32x32xi1>, vector<32x32xf32>
    %cst_124 = arith.constant dense<0.000000e+00> : vector<64x32xf32>
    %285 = tpu.matmul %264, %284, %cst_124 {dimension_numbers = #tpu.dot_dimension_numbers<[1], [0], [0], [1], [0, 0, 1, 1], [], []>} : vector<64x32xf32>, vector<32x32xf32>, vector<64x32xf32> -> vector<64x32xf32>
    %c0_125 = arith.constant 0 : index
    %c0_126 = arith.constant 0 : index
    %c0_127 = arith.constant 0 : index
    %286 = vector.load %arg5[%c0_125, %c0_126, %c0_127] : memref<5x64x64xf32, #tpu.memory_space<vmem>>, vector<1x64x64xf32>
    %287 = vector.shape_cast %286 : vector<1x64x64xf32> to vector<64x64xf32>
    %cst_128 = arith.constant dense<0.000000e+00> : vector<64x32xf32>
    %288 = tpu.matmul %287, %285, %cst_128 {dimension_numbers = #tpu.dot_dimension_numbers<[1], [0], [0], [1], [0, 0, 1, 1], [], []>} : vector<64x64xf32>, vector<64x32xf32>, vector<64x32xf32> -> vector<64x32xf32>
    %289 = tpu.iota {dimensions = array<i32: 0>} : vector<32x32xi32>
    %290 = tpu.iota {dimensions = array<i32: 1>} : vector<32x32xi32>
    %c15_i32_129 = arith.constant 15 : i32
    %291 = vector.broadcast %c15_i32_129 : i32 to vector<32x32xi32>
    %292 = arith.andi %290, %291 : vector<32x32xi32>
    %c-1_i32_130 = arith.constant -1 : i32
    %293 = vector.broadcast %c-1_i32_130 : i32 to vector<32x32xi32>
    %294 = arith.addi %290, %293 : vector<32x32xi32>
    %295 = arith.cmpi eq, %289, %294 : vector<32x32xi32>
    %c-1_i32_131 = arith.constant -1 : i32
    %296 = vector.broadcast %c-1_i32_131 : i32 to vector<32x32xi32>
    %297 = arith.addi %292, %296 : vector<32x32xi32>
    %c0_i32_132 = arith.constant 0 : i32
    %298 = vector.broadcast %c0_i32_132 : i32 to vector<32x32xi32>
    %299 = arith.cmpi sge, %297, %298 : vector<32x32xi32>
    %300 = arith.andi %295, %299 : vector<32x32xi1>
    %c-1_i32_133 = arith.constant -1 : i32
    %301 = vector.broadcast %c-1_i32_133 : i32 to vector<32x32xi32>
    %302 = arith.addi %292, %301 : vector<32x32xi32>
    %c16_i32_134 = arith.constant 16 : i32
    %303 = vector.broadcast %c16_i32_134 : i32 to vector<32x32xi32>
    %304 = arith.cmpi slt, %302, %303 : vector<32x32xi32>
    %305 = arith.andi %300, %304 : vector<32x32xi1>
    %cst_135 = arith.constant 1.000000e+00 : f32
    %cst_136 = arith.constant 0.000000e+00 : f32
    %306 = vector.broadcast %cst_135 : f32 to vector<32x32xf32>
    %307 = vector.broadcast %cst_136 : f32 to vector<32x32xf32>
    %308 = arith.select %305, %306, %307 : vector<32x32xi1>, vector<32x32xf32>
    %cst_137 = arith.constant dense<0.000000e+00> : vector<64x32xf32>
    %309 = tpu.matmul %264, %308, %cst_137 {dimension_numbers = #tpu.dot_dimension_numbers<[1], [0], [0], [1], [0, 0, 1, 1], [], []>} : vector<64x32xf32>, vector<32x32xf32>, vector<64x32xf32> -> vector<64x32xf32>
    %c1_138 = arith.constant 1 : index
    %c0_139 = arith.constant 0 : index
    %c0_140 = arith.constant 0 : index
    %310 = vector.load %arg5[%c1_138, %c0_139, %c0_140] : memref<5x64x64xf32, #tpu.memory_space<vmem>>, vector<1x64x64xf32>
    %311 = vector.shape_cast %310 : vector<1x64x64xf32> to vector<64x64xf32>
    %cst_141 = arith.constant dense<0.000000e+00> : vector<64x32xf32>
    %312 = tpu.matmul %311, %309, %cst_141 {dimension_numbers = #tpu.dot_dimension_numbers<[1], [0], [0], [1], [0, 0, 1, 1], [], []>} : vector<64x64xf32>, vector<64x32xf32>, vector<64x32xf32> -> vector<64x32xf32>
    %313 = arith.addf %288, %312 : vector<64x32xf32>
    %c2_142 = arith.constant 2 : index
    %c0_143 = arith.constant 0 : index
    %c0_144 = arith.constant 0 : index
    %314 = vector.load %arg5[%c2_142, %c0_143, %c0_144] : memref<5x64x64xf32, #tpu.memory_space<vmem>>, vector<1x64x64xf32>
    %315 = vector.shape_cast %314 : vector<1x64x64xf32> to vector<64x64xf32>
    %cst_145 = arith.constant dense<0.000000e+00> : vector<64x32xf32>
    %316 = tpu.matmul %315, %264, %cst_145 {dimension_numbers = #tpu.dot_dimension_numbers<[1], [0], [0], [1], [0, 0, 1, 1], [], []>} : vector<64x64xf32>, vector<64x32xf32>, vector<64x32xf32> -> vector<64x32xf32>
    %317 = arith.addf %313, %316 : vector<64x32xf32>
    %318 = tpu.iota {dimensions = array<i32: 0>} : vector<32x32xi32>
    %319 = tpu.iota {dimensions = array<i32: 1>} : vector<32x32xi32>
    %c15_i32_146 = arith.constant 15 : i32
    %320 = vector.broadcast %c15_i32_146 : i32 to vector<32x32xi32>
    %321 = arith.andi %319, %320 : vector<32x32xi32>
    %c1_i32_147 = arith.constant 1 : i32
    %322 = vector.broadcast %c1_i32_147 : i32 to vector<32x32xi32>
    %323 = arith.addi %319, %322 : vector<32x32xi32>
    %324 = arith.cmpi eq, %318, %323 : vector<32x32xi32>
    %c1_i32_148 = arith.constant 1 : i32
    %325 = vector.broadcast %c1_i32_148 : i32 to vector<32x32xi32>
    %326 = arith.addi %321, %325 : vector<32x32xi32>
    %c0_i32_149 = arith.constant 0 : i32
    %327 = vector.broadcast %c0_i32_149 : i32 to vector<32x32xi32>
    %328 = arith.cmpi sge, %326, %327 : vector<32x32xi32>
    %329 = arith.andi %324, %328 : vector<32x32xi1>
    %c1_i32_150 = arith.constant 1 : i32
    %330 = vector.broadcast %c1_i32_150 : i32 to vector<32x32xi32>
    %331 = arith.addi %321, %330 : vector<32x32xi32>
    %c16_i32_151 = arith.constant 16 : i32
    %332 = vector.broadcast %c16_i32_151 : i32 to vector<32x32xi32>
    %333 = arith.cmpi slt, %331, %332 : vector<32x32xi32>
    %334 = arith.andi %329, %333 : vector<32x32xi1>
    %cst_152 = arith.constant 1.000000e+00 : f32
    %cst_153 = arith.constant 0.000000e+00 : f32
    %335 = vector.broadcast %cst_152 : f32 to vector<32x32xf32>
    %336 = vector.broadcast %cst_153 : f32 to vector<32x32xf32>
    %337 = arith.select %334, %335, %336 : vector<32x32xi1>, vector<32x32xf32>
    %cst_154 = arith.constant dense<0.000000e+00> : vector<64x32xf32>
    %338 = tpu.matmul %264, %337, %cst_154 {dimension_numbers = #tpu.dot_dimension_numbers<[1], [0], [0], [1], [0, 0, 1, 1], [], []>} : vector<64x32xf32>, vector<32x32xf32>, vector<64x32xf32> -> vector<64x32xf32>
    %c3_155 = arith.constant 3 : index
    %c0_156 = arith.constant 0 : index
    %c0_157 = arith.constant 0 : index
    %339 = vector.load %arg5[%c3_155, %c0_156, %c0_157] : memref<5x64x64xf32, #tpu.memory_space<vmem>>, vector<1x64x64xf32>
    %340 = vector.shape_cast %339 : vector<1x64x64xf32> to vector<64x64xf32>
    %cst_158 = arith.constant dense<0.000000e+00> : vector<64x32xf32>
    %341 = tpu.matmul %340, %338, %cst_158 {dimension_numbers = #tpu.dot_dimension_numbers<[1], [0], [0], [1], [0, 0, 1, 1], [], []>} : vector<64x64xf32>, vector<64x32xf32>, vector<64x32xf32> -> vector<64x32xf32>
    %342 = arith.addf %317, %341 : vector<64x32xf32>
    %343 = tpu.iota {dimensions = array<i32: 0>} : vector<32x32xi32>
    %344 = tpu.iota {dimensions = array<i32: 1>} : vector<32x32xi32>
    %c15_i32_159 = arith.constant 15 : i32
    %345 = vector.broadcast %c15_i32_159 : i32 to vector<32x32xi32>
    %346 = arith.andi %344, %345 : vector<32x32xi32>
    %c2_i32_160 = arith.constant 2 : i32
    %347 = vector.broadcast %c2_i32_160 : i32 to vector<32x32xi32>
    %348 = arith.addi %344, %347 : vector<32x32xi32>
    %349 = arith.cmpi eq, %343, %348 : vector<32x32xi32>
    %c2_i32_161 = arith.constant 2 : i32
    %350 = vector.broadcast %c2_i32_161 : i32 to vector<32x32xi32>
    %351 = arith.addi %346, %350 : vector<32x32xi32>
    %c0_i32_162 = arith.constant 0 : i32
    %352 = vector.broadcast %c0_i32_162 : i32 to vector<32x32xi32>
    %353 = arith.cmpi sge, %351, %352 : vector<32x32xi32>
    %354 = arith.andi %349, %353 : vector<32x32xi1>
    %c2_i32_163 = arith.constant 2 : i32
    %355 = vector.broadcast %c2_i32_163 : i32 to vector<32x32xi32>
    %356 = arith.addi %346, %355 : vector<32x32xi32>
    %c16_i32_164 = arith.constant 16 : i32
    %357 = vector.broadcast %c16_i32_164 : i32 to vector<32x32xi32>
    %358 = arith.cmpi slt, %356, %357 : vector<32x32xi32>
    %359 = arith.andi %354, %358 : vector<32x32xi1>
    %cst_165 = arith.constant 1.000000e+00 : f32
    %cst_166 = arith.constant 0.000000e+00 : f32
    %360 = vector.broadcast %cst_165 : f32 to vector<32x32xf32>
    %361 = vector.broadcast %cst_166 : f32 to vector<32x32xf32>
    %362 = arith.select %359, %360, %361 : vector<32x32xi1>, vector<32x32xf32>
    %cst_167 = arith.constant dense<0.000000e+00> : vector<64x32xf32>
    %363 = tpu.matmul %264, %362, %cst_167 {dimension_numbers = #tpu.dot_dimension_numbers<[1], [0], [0], [1], [0, 0, 1, 1], [], []>} : vector<64x32xf32>, vector<32x32xf32>, vector<64x32xf32> -> vector<64x32xf32>
    %c4_168 = arith.constant 4 : index
    %c0_169 = arith.constant 0 : index
    %c0_170 = arith.constant 0 : index
    %364 = vector.load %arg5[%c4_168, %c0_169, %c0_170] : memref<5x64x64xf32, #tpu.memory_space<vmem>>, vector<1x64x64xf32>
    %365 = vector.shape_cast %364 : vector<1x64x64xf32> to vector<64x64xf32>
    %cst_171 = arith.constant dense<0.000000e+00> : vector<64x32xf32>
    %366 = tpu.matmul %365, %363, %cst_171 {dimension_numbers = #tpu.dot_dimension_numbers<[1], [0], [0], [1], [0, 0, 1, 1], [], []>} : vector<64x64xf32>, vector<64x32xf32>, vector<64x32xf32> -> vector<64x32xf32>
    %367 = arith.addf %342, %366 : vector<64x32xf32>
    %c0_172 = arith.constant 0 : index
    %c0_173 = arith.constant 0 : index
    %368 = vector.load %arg6[%c0_172, %c0_173] : memref<64x1xf32, #tpu.memory_space<vmem>>, vector<64x1xf32>
    %369 = vector.broadcast %368 : vector<64x1xf32> to vector<64x32xf32>
    %370 = arith.addf %367, %369 : vector<64x32xf32>
    %cst_174 = arith.constant 0.000000e+00 : f32
    %371 = vector.broadcast %cst_174 : f32 to vector<64x32xf32>
    %372 = arith.maximumf %370, %371 : vector<64x32xf32>
    %373 = tpu.iota {dimensions = array<i32: 0>} : vector<32x16xi32>
    %374 = tpu.iota {dimensions = array<i32: 1>} : vector<32x16xi32>
    %c2_i32_175 = arith.constant 2 : i32
    %375 = vector.broadcast %c2_i32_175 : i32 to vector<32x16xi32>
    %376 = arith.muli %375, %374 : vector<32x16xi32>
    %377 = arith.cmpi eq, %373, %376 : vector<32x16xi32>
    %cst_176 = arith.constant 1.000000e+00 : f32
    %cst_177 = arith.constant 0.000000e+00 : f32
    %378 = vector.broadcast %cst_176 : f32 to vector<32x16xf32>
    %379 = vector.broadcast %cst_177 : f32 to vector<32x16xf32>
    %380 = arith.select %377, %378, %379 : vector<32x16xi1>, vector<32x16xf32>
    %c2_i32_178 = arith.constant 2 : i32
    %381 = vector.broadcast %c2_i32_178 : i32 to vector<32x16xi32>
    %382 = arith.muli %381, %374 : vector<32x16xi32>
    %c1_i32_179 = arith.constant 1 : i32
    %383 = vector.broadcast %c1_i32_179 : i32 to vector<32x16xi32>
    %384 = arith.addi %382, %383 : vector<32x16xi32>
    %385 = arith.cmpi eq, %373, %384 : vector<32x16xi32>
    %cst_180 = arith.constant 1.000000e+00 : f32
    %cst_181 = arith.constant 0.000000e+00 : f32
    %386 = vector.broadcast %cst_180 : f32 to vector<32x16xf32>
    %387 = vector.broadcast %cst_181 : f32 to vector<32x16xf32>
    %388 = arith.select %385, %386, %387 : vector<32x16xi1>, vector<32x16xf32>
    %cst_182 = arith.constant dense<0.000000e+00> : vector<64x16xf32>
    %389 = tpu.matmul %372, %380, %cst_182 {dimension_numbers = #tpu.dot_dimension_numbers<[1], [0], [0], [1], [0, 0, 1, 1], [], []>} : vector<64x32xf32>, vector<32x16xf32>, vector<64x16xf32> -> vector<64x16xf32>
    %cst_183 = arith.constant dense<0.000000e+00> : vector<64x16xf32>
    %390 = tpu.matmul %372, %388, %cst_183 {dimension_numbers = #tpu.dot_dimension_numbers<[1], [0], [0], [1], [0, 0, 1, 1], [], []>} : vector<64x32xf32>, vector<32x16xf32>, vector<64x16xf32> -> vector<64x16xf32>
    %391 = arith.maximumf %389, %390 : vector<64x16xf32>
    %392 = tpu.iota {dimensions = array<i32: 0>} : vector<16x16xi32>
    %393 = tpu.iota {dimensions = array<i32: 1>} : vector<16x16xi32>
    %c7_i32 = arith.constant 7 : i32
    %394 = vector.broadcast %c7_i32 : i32 to vector<16x16xi32>
    %395 = arith.andi %393, %394 : vector<16x16xi32>
    %c-2_i32_184 = arith.constant -2 : i32
    %396 = vector.broadcast %c-2_i32_184 : i32 to vector<16x16xi32>
    %397 = arith.addi %393, %396 : vector<16x16xi32>
    %398 = arith.cmpi eq, %392, %397 : vector<16x16xi32>
    %c-2_i32_185 = arith.constant -2 : i32
    %399 = vector.broadcast %c-2_i32_185 : i32 to vector<16x16xi32>
    %400 = arith.addi %395, %399 : vector<16x16xi32>
    %c0_i32_186 = arith.constant 0 : i32
    %401 = vector.broadcast %c0_i32_186 : i32 to vector<16x16xi32>
    %402 = arith.cmpi sge, %400, %401 : vector<16x16xi32>
    %403 = arith.andi %398, %402 : vector<16x16xi1>
    %c-2_i32_187 = arith.constant -2 : i32
    %404 = vector.broadcast %c-2_i32_187 : i32 to vector<16x16xi32>
    %405 = arith.addi %395, %404 : vector<16x16xi32>
    %c8_i32 = arith.constant 8 : i32
    %406 = vector.broadcast %c8_i32 : i32 to vector<16x16xi32>
    %407 = arith.cmpi slt, %405, %406 : vector<16x16xi32>
    %408 = arith.andi %403, %407 : vector<16x16xi1>
    %cst_188 = arith.constant 1.000000e+00 : f32
    %cst_189 = arith.constant 0.000000e+00 : f32
    %409 = vector.broadcast %cst_188 : f32 to vector<16x16xf32>
    %410 = vector.broadcast %cst_189 : f32 to vector<16x16xf32>
    %411 = arith.select %408, %409, %410 : vector<16x16xi1>, vector<16x16xf32>
    %cst_190 = arith.constant dense<0.000000e+00> : vector<64x16xf32>
    %412 = tpu.matmul %391, %411, %cst_190 {dimension_numbers = #tpu.dot_dimension_numbers<[1], [0], [0], [1], [0, 0, 1, 1], [], []>} : vector<64x16xf32>, vector<16x16xf32>, vector<64x16xf32> -> vector<64x16xf32>
    %c0_191 = arith.constant 0 : index
    %c0_192 = arith.constant 0 : index
    %c0_193 = arith.constant 0 : index
    %413 = vector.load %arg7[%c0_191, %c0_192, %c0_193] : memref<5x64x64xf32, #tpu.memory_space<vmem>>, vector<1x64x64xf32>
    %414 = vector.shape_cast %413 : vector<1x64x64xf32> to vector<64x64xf32>
    %cst_194 = arith.constant dense<0.000000e+00> : vector<64x16xf32>
    %415 = tpu.matmul %414, %412, %cst_194 {dimension_numbers = #tpu.dot_dimension_numbers<[1], [0], [0], [1], [0, 0, 1, 1], [], []>} : vector<64x64xf32>, vector<64x16xf32>, vector<64x16xf32> -> vector<64x16xf32>
    %416 = tpu.iota {dimensions = array<i32: 0>} : vector<16x16xi32>
    %417 = tpu.iota {dimensions = array<i32: 1>} : vector<16x16xi32>
    %c7_i32_195 = arith.constant 7 : i32
    %418 = vector.broadcast %c7_i32_195 : i32 to vector<16x16xi32>
    %419 = arith.andi %417, %418 : vector<16x16xi32>
    %c-1_i32_196 = arith.constant -1 : i32
    %420 = vector.broadcast %c-1_i32_196 : i32 to vector<16x16xi32>
    %421 = arith.addi %417, %420 : vector<16x16xi32>
    %422 = arith.cmpi eq, %416, %421 : vector<16x16xi32>
    %c-1_i32_197 = arith.constant -1 : i32
    %423 = vector.broadcast %c-1_i32_197 : i32 to vector<16x16xi32>
    %424 = arith.addi %419, %423 : vector<16x16xi32>
    %c0_i32_198 = arith.constant 0 : i32
    %425 = vector.broadcast %c0_i32_198 : i32 to vector<16x16xi32>
    %426 = arith.cmpi sge, %424, %425 : vector<16x16xi32>
    %427 = arith.andi %422, %426 : vector<16x16xi1>
    %c-1_i32_199 = arith.constant -1 : i32
    %428 = vector.broadcast %c-1_i32_199 : i32 to vector<16x16xi32>
    %429 = arith.addi %419, %428 : vector<16x16xi32>
    %c8_i32_200 = arith.constant 8 : i32
    %430 = vector.broadcast %c8_i32_200 : i32 to vector<16x16xi32>
    %431 = arith.cmpi slt, %429, %430 : vector<16x16xi32>
    %432 = arith.andi %427, %431 : vector<16x16xi1>
    %cst_201 = arith.constant 1.000000e+00 : f32
    %cst_202 = arith.constant 0.000000e+00 : f32
    %433 = vector.broadcast %cst_201 : f32 to vector<16x16xf32>
    %434 = vector.broadcast %cst_202 : f32 to vector<16x16xf32>
    %435 = arith.select %432, %433, %434 : vector<16x16xi1>, vector<16x16xf32>
    %cst_203 = arith.constant dense<0.000000e+00> : vector<64x16xf32>
    %436 = tpu.matmul %391, %435, %cst_203 {dimension_numbers = #tpu.dot_dimension_numbers<[1], [0], [0], [1], [0, 0, 1, 1], [], []>} : vector<64x16xf32>, vector<16x16xf32>, vector<64x16xf32> -> vector<64x16xf32>
    %c1_204 = arith.constant 1 : index
    %c0_205 = arith.constant 0 : index
    %c0_206 = arith.constant 0 : index
    %437 = vector.load %arg7[%c1_204, %c0_205, %c0_206] : memref<5x64x64xf32, #tpu.memory_space<vmem>>, vector<1x64x64xf32>
    %438 = vector.shape_cast %437 : vector<1x64x64xf32> to vector<64x64xf32>
    %cst_207 = arith.constant dense<0.000000e+00> : vector<64x16xf32>
    %439 = tpu.matmul %438, %436, %cst_207 {dimension_numbers = #tpu.dot_dimension_numbers<[1], [0], [0], [1], [0, 0, 1, 1], [], []>} : vector<64x64xf32>, vector<64x16xf32>, vector<64x16xf32> -> vector<64x16xf32>
    %440 = arith.addf %415, %439 : vector<64x16xf32>
    %c2_208 = arith.constant 2 : index
    %c0_209 = arith.constant 0 : index
    %c0_210 = arith.constant 0 : index
    %441 = vector.load %arg7[%c2_208, %c0_209, %c0_210] : memref<5x64x64xf32, #tpu.memory_space<vmem>>, vector<1x64x64xf32>
    %442 = vector.shape_cast %441 : vector<1x64x64xf32> to vector<64x64xf32>
    %cst_211 = arith.constant dense<0.000000e+00> : vector<64x16xf32>
    %443 = tpu.matmul %442, %391, %cst_211 {dimension_numbers = #tpu.dot_dimension_numbers<[1], [0], [0], [1], [0, 0, 1, 1], [], []>} : vector<64x64xf32>, vector<64x16xf32>, vector<64x16xf32> -> vector<64x16xf32>
    %444 = arith.addf %440, %443 : vector<64x16xf32>
    %445 = tpu.iota {dimensions = array<i32: 0>} : vector<16x16xi32>
    %446 = tpu.iota {dimensions = array<i32: 1>} : vector<16x16xi32>
    %c7_i32_212 = arith.constant 7 : i32
    %447 = vector.broadcast %c7_i32_212 : i32 to vector<16x16xi32>
    %448 = arith.andi %446, %447 : vector<16x16xi32>
    %c1_i32_213 = arith.constant 1 : i32
    %449 = vector.broadcast %c1_i32_213 : i32 to vector<16x16xi32>
    %450 = arith.addi %446, %449 : vector<16x16xi32>
    %451 = arith.cmpi eq, %445, %450 : vector<16x16xi32>
    %c1_i32_214 = arith.constant 1 : i32
    %452 = vector.broadcast %c1_i32_214 : i32 to vector<16x16xi32>
    %453 = arith.addi %448, %452 : vector<16x16xi32>
    %c0_i32_215 = arith.constant 0 : i32
    %454 = vector.broadcast %c0_i32_215 : i32 to vector<16x16xi32>
    %455 = arith.cmpi sge, %453, %454 : vector<16x16xi32>
    %456 = arith.andi %451, %455 : vector<16x16xi1>
    %c1_i32_216 = arith.constant 1 : i32
    %457 = vector.broadcast %c1_i32_216 : i32 to vector<16x16xi32>
    %458 = arith.addi %448, %457 : vector<16x16xi32>
    %c8_i32_217 = arith.constant 8 : i32
    %459 = vector.broadcast %c8_i32_217 : i32 to vector<16x16xi32>
    %460 = arith.cmpi slt, %458, %459 : vector<16x16xi32>
    %461 = arith.andi %456, %460 : vector<16x16xi1>
    %cst_218 = arith.constant 1.000000e+00 : f32
    %cst_219 = arith.constant 0.000000e+00 : f32
    %462 = vector.broadcast %cst_218 : f32 to vector<16x16xf32>
    %463 = vector.broadcast %cst_219 : f32 to vector<16x16xf32>
    %464 = arith.select %461, %462, %463 : vector<16x16xi1>, vector<16x16xf32>
    %cst_220 = arith.constant dense<0.000000e+00> : vector<64x16xf32>
    %465 = tpu.matmul %391, %464, %cst_220 {dimension_numbers = #tpu.dot_dimension_numbers<[1], [0], [0], [1], [0, 0, 1, 1], [], []>} : vector<64x16xf32>, vector<16x16xf32>, vector<64x16xf32> -> vector<64x16xf32>
    %c3_221 = arith.constant 3 : index
    %c0_222 = arith.constant 0 : index
    %c0_223 = arith.constant 0 : index
    %466 = vector.load %arg7[%c3_221, %c0_222, %c0_223] : memref<5x64x64xf32, #tpu.memory_space<vmem>>, vector<1x64x64xf32>
    %467 = vector.shape_cast %466 : vector<1x64x64xf32> to vector<64x64xf32>
    %cst_224 = arith.constant dense<0.000000e+00> : vector<64x16xf32>
    %468 = tpu.matmul %467, %465, %cst_224 {dimension_numbers = #tpu.dot_dimension_numbers<[1], [0], [0], [1], [0, 0, 1, 1], [], []>} : vector<64x64xf32>, vector<64x16xf32>, vector<64x16xf32> -> vector<64x16xf32>
    %469 = arith.addf %444, %468 : vector<64x16xf32>
    %470 = tpu.iota {dimensions = array<i32: 0>} : vector<16x16xi32>
    %471 = tpu.iota {dimensions = array<i32: 1>} : vector<16x16xi32>
    %c7_i32_225 = arith.constant 7 : i32
    %472 = vector.broadcast %c7_i32_225 : i32 to vector<16x16xi32>
    %473 = arith.andi %471, %472 : vector<16x16xi32>
    %c2_i32_226 = arith.constant 2 : i32
    %474 = vector.broadcast %c2_i32_226 : i32 to vector<16x16xi32>
    %475 = arith.addi %471, %474 : vector<16x16xi32>
    %476 = arith.cmpi eq, %470, %475 : vector<16x16xi32>
    %c2_i32_227 = arith.constant 2 : i32
    %477 = vector.broadcast %c2_i32_227 : i32 to vector<16x16xi32>
    %478 = arith.addi %473, %477 : vector<16x16xi32>
    %c0_i32_228 = arith.constant 0 : i32
    %479 = vector.broadcast %c0_i32_228 : i32 to vector<16x16xi32>
    %480 = arith.cmpi sge, %478, %479 : vector<16x16xi32>
    %481 = arith.andi %476, %480 : vector<16x16xi1>
    %c2_i32_229 = arith.constant 2 : i32
    %482 = vector.broadcast %c2_i32_229 : i32 to vector<16x16xi32>
    %483 = arith.addi %473, %482 : vector<16x16xi32>
    %c8_i32_230 = arith.constant 8 : i32
    %484 = vector.broadcast %c8_i32_230 : i32 to vector<16x16xi32>
    %485 = arith.cmpi slt, %483, %484 : vector<16x16xi32>
    %486 = arith.andi %481, %485 : vector<16x16xi1>
    %cst_231 = arith.constant 1.000000e+00 : f32
    %cst_232 = arith.constant 0.000000e+00 : f32
    %487 = vector.broadcast %cst_231 : f32 to vector<16x16xf32>
    %488 = vector.broadcast %cst_232 : f32 to vector<16x16xf32>
    %489 = arith.select %486, %487, %488 : vector<16x16xi1>, vector<16x16xf32>
    %cst_233 = arith.constant dense<0.000000e+00> : vector<64x16xf32>
    %490 = tpu.matmul %391, %489, %cst_233 {dimension_numbers = #tpu.dot_dimension_numbers<[1], [0], [0], [1], [0, 0, 1, 1], [], []>} : vector<64x16xf32>, vector<16x16xf32>, vector<64x16xf32> -> vector<64x16xf32>
    %c4_234 = arith.constant 4 : index
    %c0_235 = arith.constant 0 : index
    %c0_236 = arith.constant 0 : index
    %491 = vector.load %arg7[%c4_234, %c0_235, %c0_236] : memref<5x64x64xf32, #tpu.memory_space<vmem>>, vector<1x64x64xf32>
    %492 = vector.shape_cast %491 : vector<1x64x64xf32> to vector<64x64xf32>
    %cst_237 = arith.constant dense<0.000000e+00> : vector<64x16xf32>
    %493 = tpu.matmul %492, %490, %cst_237 {dimension_numbers = #tpu.dot_dimension_numbers<[1], [0], [0], [1], [0, 0, 1, 1], [], []>} : vector<64x64xf32>, vector<64x16xf32>, vector<64x16xf32> -> vector<64x16xf32>
    %494 = arith.addf %469, %493 : vector<64x16xf32>
    %c0_238 = arith.constant 0 : index
    %c0_239 = arith.constant 0 : index
    %495 = vector.load %arg8[%c0_238, %c0_239] : memref<64x1xf32, #tpu.memory_space<vmem>>, vector<64x1xf32>
    %496 = vector.broadcast %495 : vector<64x1xf32> to vector<64x16xf32>
    %497 = arith.addf %494, %496 : vector<64x16xf32>
    %cst_240 = arith.constant 0.000000e+00 : f32
    %498 = vector.broadcast %cst_240 : f32 to vector<64x16xf32>
    %499 = arith.maximumf %497, %498 : vector<64x16xf32>
    %500 = tpu.iota {dimensions = array<i32: 0>} : vector<16x8xi32>
    %501 = tpu.iota {dimensions = array<i32: 1>} : vector<16x8xi32>
    %c2_i32_241 = arith.constant 2 : i32
    %502 = vector.broadcast %c2_i32_241 : i32 to vector<16x8xi32>
    %503 = arith.muli %502, %501 : vector<16x8xi32>
    %504 = arith.cmpi eq, %500, %503 : vector<16x8xi32>
    %cst_242 = arith.constant 1.000000e+00 : f32
    %cst_243 = arith.constant 0.000000e+00 : f32
    %505 = vector.broadcast %cst_242 : f32 to vector<16x8xf32>
    %506 = vector.broadcast %cst_243 : f32 to vector<16x8xf32>
    %507 = arith.select %504, %505, %506 : vector<16x8xi1>, vector<16x8xf32>
    %c2_i32_244 = arith.constant 2 : i32
    %508 = vector.broadcast %c2_i32_244 : i32 to vector<16x8xi32>
    %509 = arith.muli %508, %501 : vector<16x8xi32>
    %c1_i32_245 = arith.constant 1 : i32
    %510 = vector.broadcast %c1_i32_245 : i32 to vector<16x8xi32>
    %511 = arith.addi %509, %510 : vector<16x8xi32>
    %512 = arith.cmpi eq, %500, %511 : vector<16x8xi32>
    %cst_246 = arith.constant 1.000000e+00 : f32
    %cst_247 = arith.constant 0.000000e+00 : f32
    %513 = vector.broadcast %cst_246 : f32 to vector<16x8xf32>
    %514 = vector.broadcast %cst_247 : f32 to vector<16x8xf32>
    %515 = arith.select %512, %513, %514 : vector<16x8xi1>, vector<16x8xf32>
    %cst_248 = arith.constant dense<0.000000e+00> : vector<64x8xf32>
    %516 = tpu.matmul %499, %507, %cst_248 {dimension_numbers = #tpu.dot_dimension_numbers<[1], [0], [0], [1], [0, 0, 1, 1], [], []>} : vector<64x16xf32>, vector<16x8xf32>, vector<64x8xf32> -> vector<64x8xf32>
    %cst_249 = arith.constant dense<0.000000e+00> : vector<64x8xf32>
    %517 = tpu.matmul %499, %515, %cst_249 {dimension_numbers = #tpu.dot_dimension_numbers<[1], [0], [0], [1], [0, 0, 1, 1], [], []>} : vector<64x16xf32>, vector<16x8xf32>, vector<64x8xf32> -> vector<64x8xf32>
    %518 = arith.maximumf %516, %517 : vector<64x8xf32>
    %519 = tpu.iota {dimensions = array<i32: 0>} : vector<8x8xi32>
    %520 = tpu.iota {dimensions = array<i32: 1>} : vector<8x8xi32>
    %c3_i32 = arith.constant 3 : i32
    %521 = vector.broadcast %c3_i32 : i32 to vector<8x8xi32>
    %522 = arith.andi %520, %521 : vector<8x8xi32>
    %c-2_i32_250 = arith.constant -2 : i32
    %523 = vector.broadcast %c-2_i32_250 : i32 to vector<8x8xi32>
    %524 = arith.addi %520, %523 : vector<8x8xi32>
    %525 = arith.cmpi eq, %519, %524 : vector<8x8xi32>
    %c-2_i32_251 = arith.constant -2 : i32
    %526 = vector.broadcast %c-2_i32_251 : i32 to vector<8x8xi32>
    %527 = arith.addi %522, %526 : vector<8x8xi32>
    %c0_i32_252 = arith.constant 0 : i32
    %528 = vector.broadcast %c0_i32_252 : i32 to vector<8x8xi32>
    %529 = arith.cmpi sge, %527, %528 : vector<8x8xi32>
    %530 = arith.andi %525, %529 : vector<8x8xi1>
    %c-2_i32_253 = arith.constant -2 : i32
    %531 = vector.broadcast %c-2_i32_253 : i32 to vector<8x8xi32>
    %532 = arith.addi %522, %531 : vector<8x8xi32>
    %c4_i32 = arith.constant 4 : i32
    %533 = vector.broadcast %c4_i32 : i32 to vector<8x8xi32>
    %534 = arith.cmpi slt, %532, %533 : vector<8x8xi32>
    %535 = arith.andi %530, %534 : vector<8x8xi1>
    %cst_254 = arith.constant 1.000000e+00 : f32
    %cst_255 = arith.constant 0.000000e+00 : f32
    %536 = vector.broadcast %cst_254 : f32 to vector<8x8xf32>
    %537 = vector.broadcast %cst_255 : f32 to vector<8x8xf32>
    %538 = arith.select %535, %536, %537 : vector<8x8xi1>, vector<8x8xf32>
    %cst_256 = arith.constant dense<0.000000e+00> : vector<64x8xf32>
    %539 = tpu.matmul %518, %538, %cst_256 {dimension_numbers = #tpu.dot_dimension_numbers<[1], [0], [0], [1], [0, 0, 1, 1], [], []>} : vector<64x8xf32>, vector<8x8xf32>, vector<64x8xf32> -> vector<64x8xf32>
    %c0_257 = arith.constant 0 : index
    %c0_258 = arith.constant 0 : index
    %c0_259 = arith.constant 0 : index
    %540 = vector.load %arg9[%c0_257, %c0_258, %c0_259] : memref<5x1x64xf32, #tpu.memory_space<vmem>>, vector<1x1x64xf32>
    %541 = vector.shape_cast %540 : vector<1x1x64xf32> to vector<1x64xf32>
    %cst_260 = arith.constant dense<0.000000e+00> : vector<1x8xf32>
    %542 = tpu.matmul %541, %539, %cst_260 {dimension_numbers = #tpu.dot_dimension_numbers<[1], [0], [0], [1], [0, 0, 1, 1], [], []>} : vector<1x64xf32>, vector<64x8xf32>, vector<1x8xf32> -> vector<1x8xf32>
    %543 = tpu.iota {dimensions = array<i32: 0>} : vector<8x8xi32>
    %544 = tpu.iota {dimensions = array<i32: 1>} : vector<8x8xi32>
    %c3_i32_261 = arith.constant 3 : i32
    %545 = vector.broadcast %c3_i32_261 : i32 to vector<8x8xi32>
    %546 = arith.andi %544, %545 : vector<8x8xi32>
    %c-1_i32_262 = arith.constant -1 : i32
    %547 = vector.broadcast %c-1_i32_262 : i32 to vector<8x8xi32>
    %548 = arith.addi %544, %547 : vector<8x8xi32>
    %549 = arith.cmpi eq, %543, %548 : vector<8x8xi32>
    %c-1_i32_263 = arith.constant -1 : i32
    %550 = vector.broadcast %c-1_i32_263 : i32 to vector<8x8xi32>
    %551 = arith.addi %546, %550 : vector<8x8xi32>
    %c0_i32_264 = arith.constant 0 : i32
    %552 = vector.broadcast %c0_i32_264 : i32 to vector<8x8xi32>
    %553 = arith.cmpi sge, %551, %552 : vector<8x8xi32>
    %554 = arith.andi %549, %553 : vector<8x8xi1>
    %c-1_i32_265 = arith.constant -1 : i32
    %555 = vector.broadcast %c-1_i32_265 : i32 to vector<8x8xi32>
    %556 = arith.addi %546, %555 : vector<8x8xi32>
    %c4_i32_266 = arith.constant 4 : i32
    %557 = vector.broadcast %c4_i32_266 : i32 to vector<8x8xi32>
    %558 = arith.cmpi slt, %556, %557 : vector<8x8xi32>
    %559 = arith.andi %554, %558 : vector<8x8xi1>
    %cst_267 = arith.constant 1.000000e+00 : f32
    %cst_268 = arith.constant 0.000000e+00 : f32
    %560 = vector.broadcast %cst_267 : f32 to vector<8x8xf32>
    %561 = vector.broadcast %cst_268 : f32 to vector<8x8xf32>
    %562 = arith.select %559, %560, %561 : vector<8x8xi1>, vector<8x8xf32>
    %cst_269 = arith.constant dense<0.000000e+00> : vector<64x8xf32>
    %563 = tpu.matmul %518, %562, %cst_269 {dimension_numbers = #tpu.dot_dimension_numbers<[1], [0], [0], [1], [0, 0, 1, 1], [], []>} : vector<64x8xf32>, vector<8x8xf32>, vector<64x8xf32> -> vector<64x8xf32>
    %c1_270 = arith.constant 1 : index
    %c0_271 = arith.constant 0 : index
    %c0_272 = arith.constant 0 : index
    %564 = vector.load %arg9[%c1_270, %c0_271, %c0_272] : memref<5x1x64xf32, #tpu.memory_space<vmem>>, vector<1x1x64xf32>
    %565 = vector.shape_cast %564 : vector<1x1x64xf32> to vector<1x64xf32>
    %cst_273 = arith.constant dense<0.000000e+00> : vector<1x8xf32>
    %566 = tpu.matmul %565, %563, %cst_273 {dimension_numbers = #tpu.dot_dimension_numbers<[1], [0], [0], [1], [0, 0, 1, 1], [], []>} : vector<1x64xf32>, vector<64x8xf32>, vector<1x8xf32> -> vector<1x8xf32>
    %567 = arith.addf %542, %566 : vector<1x8xf32>
    %c2_274 = arith.constant 2 : index
    %c0_275 = arith.constant 0 : index
    %c0_276 = arith.constant 0 : index
    %568 = vector.load %arg9[%c2_274, %c0_275, %c0_276] : memref<5x1x64xf32, #tpu.memory_space<vmem>>, vector<1x1x64xf32>
    %569 = vector.shape_cast %568 : vector<1x1x64xf32> to vector<1x64xf32>
    %cst_277 = arith.constant dense<0.000000e+00> : vector<1x8xf32>
    %570 = tpu.matmul %569, %518, %cst_277 {dimension_numbers = #tpu.dot_dimension_numbers<[1], [0], [0], [1], [0, 0, 1, 1], [], []>} : vector<1x64xf32>, vector<64x8xf32>, vector<1x8xf32> -> vector<1x8xf32>
    %571 = arith.addf %567, %570 : vector<1x8xf32>
    %572 = tpu.iota {dimensions = array<i32: 0>} : vector<8x8xi32>
    %573 = tpu.iota {dimensions = array<i32: 1>} : vector<8x8xi32>
    %c3_i32_278 = arith.constant 3 : i32
    %574 = vector.broadcast %c3_i32_278 : i32 to vector<8x8xi32>
    %575 = arith.andi %573, %574 : vector<8x8xi32>
    %c1_i32_279 = arith.constant 1 : i32
    %576 = vector.broadcast %c1_i32_279 : i32 to vector<8x8xi32>
    %577 = arith.addi %573, %576 : vector<8x8xi32>
    %578 = arith.cmpi eq, %572, %577 : vector<8x8xi32>
    %c1_i32_280 = arith.constant 1 : i32
    %579 = vector.broadcast %c1_i32_280 : i32 to vector<8x8xi32>
    %580 = arith.addi %575, %579 : vector<8x8xi32>
    %c0_i32_281 = arith.constant 0 : i32
    %581 = vector.broadcast %c0_i32_281 : i32 to vector<8x8xi32>
    %582 = arith.cmpi sge, %580, %581 : vector<8x8xi32>
    %583 = arith.andi %578, %582 : vector<8x8xi1>
    %c1_i32_282 = arith.constant 1 : i32
    %584 = vector.broadcast %c1_i32_282 : i32 to vector<8x8xi32>
    %585 = arith.addi %575, %584 : vector<8x8xi32>
    %c4_i32_283 = arith.constant 4 : i32
    %586 = vector.broadcast %c4_i32_283 : i32 to vector<8x8xi32>
    %587 = arith.cmpi slt, %585, %586 : vector<8x8xi32>
    %588 = arith.andi %583, %587 : vector<8x8xi1>
    %cst_284 = arith.constant 1.000000e+00 : f32
    %cst_285 = arith.constant 0.000000e+00 : f32
    %589 = vector.broadcast %cst_284 : f32 to vector<8x8xf32>
    %590 = vector.broadcast %cst_285 : f32 to vector<8x8xf32>
    %591 = arith.select %588, %589, %590 : vector<8x8xi1>, vector<8x8xf32>
    %cst_286 = arith.constant dense<0.000000e+00> : vector<64x8xf32>
    %592 = tpu.matmul %518, %591, %cst_286 {dimension_numbers = #tpu.dot_dimension_numbers<[1], [0], [0], [1], [0, 0, 1, 1], [], []>} : vector<64x8xf32>, vector<8x8xf32>, vector<64x8xf32> -> vector<64x8xf32>
    %c3_287 = arith.constant 3 : index
    %c0_288 = arith.constant 0 : index
    %c0_289 = arith.constant 0 : index
    %593 = vector.load %arg9[%c3_287, %c0_288, %c0_289] : memref<5x1x64xf32, #tpu.memory_space<vmem>>, vector<1x1x64xf32>
    %594 = vector.shape_cast %593 : vector<1x1x64xf32> to vector<1x64xf32>
    %cst_290 = arith.constant dense<0.000000e+00> : vector<1x8xf32>
    %595 = tpu.matmul %594, %592, %cst_290 {dimension_numbers = #tpu.dot_dimension_numbers<[1], [0], [0], [1], [0, 0, 1, 1], [], []>} : vector<1x64xf32>, vector<64x8xf32>, vector<1x8xf32> -> vector<1x8xf32>
    %596 = arith.addf %571, %595 : vector<1x8xf32>
    %597 = tpu.iota {dimensions = array<i32: 0>} : vector<8x8xi32>
    %598 = tpu.iota {dimensions = array<i32: 1>} : vector<8x8xi32>
    %c3_i32_291 = arith.constant 3 : i32
    %599 = vector.broadcast %c3_i32_291 : i32 to vector<8x8xi32>
    %600 = arith.andi %598, %599 : vector<8x8xi32>
    %c2_i32_292 = arith.constant 2 : i32
    %601 = vector.broadcast %c2_i32_292 : i32 to vector<8x8xi32>
    %602 = arith.addi %598, %601 : vector<8x8xi32>
    %603 = arith.cmpi eq, %597, %602 : vector<8x8xi32>
    %c2_i32_293 = arith.constant 2 : i32
    %604 = vector.broadcast %c2_i32_293 : i32 to vector<8x8xi32>
    %605 = arith.addi %600, %604 : vector<8x8xi32>
    %c0_i32_294 = arith.constant 0 : i32
    %606 = vector.broadcast %c0_i32_294 : i32 to vector<8x8xi32>
    %607 = arith.cmpi sge, %605, %606 : vector<8x8xi32>
    %608 = arith.andi %603, %607 : vector<8x8xi1>
    %c2_i32_295 = arith.constant 2 : i32
    %609 = vector.broadcast %c2_i32_295 : i32 to vector<8x8xi32>
    %610 = arith.addi %600, %609 : vector<8x8xi32>
    %c4_i32_296 = arith.constant 4 : i32
    %611 = vector.broadcast %c4_i32_296 : i32 to vector<8x8xi32>
    %612 = arith.cmpi slt, %610, %611 : vector<8x8xi32>
    %613 = arith.andi %608, %612 : vector<8x8xi1>
    %cst_297 = arith.constant 1.000000e+00 : f32
    %cst_298 = arith.constant 0.000000e+00 : f32
    %614 = vector.broadcast %cst_297 : f32 to vector<8x8xf32>
    %615 = vector.broadcast %cst_298 : f32 to vector<8x8xf32>
    %616 = arith.select %613, %614, %615 : vector<8x8xi1>, vector<8x8xf32>
    %cst_299 = arith.constant dense<0.000000e+00> : vector<64x8xf32>
    %617 = tpu.matmul %518, %616, %cst_299 {dimension_numbers = #tpu.dot_dimension_numbers<[1], [0], [0], [1], [0, 0, 1, 1], [], []>} : vector<64x8xf32>, vector<8x8xf32>, vector<64x8xf32> -> vector<64x8xf32>
    %c4_300 = arith.constant 4 : index
    %c0_301 = arith.constant 0 : index
    %c0_302 = arith.constant 0 : index
    %618 = vector.load %arg9[%c4_300, %c0_301, %c0_302] : memref<5x1x64xf32, #tpu.memory_space<vmem>>, vector<1x1x64xf32>
    %619 = vector.shape_cast %618 : vector<1x1x64xf32> to vector<1x64xf32>
    %cst_303 = arith.constant dense<0.000000e+00> : vector<1x8xf32>
    %620 = tpu.matmul %619, %617, %cst_303 {dimension_numbers = #tpu.dot_dimension_numbers<[1], [0], [0], [1], [0, 0, 1, 1], [], []>} : vector<1x64xf32>, vector<64x8xf32>, vector<1x8xf32> -> vector<1x8xf32>
    %621 = arith.addf %596, %620 : vector<1x8xf32>
    %c0_304 = arith.constant 0 : index
    %c0_305 = arith.constant 0 : index
    %622 = vector.load %arg10[%c0_304, %c0_305] : memref<1x1xf32, #tpu.memory_space<vmem>>, vector<1x1xf32>
    %623 = vector.broadcast %622 : vector<1x1xf32> to vector<1x8xf32>
    %624 = arith.addf %621, %623 : vector<1x8xf32>
    %cst_306 = arith.constant 0.000000e+00 : f32
    %625 = vector.broadcast %cst_306 : f32 to vector<1x8xf32>
    %626 = arith.maximumf %624, %625 : vector<1x8xf32>
    %c0_307 = arith.constant 0 : index
    %c0_308 = arith.constant 0 : index
    %627 = vector.load %arg11[%c0_307, %c0_308] : memref<1x8xf32, #tpu.memory_space<vmem>>, vector<1x8xf32>
    tpu.vector_store %arg11[%c0_307, %c0_308], %626 {strides = array<i32>} : memref<1x8xf32, #tpu.memory_space<vmem>>, vector<1x8xf32>,
    return
  }
}

</mosaic_0001>

<bundles_post_ra>
// kernel: encoder_forward.1
= control target key start
LH: loop header
LB: loop body
LE: loop exit
PB: predicated region body
PF: predicated region fallthrough
CT: control target
= control target key end

     0   :  { %s12601_s0 = inlined_call_operand.vmem [shape: f32[1,128], index: 0, kind: input, shape index: {}]   ;;  %s12602_s1 = inlined_call_operand.vmem [shape: f32[5,64,1], index: 1, kind: input, shape index: {}]   ;;  %s12603_s2 = inlined_call_operand.vmem [shape: f32[64,1], index: 2, kind: input, shape index: {}]   ;;  %s12604_s3 = inlined_call_operand.vmem [shape: f32[5,64,64], index: 3, kind: input, shape index: {}]   ;;  %s12605_s4 = inlined_call_operand.vmem [shape: f32[64,1], index: 4, kind: input, shape index: {}]   ;;  %s12606_s5 = inlined_call_operand.vmem [shape: f32[5,64,64], index: 5, kind: input, shape index: {}]   ;;  %s12607_s6 = inlined_call_operand.vmem [shape: f32[64,1], index: 6, kind: input, shape index: {}]   ;;  %s12608_s7 = inlined_call_operand.hbm [shape: f32[5,64,64], index: 7, kind: input, shape index: {}]   ;;  %s12609_s8 = inlined_call_operand.vmem [shape: f32[64,1], index: 8, kind: input, shape index: {}]   ;;  %s12610_s9 = inlined_call_operand.hbm [shape: f32[5,1,64], index: 9, kind: input, shape index: {}]   ;;  %s12611_s10 = inlined_call_operand.<no memory space> [shape: f32[1,1], index: 10, kind: input, shape index: {}]   ;;  %s12612_s11 = inlined_call_operand.vmem [shape: f32[1,8], index: 11, kind: output, shape index: {}]  }
   0x1   :  { %v16_v0 = vstv %s12611_s10 }
   0x2   :  { %17 = vst [vmem:[#allocation2] sm:$0x1] %v16_v0 }
   0x3   :  { %18 = vsyncpa [#allocation4], 0 }
   0x4   :  { %19 = vsyncpa [#allocation6], 0  ;;  %s10008_s19 = smov [#allocation3]   ;;  %s9960_s23 = scalar_lea.hbm %s12608_s7, 5120 }
   0x5   :  { %s39_s20 = sshll.u32 %s10008_s19, 4  ;;  %p9961_p0 = scmp.ne.s32.totalorder %s12608_s7, %s9960_s23  ;;  %s40_s20 = int_to_ptr.vmem [resolvable:$true] %s39_s20 }
   0x6   :  { %p9964_p1 = scmp.lt.u32.totalorder %s9960_s23, %s12608_s7 }
   0x8   :  { %p9966_p2 = pnand %p9964_p1, %p9961_p0 }
   0xa   :  { %9969 = shalt.err (!%p9966_p2)
}
   0xb   :  { %s9970_s10 = scalar_lea.vmem %s40_s20, 5120  ;;  %p9975_p4 = scmp.lt.s32.totalorder %s40_s20, %s40_s20 }
   0xc   :  { %p9971_p3 = scmp.ne.s32.totalorder %s40_s20, %s9970_s10  ;;  %p9976_p5 = scmp.lt.s32.totalorder %s9970_s10, %s9970_s10 }
   0xe   :  { %p9977_p6 = por %p9976_p5, %p9975_p4 }
  0x10   :  { %p9978_p7 = pnand %p9977_p6, %p9971_p3 }
  0x12   :  { %9981 = shalt.err (!%p9978_p7)
}
  0x13   :  { %s10009_s28 = smov 128   ;;  %s10010_s29 = smov 8  }
  0x14   :  { %45 = dma.hbm_to_vmem [thread:$0]  %s12608_s7, 5120, %s40_s20, [#allocation4], %s10009_s28, %s10009_s28, %s10010_s29  }
  0x15   :  { %s10011_s13 = smov [#allocation5]   ;;  %s9982_s17 = scalar_lea.hbm %s12610_s9, 80 }
  0x16   :  { %s53_s14 = sshll.u32 %s10011_s13, 4  ;;  %p9983_p8 = scmp.ne.s32.totalorder %s12610_s9, %s9982_s17  ;;  %s54_s14 = int_to_ptr.vmem [resolvable:$true] %s53_s14 }
  0x17   :  { %p9986_p9 = scmp.lt.u32.totalorder %s9982_s17, %s12610_s9 }
  0x19   :  { %p9988_p10 = pnand %p9986_p9, %p9983_p8 }
  0x1b   :  { %9991 = shalt.err (!%p9988_p10)
}
  0x1c   :  { %s9992_s23 = scalar_lea.vmem %s54_s14, 80  ;;  %s9996_s7 = scalar_lea.vmem %s54_s14, 96 }
  0x1d   :  { %p9993_p11 = scmp.ne.s32.totalorder %s54_s14, %s9992_s23  ;;  %p9997_p12 = scmp.lt.s32.totalorder %s54_s14, %s54_s14 }
  0x1e   :  { %p9998_p13 = scmp.lt.s32.totalorder %s9996_s7, %s9992_s23 }
  0x20   :  { %p9999_p0 = por %p9998_p13, %p9997_p12 }
  0x22   :  { %p10000_p1 = pnand %p9999_p0, %p9993_p11 }
  0x24   :  { %10003 = shalt.err (!%p10000_p1)
}
  0x25   :  { %s10012_s20 = smov 16   ;;  %s10013_s24 = smov 1  }
  0x26   :  { %59 = dma.hbm_to_vmem [thread:$0]  %s12610_s9, 80, %s54_s14, [#allocation6], %s10012_s20, %s10012_s20, %s10013_s24  }
  0x27   :  { %10004 = dma.done.wait [#allocation4], 5120  }
  0x28   :  { %10005 = vsyncadd [#allocation4], 4294962176 }
  0x29   :  { %10006 = dma.done.wait [#allocation6], 80  }
  0x2a   :  { %10007 = vsyncadd [#allocation6], 4294967216  ;;  %v69_v1 = vlaneseq  ;;  %v10014_v2 = vmov 0   ;;  %v12665_v3 = vmov 0.0|0.0   ;;  %vm12627_vm0 = vmmov 0   ;;  %v228_v13 = vld [vmem:[%s12602_s1 + $0x8] sm:$0xff] }
  0x2b   :  { %9959 = vset.pattern.permute.xlu1 %v10014_v2  ;;  %9958 = vset.pattern.permute.xlu0 %v10014_v2  ;;  %v12663_v6 = vmov 0.0   ;;  %v12723_v11 = vmov 0  ;;  %v227_v14 = vld [vmem:[%s12602_s1] sm:$0xff]  ;;  %v12726_v17 = vmov 0  ;;  %v6826_v18 = vld [vmem:[%s12602_s1 + $0x48] sm:$0xff]  ;;  %v6827_v26 = vld [vmem:[%s12602_s1 + $0x50] sm:$0xff] }
  0x2c   :  { %9222 = vmatprep.subr.bf16.mxu0 %v12665_v3  ;;  %9246 = vmatprep.subr.bf16.mxu1 %v12665_v3  ;;  %v10109_v4 = vshrl.u32 %v69_v1, 7  ;;  %v10111_v5 = vand.u32 127, %v69_v1  ;;  %v6825_v20 = vld [vmem:[%s12602_s1 + $0x40] sm:$0xff]  ;;  %v12667_v21 = vmov 1.0|1.0   ;;  %v6834_v22 = vld [vmem:[%s12602_s1 + $0x88] sm:$0xff] }
  0x2d   :  { %8071 = vmatprep.mubr.msk.f32.mxu0 %vm12627_vm0, %v12663_v6  ;;  %8106 = vmatprep.mubr.msk.f32.mxu1 %vm12627_vm0, %v12663_v6  ;;  %v6833_v23 = vld [vmem:[%s12602_s1 + $0x80] sm:$0xff]  ;;  %v229_v27 = vld [vmem:[%s12602_s1 + $0x10] sm:$0xff]  ;;  %v230_v30 = vld [vmem:[%s12602_s1 + $0x18] sm:$0xff]  ;;  %v12733_v60 = vmov 0  ;;  %v12736_v62 = vmov 0 }
  0x2e   :  { %12721 = vst [vmem:[#allocation9_spill] sm:$0xff] %v10111_v5  ;;  %v10118_v7 = vadd.s32 8, %v10109_v4  ;;  %v10121_v8 = vand.u32 63, %v10111_v5  ;;  %v10124_v9 = vadd.s32 4294967294, %v10111_v5  ;;  %v10127_v10 = vadd.s32 4294967295, %v10111_v5  ;;  %242 = vperm.xlu1 %9959, %v228_v13   ;;  %237 = vperm.xlu0 %9958, %v227_v14   ;;  %v6857_v31 = vld [vmem:[%s12602_s1 + $0xc0] sm:$0xff] }
  0x2f   :  { %v10151_v16 = vadd.s32 16, %v10109_v4  ;;  %v10168_v19 = vadd.s32 24, %v10109_v4  ;;  %v10202_v24 = vadd.s32 32, %v10109_v4  ;;  %v10213_v25 = vadd.s32 40, %v10109_v4  ;;  %v6858_v32 = vld [vmem:[%s12602_s1 + $0xc8] sm:$0xff]  ;;  %v6828_v34 = vld [vmem:[%s12602_s1 + $0x58] sm:$0xff] }
  0x30   :  { %12722 = vst [vmem:[#allocation10_spill] sm:$0xff] %v10118_v7  ;;  %vm10131_vm1 = vcmp.eq.s32.totalorder %v10109_v4, %v10124_v9  ;;  %v10136_v12 = vadd.s32 4294967294, %v10121_v8  ;;  %vm12642_vm2 = vcmp.eq.s32.totalorder %v10118_v7, %v10124_v9  ;;  %v10147_v15 = vadd.s32 4294967295, %v10121_v8  ;;  %v6881_v36 = vld [vmem:[%s12602_s1 + $0x100] sm:$0xff]  ;;  %v6835_v37 = vld [vmem:[%s12602_s1 + $0x90] sm:$0xff]  ;;  %v6882_v40 = vld [vmem:[%s12602_s1 + $0x108] sm:$0xff] }
  0x31   :  { %v12724_v11 = vsel %vm10131_vm1, 4294967295, %v12723_v11  ;;  %vm10159_vm5 = vcmp.eq.s32.totalorder %v10109_v4, %v10127_v10  ;;  %vm12641_vm8 = vcmp.eq.s32.totalorder %v10118_v7, %v10127_v10  ;;  %vm12624_vm11 = vcmp.eq.s32.totalorder %v10151_v16, %v10124_v9  ;;  %v6836_v41 = vld [vmem:[%s12602_s1 + $0x98] sm:$0xff]  ;;  %v6829_v42 = vld [vmem:[%s12602_s1 + $0x60] sm:$0xff]  ;;  %v232_v46 = vld [vmem:[%s12602_s1 + $0x28] sm:$0xff] }
  0x32   :  { %12725 = vst [vmem:[#allocation11_spill] sm:$0xff] %v12724_v11  ;;  %vm107_vm3 = vcmp.ge.s32.totalorder %v10136_v12, 0  ;;  %v12727_v17 = vsel %vm10159_vm5, 4294967295, %v12726_v17  ;;  %vm305_vm6 = vcmp.ge.s32.totalorder %v10147_v15, 0  ;;  %441 = vperm.xlu1 %9959, %v6826_v18   ;;  %436 = vperm.xlu0 %9958, %v6825_v20   ;;  %vm12616_vm13 = vcmp.eq.s32.totalorder %v10168_v19, %v10124_v9  ;;  %v231_v44 = vld [vmem:[%s12602_s1 + $0x20] sm:$0xff]  ;;  %v6859_v47 = vld [vmem:[%s12602_s1 + $0xd0] sm:$0xff] }
  0x33   :  { %vm108_vm4 = vmand %vm10131_vm1, %vm107_vm3  ;;  %12728 = vst [vmem:[#allocation12_spill] sm:$0xff] %v12727_v17  ;;  %v10246_v28 = vadd.s32 48, %v10109_v4  ;;  %v10257_v29 = vadd.s32 56, %v10109_v4  ;;  %v10293_v33 = vadd.s32 64, %v10109_v4  ;;  %v10307_v35 = vadd.s32 72, %v10109_v4  ;;  %v6860_v50 = vld [vmem:[%s12602_s1 + $0xd8] sm:$0xff] }
  0x34   :  { %vm109_vm7 = vmand %vm12642_vm2, %vm107_vm3  ;;  %v10340_v38 = vadd.s32 80, %v10109_v4  ;;  %v10348_v39 = vadd.s32 88, %v10109_v4  ;;  %v10375_v43 = vadd.s32 96, %v10109_v4  ;;  %v10386_v45 = vadd.s32 104, %v10109_v4  ;;  %v6830_v51 = vld [vmem:[%s12602_s1 + $0x68] sm:$0xff]  ;;  %v6883_v52 = vld [vmem:[%s12602_s1 + $0x110] sm:$0xff] }
  0x35   :  { %vm9223_vm9 = vmpackc.low %vm109_vm7, %vm108_vm4  ;;  %vm12613_vm4 = vcmp.eq.s32.totalorder %v10151_v16, %v10127_v10  ;;  %12729 = vst [vmem:[#allocation13_spill] sm:$0xff] %v10246_v28  ;;  %v10410_v48 = vadd.s32 112, %v10109_v4  ;;  %v10418_v49 = vadd.s32 120, %v10109_v4  ;;  %v10445_v53 = vadd.s32 1, %v10111_v5  ;;  %v6837_v55 = vld [vmem:[%s12602_s1 + $0xa0] sm:$0xff]  ;;  %v6838_v58 = vld [vmem:[%s12602_s1 + $0xa8] sm:$0xff] }
  0x36   :  { %9224 = vmatpush3.bf16.msk.msra.mxu0 %vm9223_vm9, %v12667_v21  ;;  %vm306_vm10 = vmand %vm10159_vm5, %vm305_vm6  ;;  %vm12614_vm9 = vcmp.eq.s32.totalorder %v10168_v19, %v10127_v10  ;;  %510 = vperm.xlu1 %9959, %v6834_v22   ;;  %12730 = vst [vmem:[#allocation14_spill] sm:$0xff] %v10257_v29  ;;  %v10448_v54 = vadd.s32 1, %v10121_v8  ;;  %v10464_v56 = vadd.s32 2, %v10111_v5  ;;  %v10467_v57 = vadd.s32 2, %v10121_v8  ;;  %v10478_v59 = vld [vmem:[%s12601_s0] sm:$0x1] }
  0x37   :  { %vm307_vm12 = vmand %vm12641_vm8, %vm305_vm6  ;;  %9225 = vmatprep.subr.bf16.mxu0 %v12665_v3  ;;  %505 = vperm.xlu0 %9958, %v6833_v23   ;;  %12731 = vst [vmem:[#allocation15_spill] sm:$0xff] %v10445_v53  ;;  %v979_v61 = vld [vmem:[%s12603_s2] sm:$0xff]  ;;  %v980_v63 = vld [vmem:[%s12603_s2 + $0x8] sm:$0xff] }
  0x38   :  { %vm9247_vm14 = vmpackc.low %vm307_vm12, %vm306_vm10  ;;  %12732 = vst [vmem:[#allocation16_spill] sm:$0xff] %v10464_v56  ;;  %v6884_v0 = vld [vmem:[%s12602_s1 + $0x118] sm:$0xff]  ;;  %v6831_v1 = vld [vmem:[%s12602_s1 + $0x70] sm:$0xff]  ;;  %vm782_vm8 = vcmp.eq.s32.totalorder %v10307_v35, %v10464_v56 }
  0x39   :  { %9248 = vmatpush3.bf16.msk.msra.mxu1 %vm9247_vm14, %v12667_v21  ;;  %vm110_vm15 = vmand %vm12624_vm11, %vm107_vm3  ;;  %vm12615_vm14 = vcmp.eq.s32.totalorder %v10202_v24, %v10124_v9  ;;  %vm101_vm11 = vcmp.eq.s32.totalorder %v10348_v39, %v10124_v9  ;;  %v233_v2 = vld [vmem:[%s12602_s1 + $0x30] sm:$0xff]  ;;  %v234_v8 = vld [vmem:[%s12602_s1 + $0x38] sm:$0xff] }
  0x3a   :  { %9249 = vmatprep.subr.bf16.mxu1 %v12665_v3  ;;  %vm111_vm7 = vmand %vm12616_vm13, %vm107_vm3  ;;  %446 = vperm.xlu1 %9959, %v6827_v26   ;;  %vm12619_vm13 = vcmp.eq.s32.totalorder %v10246_v28, %v10124_v9  ;;  %v6861_v12 = vld [vmem:[%s12602_s1 + $0xe0] sm:$0xff]  ;;  %v6862_v13 = vld [vmem:[%s12602_s1 + $0xe8] sm:$0xff] }
  0x3b   :  { %vm9226_vm10 = vmpackc.low %vm111_vm7, %vm110_vm15  ;;  %vm12617_vm7 = vcmp.eq.s32.totalorder %v10213_v25, %v10124_v9  ;;  %247 = vperm.xlu0 %9958, %v229_v27   ;;  %v6832_v14 = vld [vmem:[%s12602_s1 + $0x78] sm:$0xff]  ;;  %v6885_v15 = vld [vmem:[%s12602_s1 + $0x120] sm:$0xff] }
  0x3c   :  { %9227 = vmatpush3.bf16.msk.msra.mxu0 %vm9226_vm10, %v12667_v21  ;;  %vm308_vm12 = vmand %vm12613_vm4, %vm305_vm6  ;;  %v6839_v18 = vld [vmem:[%s12602_s1 + $0xb0] sm:$0xff]  ;;  %v6840_v20 = vld [vmem:[%s12602_s1 + $0xb8] sm:$0xff] }
  0x3d   :  { %vm309_vm15 = vmand %vm12614_vm9, %vm305_vm6  ;;  %9228 = vmatprep.subr.bf16.mxu0 %v12665_v3  ;;  %vm12622_vm9 = vcmp.eq.s32.totalorder %v10202_v24, %v10127_v10  ;;  %v981_v22 = vld [vmem:[%s12603_s2 + $0x10] sm:$0xff]  ;;  %v982_v23 = vld [vmem:[%s12603_s2 + $0x18] sm:$0xff] }
  0x3e   :  { %vm9250_vm10 = vmpackc.low %vm309_vm15, %vm308_vm12  ;;  %vm12618_vm15 = vcmp.eq.s32.totalorder %v10213_v25, %v10127_v10  ;;  %252 = vperm.xlu1 %9959, %v230_v30   ;;  %v6886_v26 = vld [vmem:[%s12602_s1 + $0x128] sm:$0xff]  ;;  %v6864_v27 = vld [vmem:[%s12602_s1 + $0xf8] sm:$0xff] }
  0x3f   :  { %9251 = vmatpush3.bf16.msk.msra.mxu1 %vm9250_vm10, %v12667_v21  ;;  %vm112_vm4 = vmand %vm12615_vm14, %vm107_vm3  ;;  %714 = vperm.xlu0 %9958, %v6857_v31   ;;  %v6863_v30 = vld [vmem:[%s12602_s1 + $0xf0] sm:$0xff]  ;;  %v983_v31 = vld [vmem:[%s12603_s2 + $0x20] sm:$0xff] }
  0x40   :  { %9252 = vmatprep.subr.bf16.mxu1 %v12665_v3  ;;  %vm113_vm12 = vmand %vm12617_vm7, %vm107_vm3 }
  0x41   :  { %vm9229_vm10 = vmpackc.low %vm113_vm12, %vm112_vm4  ;;  %vm12620_vm4 = vcmp.eq.s32.totalorder %v10257_v29, %v10124_v9 }
  0x42   :  { %9230 = vmatpush3.bf16.msk.msra.mxu0 %vm9229_vm10, %v12667_v21  ;;  %vm310_vm14 = vmand %vm12622_vm9, %vm305_vm6  ;;  %719 = vperm.xlu1 %9959, %v6858_v32   ;;  %vm296_vm9 = vcmp.eq.s32.totalorder %v10293_v33, %v10127_v10  ;;  %v6887_v32 = vld [vmem:[%s12602_s1 + $0x130] sm:$0xff] }
  0x43   :  { %vm311_vm7 = vmand %vm12618_vm15, %vm305_vm6  ;;  %9231 = vmatprep.subr.bf16.mxu0 %v12665_v3  ;;  %vm12621_vm15 = vcmp.eq.s32.totalorder %v10246_v28, %v10127_v10  ;;  %451 = vperm.xlu0 %9958, %v6828_v34   ;;  %v984_v34 = vld [vmem:[%s12603_s2 + $0x28] sm:$0xff] }
  0x44   :  { %vm9253_vm12 = vmpackc.low %vm311_vm7, %vm310_vm14  ;;  %vm12623_vm7 = vcmp.eq.s32.totalorder %v10257_v29, %v10127_v10 }
  0x45   :  { %9254 = vmatpush3.bf16.msk.msra.mxu1 %vm9253_vm12, %v12667_v21  ;;  %vm114_vm10 = vmand %vm12619_vm13, %vm107_vm3 }
  0x46   :  { %9255 = vmatprep.subr.bf16.mxu1 %v12665_v3  ;;  %vm115_vm14 = vmand %vm12620_vm4, %vm107_vm3  ;;  %vm98_vm4 = vcmp.eq.s32.totalorder %v10293_v33, %v10124_v9  ;;  %921 = vperm.xlu1 %9959, %v6881_v36   ;;  %v6888_v36 = vld [vmem:[%s12602_s1 + $0x138] sm:$0xff] }
  0x47   :  { %vm9232_vm12 = vmpackc.low %vm115_vm14, %vm114_vm10  ;;  %vm99_vm14 = vcmp.eq.s32.totalorder %v10307_v35, %v10124_v9  ;;  %515 = vperm.xlu0 %9958, %v6835_v37   ;;  %v986_v37 = vld [vmem:[%s12603_s2 + $0x38] sm:$0xff] }
  0x48   :  { %9233 = vmatpush3.bf16.msk.msra.mxu0 %vm9232_vm12, %v12667_v21  ;;  %vm312_vm13 = vmand %vm12621_vm15, %vm305_vm6 }
  0x49   :  { %vm313_vm10 = vmand %vm12623_vm7, %vm305_vm6  ;;  %9234 = vmatprep.subr.bf16.mxu0 %v12665_v3  ;;  %vm100_vm7 = vcmp.eq.s32.totalorder %v10340_v38, %v10124_v9 }
  0x4a   :  { %vm9256_vm12 = vmpackc.low %vm313_vm10, %vm312_vm13  ;;  %vm297_vm10 = vcmp.eq.s32.totalorder %v10307_v35, %v10127_v10  ;;  %926 = vperm.xlu1 %9959, %v6882_v40   ;;  %v985_v40 = vld [vmem:[%s12603_s2 + $0x30] sm:$0xff] }
  0x4b   :  { %9257 = vmatpush3.bf16.msk.msra.mxu1 %vm9256_vm12, %v12667_v21  ;;  %vm116_vm15 = vmand %vm98_vm4, %vm107_vm3  ;;  %520 = vperm.xlu0 %9958, %v6836_v41   ;;  %v2595_v41 = vld [vmem:[%s12605_s4 + $0x8] sm:$0xff] }
  0x4c   :  { %9258 = vmatprep.subr.bf16.mxu1 %v12665_v3  ;;  %vm117_vm13 = vmand %vm99_vm14, %vm107_vm3 }
  0x4d   :  { %vm9235_vm4 = vmpackc.low %vm117_vm13, %vm116_vm15  ;;  %vm298_vm13 = vcmp.eq.s32.totalorder %v10340_v38, %v10127_v10 }
  0x4e   :  { %9236 = vmatpush3.bf16.msk.msra.mxu0 %vm9235_vm4, %v12667_v21  ;;  %vm314_vm12 = vmand %vm296_vm9, %vm305_vm6  ;;  %vm299_vm4 = vcmp.eq.s32.totalorder %v10348_v39, %v10127_v10  ;;  %456 = vperm.xlu1 %9959, %v6829_v42   ;;  %v2594_v42 = vld [vmem:[%s12605_s4] sm:$0xff] }
  0x4f   :  { %vm315_vm14 = vmand %vm297_vm10, %vm305_vm6  ;;  %9237 = vmatprep.subr.bf16.mxu0 %v12665_v3  ;;  %257 = vperm.xlu0 %9958, %v231_v44   ;;  %v2597_v44 = vld [vmem:[%s12605_s4 + $0x18] sm:$0xff] }
  0x50   :  { %vm9259_vm15 = vmpackc.low %vm315_vm14, %vm314_vm12  ;;  %vm102_vm14 = vcmp.eq.s32.totalorder %v10375_v43, %v10124_v9 }
  0x51   :  { %9260 = vmatpush3.bf16.msk.msra.mxu1 %vm9259_vm15, %v12667_v21  ;;  %vm118_vm9 = vmand %vm100_vm7, %vm107_vm3  ;;  %vm103_vm15 = vcmp.eq.s32.totalorder %v10386_v45, %v10124_v9 }
  0x52   :  { %9261 = vmatprep.subr.bf16.mxu1 %v12665_v3  ;;  %vm119_vm10 = vmand %vm101_vm11, %vm107_vm3  ;;  %262 = vperm.xlu1 %9959, %v232_v46   ;;  %v2596_v46 = vld [vmem:[%s12605_s4 + $0x10] sm:$0xff] }
  0x53   :  { %vm9238_vm12 = vmpackc.low %vm119_vm10, %vm118_vm9  ;;  %vm300_vm10 = vcmp.eq.s32.totalorder %v10375_v43, %v10127_v10  ;;  %724 = vperm.xlu0 %9958, %v6859_v47   ;;  %v2599_v47 = vld [vmem:[%s12605_s4 + $0x28] sm:$0xff] }
  0x54   :  { %9239 = vmatpush3.bf16.msk.msra.mxu0 %vm9238_vm12, %v12667_v21  ;;  %vm316_vm7 = vmand %vm298_vm13, %vm305_vm6  ;;  %vm301_vm12 = vcmp.eq.s32.totalorder %v10386_v45, %v10127_v10 }
  0x55   :  { %vm317_vm11 = vmand %vm299_vm4, %vm305_vm6  ;;  %9240 = vmatprep.subr.bf16.mxu0 %v12665_v3 }
  0x56   :  { %vm9262_vm9 = vmpackc.low %vm317_vm11, %vm316_vm7  ;;  %vm104_vm11 = vcmp.eq.s32.totalorder %v10410_v48, %v10124_v9  ;;  %729 = vperm.xlu1 %9959, %v6860_v50   ;;  %v2598_v50 = vld [vmem:[%s12605_s4 + $0x20] sm:$0xff] }
  0x57   :  { %9263 = vmatpush3.bf16.msk.msra.mxu1 %vm9262_vm9, %v12667_v21  ;;  %vm120_vm13 = vmand %vm102_vm14, %vm107_vm3  ;;  %vm105_vm9 = vcmp.eq.s32.totalorder %v10418_v49, %v10124_v9  ;;  %461 = vperm.xlu0 %9958, %v6830_v51   ;;  %v2601_v51 = vld [vmem:[%s12605_s4 + $0x38] sm:$0xff] }
  0x58   :  { %9264 = vmatprep.subr.bf16.mxu1 %v12665_v3  ;;  %vm121_vm4 = vmand %vm103_vm15, %vm107_vm3 }
  0x59   :  { %vm9241_vm7 = vmpackc.low %vm121_vm4, %vm120_vm13  ;;  %vm302_vm4 = vcmp.eq.s32.totalorder %v10410_v48, %v10127_v10 }
  0x5a   :  { %9242 = vmatpush3.bf16.msk.msra.mxu0 %vm9241_vm7, %v12667_v21  ;;  %vm318_vm14 = vmand %vm300_vm10, %vm305_vm6  ;;  %vm303_vm7 = vcmp.eq.s32.totalorder %v10418_v49, %v10127_v10  ;;  %931 = vperm.xlu1 %9959, %v6883_v52   ;;  %v2600_v52 = vld [vmem:[%s12605_s4 + $0x30] sm:$0xff] }
  0x5b   :  { %vm319_vm15 = vmand %vm301_vm12, %vm305_vm6  ;;  %9243 = vmatprep.subr.bf16.mxu0 %v12665_v3  ;;  %525 = vperm.xlu0 %9958, %v6837_v55   ;;  %v4119_v55 = vld [vmem:[%s12607_s6] sm:$0xff] }
  0x5c   :  { %vm9265_vm13 = vmpackc.low %vm319_vm15, %vm318_vm14  ;;  %vm600_vm15 = vcmp.lt.s32.totalorder %v10448_v54, 64  ;;  %v4120_v54 = vld [vmem:[%s12607_s6 + $0x8] sm:$0xff] }
  0x5d   :  { %9266 = vmatpush3.bf16.msk.msra.mxu1 %vm9265_vm13, %v12667_v21  ;;  %vm122_vm10 = vmand %vm104_vm11, %vm107_vm3  ;;  %vm10482_vm11 = vcmp.eq.s32.totalorder %v10109_v4, %v10445_v53  ;;  %vm12626_vm13 = vcmp.eq.s32.totalorder %v10118_v7, %v10445_v53 }
  0x5e   :  { %9267 = vmatprep.subr.bf16.mxu1 %v12665_v3  ;;  %vm123_vm12 = vmand %vm105_vm9, %vm107_vm3  ;;  %v12734_v60 = vsel %vm10482_vm11, 4294967295, %v12733_v60  ;;  %530 = vperm.xlu1 %9959, %v6838_v58   ;;  %v4121_v58 = vld [vmem:[%s12607_s6 + $0x10] sm:$0xff] }
  0x5f   :  { %vm9244_vm14 = vmpackc.low %vm123_vm12, %vm122_vm10  ;;  %12735 = vst [vmem:[#allocation17_spill] sm:$0xff] %v12734_v60  ;;  %vm807_vm12 = vcmp.lt.s32.totalorder %v10467_v57, 64  ;;  %989 = vperm.xlu0 %9958, %v979_v61   ;;  %v4122_v57 = vld [vmem:[%s12607_s6 + $0x18] sm:$0xff]  ;;  %v4124_v61 = vld [vmem:[%s12607_s6 + $0x28] sm:$0xff] }
  0x60   :  { %9245 = vmatpush3.bf16.msk.msra.mxu0 %vm9244_vm14, %v12667_v21  ;;  %vm320_vm3 = vmand %vm302_vm4, %vm305_vm6  ;;  %vm10503_vm4 = vcmp.eq.s32.totalorder %v10109_v4, %v10464_v56  ;;  %vm12625_vm14 = vcmp.eq.s32.totalorder %v10118_v7, %v10464_v56 }
  0x61   :  { %vm321_vm9 = vmand %vm303_vm7, %vm305_vm6  ;;  %9270 = vmatprep.subr.bf16.mxu0 %v12665_v3  ;;  %v12737_v62 = vsel %vm10503_vm4, 4294967295, %v12736_v62 }
  0x62   :  { %vm9268_vm10 = vmpackc.low %vm321_vm9, %vm320_vm3  ;;  %12738 = vst [vmem:[#allocation18_spill] sm:$0xff] %v12737_v62  ;;  %994 = vperm.xlu1 %9959, %v980_v63   ;;  %v4123_v63 = vld [vmem:[%s12607_s6 + $0x20] sm:$0xff] }
  0x63   :  { %9269 = vmatpush3.bf16.msk.msra.mxu1 %vm9268_vm10, %v12667_v21  ;;  %8072 = vmatmul.mubr.f32.vlgmr.msra.gmra.mrb[0].mxu0 %v10478_v59  ;;  %vm601_vm6 = vmand %vm10482_vm11, %vm600_vm15  ;;  %vm12629_vm10 = vcmp.eq.s32.totalorder %v10151_v16, %v10445_v53 }
  0x64   :  { %9294 = vmatprep.subr.bf16.mxu1 %v12665_v3  ;;  %vm602_vm7 = vmand %vm12626_vm13, %vm600_vm15  ;;  %8141 = vmatprep.mubr.msk.f32.mxu0 %vm12627_vm0, %v12663_v6  ;;  %vm12630_vm13 = vcmp.eq.s32.totalorder %v10151_v16, %v10464_v56 }
  0x65   :  { %vm9271_vm3 = vmpackc.low %vm602_vm7, %vm601_vm6  ;;  %vm12637_vm7 = vcmp.eq.s32.totalorder %v10168_v19, %v10445_v53  ;;  %936 = vperm.xlu0 %9958, %v6884_v0   ;;  %v4126_v0 = vld [vmem:[%s12607_s6 + $0x38] sm:$0xff] }
  0x66   :  { %8107 = vmatmul.mubr.f32.vlgmr.msra.gmra.mrb[0].mxu1 %v10478_v59  ;;  %9272 = vmatpush3.bf16.msk.msra.mxu0 %vm9271_vm3, %v12667_v21  ;;  %vm808_vm9 = vmand %vm10503_vm4, %vm807_vm12 }
  0x67   :  { %vm809_vm6 = vmand %vm12625_vm14, %vm807_vm12  ;;  %9273 = vmatprep.subr.bf16.mxu0 %v12665_v3  ;;  %8176 = vmatprep.mubr.msk.f32.mxu1 %vm12627_vm0, %v12663_v6 }
  0x68   :  { %vm9295_vm3 = vmpackc.low %vm809_vm6, %vm808_vm9  ;;  %vm12631_vm6 = vcmp.eq.s32.totalorder %v10168_v19, %v10464_v56  ;;  %466 = vperm.xlu1 %9959, %v6831_v1   ;;  %v4125_v1 = vld [vmem:[%s12607_s6 + $0x30] sm:$0xff] }
  0x69   :  { %9296 = vmatpush3.bf16.msk.msra.mxu1 %vm9295_vm3, %v12667_v21  ;;  %vm603_vm14 = vmand %vm12629_vm10, %vm600_vm15  ;;  %vm12633_vm10 = vcmp.eq.s32.totalorder %v10202_v24, %v10445_v53  ;;  %267 = vperm.xlu0 %9958, %v233_v2   ;;  %v5621_v2 = vld [vmem:[%s12609_s8 + $0x8] sm:$0xff] }
  0x6a   :  { %9297 = vmatprep.subr.bf16.mxu1 %v12665_v3  ;;  %vm604_vm9 = vmand %vm12637_vm7, %vm600_vm15  ;;  %vm574_vm7 = vcmp.eq.s32.totalorder %v10293_v33, %v10445_v53 }
  0x6b   :  { %vm9274_vm3 = vmpackc.low %vm604_vm9, %vm603_vm14  ;;  %vm12632_vm9 = vcmp.eq.s32.totalorder %v10213_v25, %v10445_v53 }
  0x6c   :  { %9275 = vmatpush3.bf16.msk.msra.mxu0 %vm9274_vm3, %v12667_v21  ;;  %vm810_vm0 = vmand %vm12630_vm13, %vm807_vm12  ;;  %272 = vperm.xlu1 %9959, %v234_v8   ;;  %v5620_v8 = vld [vmem:[%s12609_s8] sm:$0xff] }
  0x6d   :  { %vm811_vm14 = vmand %vm12631_vm6, %vm807_vm12  ;;  %9276 = vmatprep.subr.bf16.mxu0 %v12665_v3  ;;  %vm12635_vm6 = vcmp.eq.s32.totalorder %v10202_v24, %v10464_v56  ;;  %734 = vperm.xlu0 %9958, %v6861_v12   ;;  %v5623_v12 = vld [vmem:[%s12609_s8 + $0x18] sm:$0xff] }
  0x6e   :  { %vm9298_vm3 = vmpackc.low %vm811_vm14, %vm810_vm0  ;;  %vm12634_vm14 = vcmp.eq.s32.totalorder %v10213_v25, %v10464_v56 }
  0x6f   :  { %9299 = vmatpush3.bf16.msk.msra.mxu1 %vm9298_vm3, %v12667_v21  ;;  %vm605_vm13 = vmand %vm12633_vm10, %vm600_vm15  ;;  %vm12636_vm10 = vcmp.eq.s32.totalorder %v10246_v28, %v10445_v53 }
  0x70   :  { %9300 = vmatprep.subr.bf16.mxu1 %v12665_v3  ;;  %vm606_vm0 = vmand %vm12632_vm9, %vm600_vm15  ;;  %739 = vperm.xlu1 %9959, %v6862_v13   ;;  %v5622_v13 = vld [vmem:[%s12609_s8 + $0x10] sm:$0xff] }
  0x71   :  { %vm9277_vm3 = vmpackc.low %vm606_vm0, %vm605_vm13  ;;  %vm12639_vm0 = vcmp.eq.s32.totalorder %v10257_v29, %v10445_v53  ;;  %471 = vperm.xlu0 %9958, %v6832_v14   ;;  %v5625_v14 = vld [vmem:[%s12609_s8 + $0x28] sm:$0xff] }
  0x72   :  { %9278 = vmatpush3.bf16.msk.msra.mxu0 %vm9277_vm3, %v12667_v21  ;;  %vm812_vm9 = vmand %vm12635_vm6, %vm807_vm12  ;;  %vm12638_vm6 = vcmp.eq.s32.totalorder %v10246_v28, %v10464_v56 }
  0x73   :  { %vm813_vm13 = vmand %vm12634_vm14, %vm807_vm12  ;;  %9279 = vmatprep.subr.bf16.mxu0 %v12665_v3 }
  0x74   :  { %vm9301_vm3 = vmpackc.low %vm813_vm13, %vm812_vm9  ;;  %vm12640_vm13 = vcmp.eq.s32.totalorder %v10257_v29, %v10464_v56  ;;  %941 = vperm.xlu1 %9959, %v6885_v15   ;;  %v5624_v15 = vld [vmem:[%s12609_s8 + $0x20] sm:$0xff] }
  0x75   :  { %9302 = vmatpush3.bf16.msk.msra.mxu1 %vm9301_vm3, %v12667_v21  ;;  %vm607_vm14 = vmand %vm12636_vm10, %vm600_vm15  ;;  %535 = vperm.xlu0 %9958, %v6839_v18   ;;  %v10843_v18 = vmul.u32 2, %v10111_v5 }
  0x76   :  { %9303 = vmatprep.subr.bf16.mxu1 %v12665_v3  ;;  %vm608_vm9 = vmand %vm12639_vm0, %vm600_vm15  ;;  %vm781_vm0 = vcmp.eq.s32.totalorder %v10293_v33, %v10464_v56 }
  0x77   :  { %vm9280_vm3 = vmpackc.low %vm608_vm9, %vm607_vm14  ;;  %vm575_vm9 = vcmp.eq.s32.totalorder %v10307_v35, %v10445_v53 }
  0x78   :  { %9281 = vmatpush3.bf16.msk.msra.mxu0 %vm9280_vm3, %v12667_v21  ;;  %vm814_vm10 = vmand %vm12638_vm6, %vm807_vm12  ;;  %540 = vperm.xlu1 %9959, %v6840_v20   ;;  %v10850_v20 = vadd.s32 1, %v10843_v18 }
  0x79   :  { %vm815_vm14 = vmand %vm12640_vm13, %vm807_vm12  ;;  %9282 = vmatprep.subr.bf16.mxu0 %v12665_v3  ;;  %999 = vperm.xlu0 %9958, %v981_v22   ;;  %v5627_v22 = vld [vmem:[%s12609_s8 + $0x38] sm:$0xff] }
  0x7a   :  { %vm9304_vm3 = vmpackc.low %vm815_vm14, %vm814_vm10  ;;  %vm576_vm14 = vcmp.eq.s32.totalorder %v10340_v38, %v10445_v53  ;;  %vm1084_vm2 = vcmp.eq.s32.totalorder %v10257_v29, %v10850_v20  ;;  %vm1092_vm4 = vcmp.eq.s32.totalorder %v10418_v49, %v10850_v20 }
  0x7b   :  { %9305 = vmatpush3.bf16.msk.msra.mxu1 %vm9304_vm3, %v12667_v21  ;;  %vm609_vm6 = vmand %vm574_vm7, %vm600_vm15 }
  0x7c   :  { %9306 = vmatprep.subr.bf16.mxu1 %v12665_v3  ;;  %vm610_vm13 = vmand %vm575_vm9, %vm600_vm15  ;;  %1004 = vperm.xlu1 %9959, %v982_v23   ;;  %v5626_v23 = vld [vmem:[%s12609_s8 + $0x30] sm:$0xff] }
  0x7d   :  { %vm9283_vm10 = vmpackc.low %vm610_vm13, %vm609_vm6  ;;  %vm577_vm6 = vcmp.eq.s32.totalorder %v10348_v39, %v10445_v53  ;;  %946 = vperm.xlu0 %9958, %v6886_v26   ;;  %v12739_v26 = vmov 0 }
  0x7e   :  { %9284 = vmatpush3.bf16.msk.msra.mxu0 %vm9283_vm10, %v12667_v21  ;;  %vm816_vm7 = vmand %vm781_vm0, %vm807_vm12  ;;  %vm784_vm10 = vcmp.eq.s32.totalorder %v10348_v39, %v10464_v56 }
  0x7f   :  { %vm817_vm9 = vmand %vm782_vm8, %vm807_vm12  ;;  %9285 = vmatprep.subr.bf16.mxu0 %v12665_v3  ;;  %vm783_vm8 = vcmp.eq.s32.totalorder %v10340_v38, %v10464_v56 }
  0x80   :  { %vm9307_vm13 = vmpackc.low %vm817_vm9, %vm816_vm7  ;;  %749 = vperm.xlu1 %9959, %v6864_v27   ;;  %vm578_vm9 = vcmp.eq.s32.totalorder %v10375_v43, %v10445_v53  ;;  %v12742_v27 = vmov 0 }
  0x81   :  { %9308 = vmatpush3.bf16.msk.msra.mxu1 %vm9307_vm13, %v12667_v21  ;;  %vm611_vm0 = vmand %vm576_vm14, %vm600_vm15  ;;  %744 = vperm.xlu0 %9958, %v6863_v30   ;;  %vm579_vm13 = vcmp.eq.s32.totalorder %v10386_v45, %v10445_v53  ;;  %v12745_v30 = vmov 0 }
  0x82   :  { %9309 = vmatprep.subr.bf16.mxu1 %v12665_v3  ;;  %vm612_vm3 = vmand %vm577_vm6, %vm600_vm15 }
  0x83   :  { %vm9286_vm7 = vmpackc.low %vm612_vm3, %vm611_vm0  ;;  %vm785_vm3 = vcmp.eq.s32.totalorder %v10375_v43, %v10464_v56 }
  0x84   :  { %9287 = vmatpush3.bf16.msk.msra.mxu0 %vm9286_vm7, %v12667_v21  ;;  %vm818_vm14 = vmand %vm783_vm8, %vm807_vm12  ;;  %1009 = vperm.xlu1 %9959, %v983_v31   ;;  %vm786_vm7 = vcmp.eq.s32.totalorder %v10386_v45, %v10464_v56  ;;  %v12748_v31 = vmov 0 }
  0x85   :  { %vm819_vm6 = vmand %vm784_vm10, %vm807_vm12  ;;  %9288 = vmatprep.subr.bf16.mxu0 %v12665_v3  ;;  %951 = vperm.xlu0 %9958, %v6887_v32   ;;  %v6773_v32 = vld [vmem:[#allocation2] sm:$0x1] }
  0x86   :  { %vm9310_vm0 = vmpackc.low %vm819_vm6, %vm818_vm14  ;;  %vm580_vm6 = vcmp.eq.s32.totalorder %v10410_v48, %v10445_v53 }
  0x87   :  { %9311 = vmatpush3.bf16.msk.msra.mxu1 %vm9310_vm0, %v12667_v21  ;;  %vm613_vm8 = vmand %vm578_vm9, %vm600_vm15  ;;  %vm581_vm0 = vcmp.eq.s32.totalorder %v10418_v49, %v10445_v53 }
  0x88   :  { %9312 = vmatprep.subr.bf16.mxu1 %v12665_v3  ;;  %vm614_vm10 = vmand %vm579_vm13, %vm600_vm15  ;;  %1014 = vperm.xlu1 %9959, %v984_v34   ;;  %v12751_v34 = vmov 0 }
  0x89   :  { %vm9289_vm14 = vmpackc.low %vm614_vm10, %vm613_vm8  ;;  %956 = vperm.xlu0 %9958, %v6888_v36   ;;  %vm787_vm10 = vcmp.eq.s32.totalorder %v10410_v48, %v10464_v56  ;;  %v12754_v36 = vmov 0 }
  0x8a   :  { %9290 = vmatpush3.bf16.msk.msra.mxu0 %vm9289_vm14, %v12667_v21  ;;  %vm820_vm9 = vmand %vm785_vm3, %vm807_vm12  ;;  %vm788_vm14 = vcmp.eq.s32.totalorder %v10418_v49, %v10464_v56 }
  0x8b   :  { %vm821_vm13 = vmand %vm786_vm7, %vm807_vm12  ;;  %9291 = vmatprep.subr.bf16.mxu0 %v12665_v3 }
  0x8c   :  { %vm9313_vm8 = vmpackc.low %vm821_vm13, %vm820_vm9  ;;  %1024 = vperm.xlu1 %9959, %v986_v37   ;;  %v12757_v37 = vmov 0 }
  0x8d   :  { %9314 = vmatpush3.bf16.msk.msra.mxu1 %vm9313_vm8, %v12667_v21  ;;  %vm615_vm3 = vmand %vm580_vm6, %vm600_vm15  ;;  %1019 = vperm.xlu0 %9958, %v985_v40   ;;  %vm1046_vm8 = vcmp.eq.s32.totalorder %v10151_v16, %v10843_v18  ;;  %v12760_v40 = vmov 0 }
  0x8e   :  { %9315 = vmatprep.subr.bf16.mxu1 %v12665_v3  ;;  %vm616_vm7 = vmand %vm581_vm0, %vm600_vm15  ;;  %vm1045_vm0 = vcmp.eq.s32.totalorder %v10118_v7, %v10843_v18  ;;  %v11114_v3 = vsub.s32 0, %v10109_v4 }
  0x8f   :  { %vm9292_vm9 = vmpackc.low %vm616_vm7, %vm615_vm3  ;;  %vm1077_vm7 = vcmp.eq.s32.totalorder %v10109_v4, %v10850_v20 }
  0x90   :  { %9293 = vmatpush3.bf16.msk.msra.mxu0 %vm9292_vm9, %v12667_v21  ;;  %vm822_vm6 = vmand %vm787_vm10, %vm807_vm12  ;;  %2609 = vperm.xlu1 %9959, %v2595_v41   ;;  %vm1047_vm10 = vcmp.eq.s32.totalorder %v10168_v19, %v10843_v18  ;;  %v547_v11 = vrot.slane %v10478_v59, %v11114_v3 }
  0x91   :  { %vm823_vm13 = vmand %vm788_vm14, %vm807_vm12  ;;  %2604 = vperm.xlu0 %9958, %v2594_v42   ;;  %vm1044_vm12 = vcmp.eq.s32.totalorder %v10109_v4, %v10843_v18  ;;  %vm1078_vm14 = vcmp.eq.s32.totalorder %v10118_v7, %v10850_v20 }
  0x92   :  { %vm9316_vm15 = vmpackc.low %vm823_vm13, %vm822_vm6  ;;  %vm1079_vm6 = vcmp.eq.s32.totalorder %v10151_v16, %v10850_v20  ;;  %vm1080_vm13 = vcmp.eq.s32.totalorder %v10168_v19, %v10850_v20 }
  0x93   :  { %9317 = vmatpush3.bf16.msk.msra.mxu1 %vm9316_vm15, %v12667_v21  ;;  %8142 = vmatmul.mubr.f32.vlgmr.msra.gmra.mrb[2].mxu0 %v10478_v59  ;;  %vm10860_vm3 = vmpackc.low %vm1045_vm0, %vm1044_vm12  ;;  %vm1048_vm0 = vcmp.eq.s32.totalorder %v10202_v24, %v10843_v18 }
  0x94   :  { %2619 = vperm.xlu1 %9959, %v2597_v44   ;;  %v12740_v26 = vsel %vm10860_vm3, 4294967295, %v12739_v26  ;;  %9319 = vmatprep.subr.msk.bf16.mxu0 %vm10860_vm3, %v12667_v21  ;;  %vm10873_vm9 = vmpackc.low %vm1047_vm10, %vm1046_vm8  ;;  %vm1049_vm8 = vcmp.eq.s32.totalorder %v10213_v25, %v10843_v18 }
  0x95   :  { %2614 = vperm.xlu0 %9958, %v2596_v46   ;;  %12741 = vst [vmem:[#allocation19_spill] sm:$0xff] %v12740_v26  ;;  %v12743_v27 = vsel %vm10873_vm9, 4294967295, %v12742_v27  ;;  %vm10881_vm15 = vmpackc.low %vm1078_vm14, %vm1077_vm7  ;;  %9321 = vmatpush3.bf16.msk.msra.mxu0 %vm10860_vm3, %v12667_v21  ;;  %vm1081_vm7 = vcmp.eq.s32.totalorder %v10202_v24, %v10850_v20  ;;  %vm1082_vm14 = vcmp.eq.s32.totalorder %v10213_v25, %v10850_v20 }
  0x96   :  { %8177 = vmatmul.mubr.f32.vlgmr.msra.gmra.mrb[2].mxu1 %v10478_v59  ;;  %12744 = vst [vmem:[#allocation20_spill] sm:$0xff] %v12743_v27  ;;  %v12746_v30 = vsel %vm10881_vm15, 4294967295, %v12745_v30  ;;  %vm10888_vm12 = vmpackc.low %vm1080_vm13, %vm1079_vm6  ;;  %9351 = vmatprep.subr.msk.bf16.mxu1 %vm10881_vm15, %v12667_v21  ;;  %vm1050_vm13 = vcmp.eq.s32.totalorder %v10246_v28, %v10843_v18  ;;  %vm1091_vm3 = vcmp.eq.s32.totalorder %v10410_v48, %v10850_v20 }
  0x97   :  { %12747 = vst [vmem:[#allocation21_spill] sm:$0xff] %v12746_v30  ;;  %v12749_v31 = vsel %vm10888_vm12, 4294967295, %v12748_v31  ;;  %9323 = vmatprep.subr.msk.bf16.mxu0 %vm10873_vm9, %v12667_v21  ;;  %vm10902_vm10 = vmpackc.low %vm1049_vm8, %vm1048_vm0  ;;  %9353 = vmatpush3.bf16.msk.msra.mxu1 %vm10881_vm15, %v12667_v21  ;;  %vm1051_vm0 = vcmp.eq.s32.totalorder %v10257_v29, %v10843_v18  ;;  %vm1083_vm8 = vcmp.eq.s32.totalorder %v10246_v28, %v10850_v20 }
  0x98   :  { %2629 = vperm.xlu1 %9959, %v2599_v47   ;;  %12750 = vst [vmem:[#allocation22_spill] sm:$0xff] %v12749_v31  ;;  %v12752_v34 = vsel %vm10902_vm10, 4294967295, %v12751_v34  ;;  %9355 = vmatprep.subr.msk.bf16.mxu1 %vm10888_vm12, %v12667_v21  ;;  %vm10922_vm6 = vmpackc.low %vm1082_vm14, %vm1081_vm7  ;;  %vm1052_vm14 = vcmp.eq.s32.totalorder %v10293_v33, %v10843_v18  ;;  %vm1053_vm15 = vcmp.eq.s32.totalorder %v10307_v35, %v10843_v18 }
  0x99   :  { %2624 = vperm.xlu0 %9958, %v2598_v50   ;;  %12753 = vst [vmem:[#allocation23_spill] sm:$0xff] %v12752_v34  ;;  %9325 = vmatpush3.bf16.msk.msra.mxu0 %vm10873_vm9, %v12667_v21  ;;  %v12755_v36 = vsel %vm10922_vm6, 4294967295, %v12754_v36  ;;  %vm10937_vm7 = vmpackc.low %vm1051_vm0, %vm1050_vm13  ;;  %vm1086_vm9 = vcmp.eq.s32.totalorder %v10307_v35, %v10850_v20  ;;  %v11031_v50 = vand.u32 31, %v10111_v5 }
  0x9a   :  { %9327 = vmatprep.subr.msk.bf16.mxu0 %vm10902_vm10, %v12667_v21  ;;  %12756 = vst [vmem:[#allocation24_spill] sm:$0xff] %v12755_v36  ;;  %v12758_v37 = vsel %vm10937_vm7, 4294967295, %v12757_v37  ;;  %vm10954_vm13 = vmpackc.low %vm1084_vm2, %vm1083_vm8  ;;  %vm1088_vm8 = vcmp.eq.s32.totalorder %v10348_v39, %v10850_v20 }
  0x9b   :  { %9357 = vmatpush3.bf16.msk.msra.mxu1 %vm10888_vm12, %v12667_v21  ;;  %12759 = vst [vmem:[#allocation25_spill] sm:$0xff] %v12758_v37  ;;  %v12761_v40 = vsel %vm10954_vm13, 4294967295, %v12760_v40  ;;  %vm9334_vm0 = vmpackc.low %vm1053_vm15, %vm1052_vm14  ;;  %vm1085_vm12 = vcmp.eq.s32.totalorder %v10293_v33, %v10850_v20  ;;  %vm1055_vm15 = vcmp.eq.s32.totalorder %v10348_v39, %v10843_v18 }
  0x9c   :  { %2639 = vperm.xlu1 %9959, %v2601_v51   ;;  %9359 = vmatprep.subr.msk.bf16.mxu1 %vm10922_vm6, %v12667_v21  ;;  %12762 = vst [vmem:[#allocation26_spill] sm:$0xff] %v12761_v40  ;;  %vm9366_vm2 = vmpackc.low %vm1086_vm9, %vm1085_vm12  ;;  %vm1054_vm9 = vcmp.eq.s32.totalorder %v10340_v38, %v10843_v18  ;;  %vm1087_vm12 = vcmp.eq.s32.totalorder %v10340_v38, %v10850_v20  ;;  %v11034_v51 = vadd.s32 4294967294, %v11031_v50 }
  0x9d   :  { %2634 = vperm.xlu0 %9958, %v2600_v52   ;;  %9329 = vmatpush3.bf16.msk.msra.mxu0 %vm10902_vm10, %v12667_v21  ;;  %vm9338_vm14 = vmpackc.low %vm1055_vm15, %vm1054_vm9  ;;  %vm1058_vm10 = vcmp.eq.s32.totalorder %v10410_v48, %v10843_v18  ;;  %vm1059_vm9 = vcmp.eq.s32.totalorder %v10418_v49, %v10843_v18  ;;  %12763 = vst [vmem:[#allocation27_spill] sm:$0xff] %v11031_v50  ;;  %v11037_v52 = vadd.s32 4294967295, %v11031_v50 }
  0x9e   :  { %9331 = vmatprep.subr.msk.bf16.mxu0 %vm10937_vm7, %v12667_v21  ;;  %vm9378_vm11 = vmpackc.low %vm1092_vm4, %vm1091_vm3  ;;  %vm12714_vm4 = vcmp.ge.s32.totalorder %v11034_v51, 0 }
  0x9f   :  { %9361 = vmatpush3.bf16.msk.msra.mxu1 %vm10922_vm6, %v12667_v21  ;;  %vm1090_vm6 = vcmp.eq.s32.totalorder %v10386_v45, %v10850_v20  ;;  %vm1494_vm3 = vcmp.ge.s32.totalorder %v11037_v52, 0  ;;  %v12824_v52 = vld [vmem:[#allocation10_spill] sm:$0xff] }
  0xa0   :  { %4134 = vperm.xlu1 %9959, %v4120_v54   ;;  %9363 = vmatprep.subr.msk.bf16.mxu1 %vm10954_vm13, %v12667_v21 }
  0xa1   :  { %4129 = vperm.xlu0 %9958, %v4119_v55   ;;  %9333 = vmatpush3.bf16.msk.msra.mxu0 %vm10937_vm7, %v12667_v21  ;;  %vm9370_vm7 = vmpackc.low %vm1088_vm8, %vm1087_vm12 }
  0xa2   :  { %9335 = vmatprep.subr.msk.bf16.mxu0 %vm9334_vm0, %v12667_v21  ;;  %vm9346_vm8 = vmpackc.low %vm1059_vm9, %vm1058_vm10  ;;  %vm12767_vm10 = vcmp.eq.s32.totalorder %v10118_v7, %v10124_v9  ;;  %vm12777_vm9 = vcmp.eq.s32.totalorder %v10151_v16, %v10124_v9 }
  0xa3   :  { %9365 = vmatpush3.bf16.msk.msra.mxu1 %vm10954_vm13, %v12667_v21  ;;  %vm1089_vm13 = vcmp.eq.s32.totalorder %v10375_v43, %v10850_v20 }
  0xa4   :  { %4144 = vperm.xlu1 %9959, %v4122_v57   ;;  %9367 = vmatprep.subr.msk.bf16.mxu1 %vm9366_vm2, %v12667_v21  ;;  %vm9374_vm12 = vmpackc.low %vm1090_vm6, %vm1089_vm13  ;;  %v12764_v57 = vmov 0 }
  0xa5   :  { %4139 = vperm.xlu0 %9958, %v4121_v58   ;;  %9337 = vmatpush3.bf16.msk.msra.mxu0 %vm9334_vm0, %v12667_v21  ;;  %vm1056_vm0 = vcmp.eq.s32.totalorder %v10375_v43, %v10843_v18  ;;  %vm11058_vm6 = vmand %vm12767_vm10, %vm12714_vm4  ;;  %vm12783_vm10 = vcmp.eq.s32.totalorder %v10151_v16, %v10127_v10 }
  0xa6   :  { %9339 = vmatprep.subr.msk.bf16.mxu0 %vm9338_vm14, %v12667_v21  ;;  %vm11076_vm13 = vmand %vm10159_vm5, %vm1494_vm3 }
  0xa7   :  { %9369 = vmatpush3.bf16.msk.msra.mxu1 %vm9366_vm2, %v12667_v21  ;;  %vm1057_vm2 = vcmp.eq.s32.totalorder %v10386_v45, %v10843_v18 }
  0xa8   :  { %4154 = vperm.xlu1 %9959, %v4124_v61   ;;  %9371 = vmatprep.subr.msk.bf16.mxu1 %vm9370_vm7, %v12667_v21  ;;  %vm9342_vm15 = vmpackc.low %vm1057_vm2, %vm1056_vm0  ;;  %v12770_v61 = vmov 0 }
  0xa9   :  { %4149 = vperm.xlu0 %9958, %v4123_v63   ;;  %9341 = vmatpush3.bf16.msk.msra.mxu0 %vm9338_vm14, %v12667_v21  ;;  %v12771_v61 = vsel %vm11076_vm13, 4294967295, %v12770_v61  ;;  %vm12773_vm14 = vcmp.eq.s32.totalorder %v10118_v7, %v10127_v10 }
  0xaa   :  { %9343 = vmatprep.subr.msk.bf16.mxu0 %vm9342_vm15, %v12667_v21  ;;  %12772 = vst [vmem:[#allocation29_spill] sm:$0xff] %v12771_v61  ;;  %vm11087_vm0 = vmand %vm12773_vm14, %vm1494_vm3 }
  0xab   :  { %9373 = vmatpush3.bf16.msk.msra.mxu1 %vm9370_vm7, %v12667_v21  ;;  %vm12710_vm2 = vmpackc.low %vm11087_vm0, %vm11076_vm13 }
  0xac   :  { %4164 = vperm.xlu1 %9959, %v4126_v0   ;;  %9375 = vmatprep.subr.msk.bf16.mxu1 %vm9374_vm12, %v12667_v21  ;;  %v12774_v0 = vmov 0  ;;  %vm11167_vm14 = vmand %vm12783_vm10, %vm1494_vm3 }
  0xad   :  { %4159 = vperm.xlu0 %9958, %v4125_v1   ;;  %v10978_v33 = vpop.permute.xlu0 %237  ;;  %v10980_v35 = vpop.permute.xlu1 %242  ;;  %9345 = vmatpush3.bf16.msk.msra.mxu0 %vm9342_vm15, %v12667_v21  ;;  %v12775_v0 = vsel %vm11087_vm0, 4294967295, %v12774_v0  ;;  %vm11149_vm15 = vmand %vm12777_vm9, %vm12714_vm4  ;;  %vm12786_vm9 = vcmp.eq.s32.totalorder %v10168_v19, %v10127_v10 }
  0xae   :  { %9347 = vmatprep.subr.msk.bf16.mxu0 %vm9346_vm8, %v12667_v21  ;;  %12776 = vst [vmem:[#allocation30_spill] sm:$0xff] %v12775_v0  ;;  %vm12806_vm5 = vmpackc.low %vm11087_vm0, %vm11076_vm13 }
  0xaf   :  { %9377 = vmatpush3.bf16.msk.msra.mxu1 %vm9374_vm12, %v12667_v21  ;;  %vm12780_vm12 = vcmp.eq.s32.totalorder %v10168_v19, %v10124_v9 }
  0xb0   :  { %5635 = vperm.xlu1 %9959, %v5621_v2   ;;  %9379 = vmatprep.subr.msk.bf16.mxu1 %vm9378_vm11, %v12667_v21 }
  0xb1   :  { %5630 = vperm.xlu0 %9958, %v5620_v8   ;;  %v10982_v41 = vpop.permute.xlu0 %436  ;;  %v10984_v42 = vpop.permute.xlu1 %441  ;;  %9349 = vmatpush3.bf16.msk.msra.mxu0 %vm9346_vm8, %v12667_v21  ;;  %vm11158_vm8 = vmand %vm12780_vm12, %vm12714_vm4 }
  0xb2   :  { %vm11176_vm12 = vmand %vm12786_vm9, %vm1494_vm3  ;;  %vm12792_vm9 = vcmp.eq.s32.totalorder %v10213_v25, %v10124_v9 }
  0xb3   :  { %9381 = vmatpush3.bf16.msk.msra.mxu1 %vm9378_vm11, %v12667_v21  ;;  %vm11048_vm11 = vmand %vm10131_vm1, %vm12714_vm4 }
  0xb4   :  { %5645 = vperm.xlu1 %9959, %v5623_v12   ;;  %v12765_v57 = vsel %vm11048_vm11, 4294967295, %v12764_v57  ;;  %vm12711_vm7 = vmpackc.low %vm11058_vm6, %vm11048_vm11  ;;  %9399 = vmatprep.subr.msk.bf16.mxu1 %vm12710_vm2, %v12667_v21  ;;  %vm12789_vm2 = vcmp.eq.s32.totalorder %v10202_v24, %v10124_v9 }
  0xb5   :  { %5640 = vperm.xlu0 %9958, %v5622_v13   ;;  %v511_v38 = vpop.permute.xlu1 %510  ;;  %12766 = vst [vmem:[#allocation28_spill] sm:$0xff] %v12765_v57  ;;  %9383 = vmatprep.subr.msk.bf16.mxu0 %vm12711_vm7, %v12667_v21  ;;  %vm11197_vm7 = vmand %vm12789_vm2, %vm12714_vm4  ;;  %vm12795_vm2 = vcmp.eq.s32.totalorder %v10202_v24, %v10127_v10 }
  0xb6   :  { %v10986_v44 = vpop.permute.xlu0 %505  ;;  %v550_v31 = vmul.f32 %v547_v11, %v511_v38  ;;  %vm11206_vm10 = vmand %vm12792_vm9, %vm12714_vm4  ;;  %vm12798_vm9 = vcmp.eq.s32.totalorder %v10213_v25, %v10127_v10 }
  0xb7   :  { %v549_v30 = vmul.f32 %v547_v11, %v10986_v44  ;;  %vm11215_vm1 = vmand %vm12795_vm2, %vm1494_vm3 }
  0xb8   :  { %5655 = vperm.xlu1 %9959, %v5625_v14   ;;  %vm11224_vm4 = vmand %vm12798_vm9, %vm1494_vm3 }
  0xb9   :  { %5650 = vperm.xlu0 %9958, %v5624_v15   ;;  %v447_v43 = vpop.permute.xlu1 %446  ;;  %vm12803_vm2 = vmpackc.low %vm11058_vm6, %vm11048_vm11 }
  0xba   :  { %v248_v39 = vpop.permute.xlu0 %247  ;;  %vm12807_vm9 = vmpackc.low %vm11158_vm8, %vm11149_vm15  ;;  %vm12811_vm15 = vcmp.ge.s32.totalorder %v11034_v51, 0  ;;  %v12819_v51 = vld [vmem:[#allocation27_spill] sm:$0xff] }
  0xbb   :  { %vm12808_vm11 = vmpackc.low %vm11176_vm12, %vm11167_vm14 }
  0xbc   :  { %5665 = vperm.xlu1 %9959, %v5627_v22   ;;  %vm9406_vm6 = vmpackc.low %vm11224_vm4, %vm11215_vm1 }
  0xbd   :  { %5660 = vperm.xlu0 %9958, %v5626_v23   ;;  %v253_v48 = vpop.permute.xlu1 %252  ;;  %vm12809_vm13 = vmmov %vm12807_vm9 }
  0xbe   :  { %v11022_v45 = vpop.permute.xlu0 %714  ;;  %vm12810_vm0 = vmmov %vm12808_vm11 }
  0xbf   :  { %vm12814_vm12 = vmmov %vm12811_vm15 }
  0xc1   :  { %6776 = vperm.xlu0 %9958, %v6773_v32   ;;  %v11026_v46 = vpop.permute.xlu1 %719 }
  0xc2   :  { %v452_v49 = vpop.permute.xlu0 %451 }
  0xc5   :  { %v11039_v54 = vpop.permute.xlu1 %921 }
  0xc6   :  { %v11028_v47 = vpop.permute.xlu0 %515 }
  0xc9   :  { %v11080_v63 = vpop.permute.xlu1 %926 }
  0xca   :  { %v11042_v55 = vpop.permute.xlu0 %520 }
  0xcd   :  { %v457_v2 = vpop.permute.xlu1 %456 }
  0xce   :  { %v258_v1 = vpop.permute.xlu0 %257 }
  0xd1   :  { %v263_v12 = vpop.permute.xlu1 %262 }
  0xd2   :  { %v11101_v8 = vpop.permute.xlu0 %724 }
  0xd5   :  { %v11103_v14 = vpop.permute.xlu1 %729 }
  0xd6   :  { %v462_v13 = vpop.permute.xlu0 %461 }
  0xd9   :  { %v11105_v18 = vpop.permute.xlu1 %931 }
  0xda   :  { %v526_v15 = vpop.permute.xlu0 %525 }
  0xdd   :  { %v531_v22 = vpop.permute.xlu1 %530 }
  0xde   :  { %v11107_v20 = vpop.permute.xlu0 %989 }
  0xe1   :  { %v11111_v32 = vpop.permute.xlu1 %994 }
  0xe4   :  { %v11109_v23 = vpop.permute.xlu0 %936 }
  0xe7   :  { %v467_v21 = vpop.permute.xlu1 %466 }
  0xe8   :  { %v268_v6 = vpop.permute.xlu0 %267 }
  0xeb   :  { %v273_v27 = vpop.permute.xlu1 %272 }
  0xec   :  { %v11118_v17 = vpop.permute.xlu0 %734 }
 0x136   :  { %v223_v5 = vpop.f32.mrb[0].mxu0 }
 0x137   :  { %v278_v40 = vrot.slane %v223_v5, %v11114_v3  ;;  %v8073_v36 = vpop.f32.mrb[1].mxu0  ;;  %v472_v5 = vpop.permute.xlu0 %471 }
 0x139   :  { %v421_v37 = vpop.f32.mrb[0].mxu1  ;;  %v279_v34 = vmul.f32 %v278_v40, %v10978_v33  ;;  %v280_v56 = vmul.f32 %v278_v40, %v10980_v35  ;;  %v281_v62 = vmul.f32 %v278_v40, %v248_v39  ;;  %v282_v59 = vmul.f32 %v278_v40, %v253_v48 }
 0x13a   :  { %v477_v4 = vrot.slane %v421_v37, %v11114_v3  ;;  %v8108_v26 = vpop.f32.mrb[1].mxu1  ;;  %v283_v53 = vmul.f32 %v278_v40, %v258_v1  ;;  %v284_v7 = vmul.f32 %v278_v40, %v263_v12  ;;  %v285_v60 = vmul.f32 %v278_v40, %v268_v6 }
 0x13b   :  { %v286_v50 = vmul.f32 %v278_v40, %v273_v27  ;;  %v536_v57 = vpop.permute.xlu0 %535 }
 0x13c   :  { %v478_v36 = vmul.f32 %v477_v4, %v10982_v41  ;;  %v479_v44 = vmul.f32 %v477_v4, %v10984_v42  ;;  %v480_v38 = vmul.f32 %v477_v4, %v447_v43  ;;  %v481_v29 = vmul.f32 %v477_v4, %v452_v49  ;;  %v740_v41 = vpop.permute.xlu1 %739 }
 0x13d   :  { %v482_v33 = vmul.f32 %v477_v4, %v457_v2  ;;  %v483_v28 = vmul.f32 %v477_v4, %v462_v13  ;;  %v484_v61 = vmul.f32 %v477_v4, %v467_v21  ;;  %v485_v37 = vmul.f32 %v477_v4, %v472_v5 }
 0x13e   :  { %v486_v26 = vadd.f32 %v478_v36, %v279_v34  ;;  %v487_v0 = vadd.f32 %v479_v44, %v280_v56  ;;  %v488_v35 = vadd.f32 %v480_v38, %v281_v62  ;;  %v489_v39 = vadd.f32 %v481_v29, %v282_v59 }
 0x13f   :  { %v490_v48 = vadd.f32 %v482_v33, %v283_v53  ;;  %v491_v1 = vadd.f32 %v483_v28, %v284_v7  ;;  %v492_v12 = vadd.f32 %v484_v61, %v285_v60  ;;  %v11127_v6 = vadd.f32 %v485_v37, %v286_v50  ;;  %v1000_v43 = vpop.permute.xlu0 %999 }
 0x140   :  { %v557_v27 = vadd.f32 %v549_v30, %v486_v26  ;;  %v558_v40 = vadd.f32 %v550_v31, %v487_v0  ;;  %v942_v42 = vpop.permute.xlu1 %941  ;;  %v551_v21 = vmul.f32 %v547_v11, %v11028_v47  ;;  %v552_v29 = vmul.f32 %v547_v11, %v11042_v55 }
 0x141   :  { %v553_v53 = vmul.f32 %v547_v11, %v526_v15  ;;  %v554_v7 = vmul.f32 %v547_v11, %v531_v22  ;;  %v555_v28 = vmul.f32 %v547_v11, %v536_v57 }
 0x142   :  { %v559_v34 = vadd.f32 %v551_v21, %v488_v35  ;;  %v560_v61 = vadd.f32 %v552_v29, %v489_v39 }
 0x143   :  { %v947_v2 = vpop.permute.xlu0 %946  ;;  %v561_v0 = vadd.f32 %v553_v53, %v490_v48  ;;  %v562_v4 = vadd.f32 %v554_v7, %v491_v1  ;;  %v563_v59 = vadd.f32 %v555_v28, %v492_v12 }
 0x144   :  { %v541_v49 = vpop.permute.xlu1 %540 }
 0x145   :  { %v556_v62 = vmul.f32 %v547_v11, %v541_v49 }
 0x147   :  { %v745_v56 = vpop.permute.xlu0 %744 }
 0x148   :  { %v11129_v13 = vpop.permute.xlu1 %1004 }
 0x14b   :  { %v952_v33 = vpop.permute.xlu0 %951 }
 0x14c   :  { %v750_v50 = vpop.permute.xlu1 %749 }
 0x166   :  { %v699_v60 = vpop.f32.mrb[2].mxu0 }
 0x167   :  { %v755_v30 = vrot.slane %v699_v60, %v11114_v3  ;;  %v8143_v31 = vpop.f32.mrb[3].mxu0  ;;  %v957_v60 = vpop.permute.xlu0 %956 }
 0x169   :  { %v906_v5 = vpop.f32.mrb[2].mxu1  ;;  %v756_v47 = vmul.f32 %v755_v30, %v11022_v45  ;;  %v757_v36 = vmul.f32 %v755_v30, %v11026_v46  ;;  %v758_v55 = vmul.f32 %v755_v30, %v11101_v8  ;;  %v759_v57 = vmul.f32 %v755_v30, %v11103_v14 }
 0x16a   :  { %v962_v11 = vrot.slane %v906_v5, %v11114_v3  ;;  %v8178_v15 = vpop.f32.mrb[3].mxu1  ;;  %v760_v22 = vmul.f32 %v755_v30, %v11118_v17  ;;  %v761_v44 = vmul.f32 %v755_v30, %v740_v41  ;;  %v762_v38 = vmul.f32 %v755_v30, %v745_v56 }
 0x16b   :  { %v764_v37 = vadd.f32 %v756_v47, %v557_v27  ;;  %v765_v26 = vadd.f32 %v757_v36, %v558_v40  ;;  %v766_v35 = vadd.f32 %v758_v55, %v559_v34  ;;  %v767_v39 = vadd.f32 %v759_v57, %v560_v61  ;;  %v1020_v36 = vpop.permute.xlu0 %1019 }
 0x16c   :  { %v963_v45 = vmul.f32 %v962_v11, %v11039_v54  ;;  %v964_v46 = vmul.f32 %v962_v11, %v11080_v63  ;;  %v965_v8 = vmul.f32 %v962_v11, %v11105_v18  ;;  %v966_v14 = vmul.f32 %v962_v11, %v11109_v23  ;;  %v1010_v63 = vpop.permute.xlu1 %1009 }
 0x16d   :  { %v768_v48 = vadd.f32 %v760_v22, %v561_v0  ;;  %v967_v1 = vmul.f32 %v962_v11, %v942_v42  ;;  %v769_v12 = vadd.f32 %v761_v44, %v562_v4  ;;  %v968_v27 = vmul.f32 %v962_v11, %v947_v2 }
 0x16e   :  { %v971_v18 = vadd.f32 %v963_v45, %v764_v37  ;;  %v972_v23 = vadd.f32 %v964_v46, %v765_v26  ;;  %v973_v40 = vadd.f32 %v965_v8, %v766_v35  ;;  %v974_v41 = vadd.f32 %v966_v14, %v767_v39  ;;  %v12812_v45 = vld [vmem:[#allocation13_spill] sm:$0xff]  ;;  %v12815_v46 = vld [vmem:[#allocation14_spill] sm:$0xff] }
 0x16f   :  { %v975_v49 = vadd.f32 %v967_v1, %v768_v48  ;;  %v976_v2 = vadd.f32 %v968_v27, %v769_v12  ;;  %v770_v21 = vadd.f32 %v762_v38, %v563_v59  ;;  %v969_v56 = vmul.f32 %v962_v11, %v952_v33  ;;  %v12820_v14 = vld [vmem:[#allocation17_spill] sm:$0xff]  ;;  %v12825_v48 = vld [vmem:[#allocation15_spill] sm:$0xff] }
 0x170   :  { %v1027_v53 = vadd.f32 %v11107_v20, %v971_v18  ;;  %v1028_v7 = vadd.f32 %v11111_v32, %v972_v23  ;;  %v1029_v28 = vadd.f32 %v1000_v43, %v973_v40  ;;  %v564_v34 = vadd.f32 %v556_v62, %v11127_v6  ;;  %v1015_v43 = vpop.permute.xlu1 %1014 }
 0x171   :  { %v977_v31 = vadd.f32 %v969_v56, %v770_v21  ;;  %v763_v61 = vmul.f32 %v755_v30, %v750_v50  ;;  %v1030_v20 = vadd.f32 %v11129_v13, %v974_v41  ;;  %v1031_v30 = vadd.f32 %v1010_v63, %v975_v49  ;;  %v6957_v13 = vld [vmem:[%s12604_s3 + $0x60] sm:$0xff] }
 0x172   :  { %v1035_v0 = vmax.f32 %v1027_v53, 0.0  ;;  %v1036_v4 = vmax.f32 %v1028_v7, 0.0  ;;  %v1037_v62 = vmax.f32 %v1029_v28, 0.0  ;;  %v970_v50 = vmul.f32 %v962_v11, %v957_v60 }
 0x173   :  { %v771_v32 = vadd.f32 %v763_v61, %v564_v34  ;;  %v1038_v55 = vmax.f32 %v1030_v20, 0.0  ;;  %v1032_v57 = vadd.f32 %v1015_v43, %v976_v2  ;;  %v12801_v11 = vmov 1.0|1.0  }
 0x174   :  { %8211 = vmatprep.mubr.f32.mxu0 %v1035_v0  ;;  %8255 = vmatprep.mubr.f32.mxu1 %v1035_v0  ;;  %v1039_v38 = vmax.f32 %v1031_v30, 0.0  ;;  %v1033_v33 = vadd.f32 %v1020_v36, %v977_v31  ;;  %v1025_v58 = vpop.permute.xlu1 %1024  ;;  %vm12813_vm8 = vcmp.eq.s32.totalorder %v12812_v45, %v10124_v9  ;;  %vm12817_vm1 = vcmp.eq.s32.totalorder %v12812_v45, %v10127_v10  ;;  %v6954_v0 = vld [vmem:[%s12604_s3 + $0x48] sm:$0xff] }
 0x175   :  { %8212 = vmatmul.mubr.f32.vlgmr.msra.gmra.mrb[4].mxu0 %v1036_v4  ;;  %8256 = vmatmul.mubr.f32.vlgmr.msra.gmra.mrb[4].mxu1 %v1036_v4  ;;  %v978_v5 = vadd.f32 %v970_v50, %v771_v32  ;;  %v1040_v37 = vmax.f32 %v1032_v57, 0.0  ;;  %vm1336_vm14 = vmand %vm12813_vm8, %vm12811_vm15  ;;  %v2038_v8 = vadd.s32 1, %v12819_v51  ;;  %v2316_v28 = vadd.s32 2, %v12819_v51  ;;  %v12847_v50 = vld [vmem:[#allocation18_spill] sm:$0xff] }
 0x176   :  { %8214 = vmatprep.mubr.f32.mxu0 %v1037_v62  ;;  %8258 = vmatprep.mubr.f32.mxu1 %v1037_v62  ;;  %v1041_v35 = vmax.f32 %v1033_v33, 0.0  ;;  %vm1501_vm4 = vmand %vm12817_vm1, %vm1494_vm3  ;;  %vm12835_vm1 = vcmp.eq.s32.totalorder %v10202_v24, %v12825_v48  ;;  %v6960_v33 = vld [vmem:[%s12604_s3 + $0x78] sm:$0xff] }
 0x177   :  { %9385 = vmatpush3.bf16.msk.msra.mxu0 %vm12803_vm2, %v12801_v11  ;;  %9401 = vmatpush3.bf16.msk.msra.mxu1 %vm12806_vm5, %v12801_v11  ;;  %vm9390_vm5 = vmpackc.low %vm11206_vm10, %vm11197_vm7  ;;  %v1034_v26 = vadd.f32 %v1025_v58, %v978_v5  ;;  %vm12816_vm7 = vcmp.eq.s32.totalorder %v12815_v46, %v10124_v9 }
 0x178   :  { %9387 = vmatprep.subr.msk.bf16.mxu0 %vm12807_vm9, %v12801_v11  ;;  %9403 = vmatprep.subr.msk.bf16.mxu1 %vm12808_vm11, %v12801_v11  ;;  %vm1337_vm10 = vmand %vm12816_vm7, %vm12814_vm12  ;;  %vm12818_vm9 = vcmp.eq.s32.totalorder %v12815_v46, %v10127_v10  ;;  %vm12717_vm7 = vcmask 523264  }
 0x179   :  { %8215 = vmatmul.mubr.f32.gmra.mrb[6].mxu0 %v1038_v55  ;;  %8259 = vmatmul.mubr.f32.gmra.mrb[6].mxu1 %v1038_v55  ;;  %v1042_v39 = vmax.f32 %v1034_v26, 0.0  ;;  %vm9394_vm2 = vmpackc.low %vm1337_vm10, %vm1336_vm14  ;;  %vm12829_vm14 = vcmp.eq.s32.totalorder %v10151_v16, %v12825_v48  ;;  %vm12832_vm10 = vcmp.eq.s32.totalorder %v10168_v19, %v12825_v48  ;;  %v12851_v55 = vld [vmem:[#allocation16_spill] sm:$0xff]  ;;  %v12875_v26 = vld [vmem:[#allocation25_spill] sm:$0xff] }
 0x17a   :  { %8217 = vmatprep.mubr.f32.mxu0 %v1039_v38  ;;  %8261 = vmatprep.mubr.f32.mxu1 %v1039_v38  ;;  %vm1502_vm11 = vmand %vm12818_vm9, %vm1494_vm3  ;;  %vm12826_vm3 = vcmp.eq.s32.totalorder %v12824_v52, %v12825_v48  ;;  %vm12838_vm9 = vcmp.eq.s32.totalorder %v10213_v25, %v12825_v48 }
 0x17b   :  { %9389 = vmatpush3.bf16.msk.msra.mxu0 %vm12809_vm13, %v12801_v11  ;;  %9405 = vmatpush3.bf16.msk.msra.mxu1 %vm12810_vm0, %v12801_v11  ;;  %vm12821_vm13 = vnez %v12820_v14 }
 0x17c   :  { %9391 = vmatprep.subr.msk.bf16.mxu0 %vm9390_vm5, %v12801_v11  ;;  %9407 = vmatprep.subr.msk.bf16.mxu1 %vm9406_vm6, %v12801_v11 }
 0x17d   :  { %8218 = vmatmul.mubr.f32.gmra.mrb[8].mxu0 %v1040_v37  ;;  %8262 = vmatmul.mubr.f32.gmra.mrb[8].mxu1 %v1040_v37  ;;  %v12873_v37 = vld [vmem:[#allocation23_spill] sm:$0xff] }
 0x17e   :  { %8220 = vmatprep.mubr.f32.mxu0 %v1041_v35  ;;  %8264 = vmatprep.mubr.f32.mxu1 %v1041_v35  ;;  %v12877_v35 = vld [vmem:[#allocation21_spill] sm:$0xff] }
 0x17f   :  { %9393 = vmatpush3.bf16.msk.msra.mxu0 %vm9390_vm5, %v12801_v11  ;;  %9409 = vmatpush3.bf16.msk.msra.mxu1 %vm9406_vm6, %v12801_v11  ;;  %vm9410_vm5 = vmpackc.low %vm1502_vm11, %vm1501_vm4  ;;  %vm2048_vm6 = vcmp.lt.s32.totalorder %v2038_v8, 32 }
 0x180   :  { %9395 = vmatprep.subr.msk.bf16.mxu0 %vm9394_vm2, %v12801_v11  ;;  %9411 = vmatprep.subr.msk.bf16.mxu1 %vm9410_vm5, %v12801_v11  ;;  %vm11324_vm0 = vmand %vm12821_vm13, %vm2048_vm6 }
 0x181   :  { %8221 = vmatmul.mubr.f32.gmra.mrb[10].mxu0 %v1042_v39  ;;  %8265 = vmatmul.mubr.f32.gmra.mrb[10].mxu1 %v1042_v39  ;;  %vm11332_vm15 = vmand %vm12826_vm3, %vm2048_vm6  ;;  %v6953_v39 = vld [vmem:[%s12604_s3 + $0x40] sm:$0xff] }
 0x182   :  { %vm9462_vm8 = vmpackc.low %vm11332_vm15, %vm11324_vm0  ;;  %vm12844_vm0 = vcmp.eq.s32.totalorder %v12815_v46, %v12825_v48 }
 0x183   :  { %9397 = vmatpush3.bf16.msk.msra.mxu0 %vm9394_vm2, %v12801_v11  ;;  %9413 = vmatpush3.bf16.msk.msra.mxu1 %vm9410_vm5, %v12801_v11  ;;  %vm11350_vm12 = vmand %vm12829_vm14, %vm2048_vm6  ;;  %vm12841_vm14 = vcmp.eq.s32.totalorder %v12812_v45, %v12825_v48 }
 0x184   :  { %9463 = vmatprep.subr.msk.bf16.mxu1 %vm9462_vm8, %v12801_v11  ;;  %vm11360_vm2 = vmand %vm12832_vm10, %vm2048_vm6 }
 0x185   :  { %vm11370_vm4 = vmand %vm12835_vm1, %vm2048_vm6  ;;  %vm12852_vm1 = vcmp.eq.s32.totalorder %v12824_v52, %v12851_v55 }
 0x186   :  { %vm11378_vm11 = vmand %vm12838_vm9, %vm2048_vm6 }
 0x187   :  { %vm9466_vm5 = vmpackc.low %vm11360_vm2, %vm11350_vm12  ;;  %vm12848_vm12 = vnez %v12847_v50 }
 0x188   :  { %vm9470_vm3 = vmpackc.low %vm11378_vm11, %vm11370_vm4  ;;  %vm12858_vm4 = vcmp.eq.s32.totalorder %v10168_v19, %v12851_v55 }
 0x189   :  { %vm11423_vm10 = vmand %vm12841_vm14, %vm2048_vm6 }
 0x18a   :  { %vm11435_vm15 = vmand %vm12844_vm0, %vm2048_vm6 }
 0x18b   :  { %vm9474_vm6 = vmpackc.low %vm11435_vm15, %vm11423_vm10  ;;  %vm12864_vm10 = vcmp.eq.s32.totalorder %v10213_v25, %v12851_v55  ;;  %v12871_v25 = vld [vmem:[#allocation20_spill] sm:$0xff] }
 0x248   :  { %v8213_v12 = vpop.f32.mrb[4].mxu0  ;;  %v8257_v27 = vpop.f32.mrb[4].mxu1 }
 0x249   :  { %v11354_v63 = vmax.f32 %v8213_v12, %v8257_v27  ;;  %v1175_v18 = vpop.f32.mrb[5].mxu0  ;;  %v1280_v23 = vpop.f32.mrb[5].mxu1 }
 0x24a   :  { %v11364_v41 = vmax.f32 %v1175_v18, %v1280_v23 }
 0x24c   :  { %v8216_v2 = vpop.f32.mrb[6].mxu0  ;;  %v8260_v21 = vpop.f32.mrb[6].mxu1  ;;  %8283 = vmatprep.mubr.msk.f32.mxu0 %vm12717_vm7, %v11364_v41  ;;  %8311 = vmatprep.mubr.msk.f32.mxu1 %vm12717_vm7, %v11364_v41  ;;  %v11392_v56 = vpack.c.bf16 %v11354_v63, %v11364_v41 }
 0x24d   :  { %v11394_v29 = vmax.f32 %v8216_v2, %v8260_v21  ;;  %v1185_v53 = vpop.f32.mrb[7].mxu0  ;;  %v1290_v7 = vpop.f32.mrb[7].mxu1  ;;  %8284 = vmatmul.mubr.msk.f32.vlgmr.msra.gmra.mrb[12].mxu0 %vm12717_vm7, %v11354_v63  ;;  %8312 = vmatmul.mubr.msk.f32.vlgmr.msra.gmra.mrb[12].mxu1 %vm12717_vm7, %v11354_v63 }
 0x24e   :  { %v11401_v60 = vmax.f32 %v1185_v53, %v1290_v7  ;;  %9465 = vmatpush3.bf16.msk.msra.mxu1 %vm9462_vm8, %v12801_v11  ;;  %vm2326_vm8 = vcmp.lt.s32.totalorder %v2316_v28, 32 }
 0x24f   :  { %9467 = vmatprep.subr.msk.bf16.mxu1 %vm9466_vm5, %v12801_v11  ;;  %vm11470_vm2 = vmand %vm12848_vm12, %vm2326_vm8 }
 0x250   :  { %v8219_v34 = vpop.f32.mrb[8].mxu0  ;;  %v8263_v61 = vpop.f32.mrb[8].mxu1  ;;  %8286 = vmatprep.mubr.msk.f32.mxu0 %vm12717_vm7, %v11401_v60  ;;  %8314 = vmatprep.mubr.msk.f32.mxu1 %vm12717_vm7, %v11401_v60  ;;  %v11441_v4 = vpack.c.bf16 %v11394_v29, %v11401_v60  ;;  %vm11485_vm9 = vmand %vm12852_vm1, %vm2326_vm8 }
 0x251   :  { %v11443_v20 = vmax.f32 %v8219_v34, %v8263_v61  ;;  %v1195_v32 = vpop.f32.mrb[9].mxu0  ;;  %v1300_v6 = vpop.f32.mrb[9].mxu1  ;;  %8287 = vmatmul.mubr.msk.f32.gmra.mrb[14].mxu0 %vm12717_vm7, %v11394_v29  ;;  %8315 = vmatmul.mubr.msk.f32.gmra.mrb[14].mxu1 %vm12717_vm7, %v11394_v29  ;;  %vm11513_vm11 = vmand %vm12858_vm4, %vm2326_vm8 }
 0x252   :  { %v1323_v43 = vmax.f32 %v1195_v32, %v1300_v6  ;;  %9469 = vmatpush3.bf16.msk.msra.mxu1 %vm9466_vm5, %v12801_v11  ;;  %vm12855_vm5 = vcmp.eq.s32.totalorder %v10151_v16, %v12851_v55  ;;  %vm11552_vm15 = vmand %vm12864_vm10, %vm2326_vm8  ;;  %v6955_v32 = vld [vmem:[%s12604_s3 + $0x50] sm:$0xff] }
 0x253   :  { %9471 = vmatprep.subr.msk.bf16.mxu1 %vm9470_vm3, %v12801_v11  ;;  %vm11499_vm14 = vmand %vm12855_vm5, %vm2326_vm8 }
 0x254   :  { %v8222_v62 = vpop.f32.mrb[10].mxu0  ;;  %v8266_v30 = vpop.f32.mrb[10].mxu1  ;;  %8289 = vmatprep.mubr.msk.f32.mxu0 %vm12717_vm7, %v1323_v43  ;;  %8317 = vmatprep.mubr.msk.f32.mxu1 %vm12717_vm7, %v1323_v43  ;;  %v11475_v59 = vpack.c.bf16 %v11443_v20, %v1323_v43  ;;  %vm9498_vm0 = vmpackc.low %vm11513_vm11, %vm11499_vm14  ;;  %vm12868_vm14 = vcmp.eq.s32.totalorder %v12815_v46, %v12851_v55 }
 0x255   :  { %v1326_v5 = vmax.f32 %v8222_v62, %v8266_v30  ;;  %v1205_v47 = vpop.f32.mrb[11].mxu0  ;;  %v1310_v36 = vpop.f32.mrb[11].mxu1  ;;  %8290 = vmatmul.mubr.msk.f32.gmra.mrb[16].mxu0 %vm12717_vm7, %v11443_v20  ;;  %8318 = vmatmul.mubr.msk.f32.gmra.mrb[16].mxu1 %vm12717_vm7, %v11443_v20  ;;  %vm2334_vm4 = vmand %vm12868_vm14, %vm2326_vm8  ;;  %v6956_v62 = vld [vmem:[%s12604_s3 + $0x58] sm:$0xff] }
 0x256   :  { %v1325_v15 = vmax.f32 %v1205_v47, %v1310_v36  ;;  %9473 = vmatpush3.bf16.msk.msra.mxu1 %vm9470_vm3, %v12801_v11  ;;  %vm9494_vm3 = vmpackc.low %vm11485_vm9, %vm11470_vm2  ;;  %vm12861_vm2 = vcmp.eq.s32.totalorder %v10202_v24, %v12851_v55  ;;  %vm12867_vm9 = vcmp.eq.s32.totalorder %v12812_v45, %v12851_v55  ;;  %v12869_v24 = vld [vmem:[#allocation19_spill] sm:$0xff]  ;;  %v6958_v36 = vld [vmem:[%s12604_s3 + $0x68] sm:$0xff] }
 0x257   :  { %9475 = vmatprep.subr.msk.bf16.mxu1 %vm9474_vm6, %v12801_v11  ;;  %vm11544_vm1 = vmand %vm12861_vm2, %vm2326_vm8  ;;  %vm12876_vm2 = vnez %v12875_v26 }
 0x258   :  { %8292 = vmatprep.mubr.msk.f32.mxu0 %vm12717_vm7, %v1325_v15  ;;  %8320 = vmatprep.mubr.msk.f32.mxu1 %vm12717_vm7, %v1325_v15  ;;  %v11523_v38 = vpack.c.bf16 %v1326_v5, %v1325_v15  ;;  %vm2333_vm5 = vmand %vm12867_vm9, %vm2326_vm8  ;;  %vm12870_vm8 = vnez %v12869_v24 }
 0x259   :  { %8293 = vmatmul.mubr.msk.f32.gmra.mrb[18].mxu0 %vm12717_vm7, %v1326_v5  ;;  %8321 = vmatmul.mubr.msk.f32.gmra.mrb[18].mxu1 %vm12717_vm7, %v1326_v5  ;;  %vm9506_vm11 = vmpackc.low %vm2334_vm4, %vm2333_vm5  ;;  %vm12888_vm4 = vcmp.eq.s32.totalorder %v12824_v52, %v10127_v10 }
 0x25a   :  { %9477 = vmatpush3.bf16.msk.msra.mxu1 %vm9474_vm6, %v12801_v11  ;;  %8423 = vmatprep.mubr.msk.f32.mxu1 %vm12717_vm7, %v11364_v41  ;;  %vm9502_vm6 = vmpackc.low %vm11552_vm15, %vm11544_vm1  ;;  %vm12878_vm1 = vnez %v12877_v35 }
 0x25b   :  { %9495 = vmatprep.subr.msk.bf16.mxu1 %vm9494_vm3, %v12801_v11  ;;  %8339 = vmatprep.mubr.msk.f32.mxu0 %vm12717_vm7, %v6953_v39 }
 0x25d   :  { %8424 = vmatmul.mubr.msk.f32.vlgmr.msra.gmra.mrb[20].mxu1 %vm12717_vm7, %v11354_v63 }
 0x25e   :  { %8426 = vmatprep.mubr.msk.f32.mxu1 %vm12717_vm7, %v11401_v60  ;;  %9497 = vmatpush3.bf16.msk.msra.mxu1 %vm9494_vm3, %v12801_v11  ;;  %vm12872_vm3 = vnez %v12871_v25 }
 0x25f   :  { %9499 = vmatprep.subr.msk.bf16.mxu1 %vm9498_vm0, %v12801_v11 }
 0x261   :  { %8427 = vmatmul.mubr.msk.f32.gmra.mrb[22].mxu1 %vm12717_vm7, %v11394_v29 }
 0x262   :  { %8429 = vmatprep.mubr.msk.f32.mxu1 %vm12717_vm7, %v1323_v43  ;;  %9501 = vmatpush3.bf16.msk.msra.mxu1 %vm9498_vm0, %v12801_v11  ;;  %vm12874_vm0 = vnez %v12873_v37  ;;  %v1485_v37 = vld [vmem:[%s12604_s3] sm:$0xff] }
 0x263   :  { %9503 = vmatprep.subr.msk.bf16.mxu1 %vm9502_vm6, %v12801_v11 }
 0x265   :  { %8430 = vmatmul.mubr.msk.f32.gmra.mrb[24].mxu1 %vm12717_vm7, %v11443_v20 }
 0x266   :  { %8432 = vmatprep.mubr.msk.f32.mxu1 %vm12717_vm7, %v1325_v15  ;;  %9505 = vmatpush3.bf16.msk.msra.mxu1 %vm9502_vm6, %v12801_v11 }
 0x267   :  { %9507 = vmatprep.subr.msk.bf16.mxu1 %vm9506_vm11, %v12801_v11 }
 0x269   :  { %8433 = vmatmul.mubr.msk.f32.gmra.mrb[26].mxu1 %vm12717_vm7, %v1326_v5 }
 0x26a   :  { %9509 = vmatpush3.bf16.msk.msra.mxu1 %vm9506_vm11, %v12801_v11  ;;  %8479 = vmatprep.mubr.msk.f32.mxu1 %vm12717_vm7, %v11364_v41 }
 0x26b   :  { %9527 = vmatprep.subr.msk.bf16.mxu1 %vm12870_vm8, %v12801_v11 }
 0x26d   :  { %8480 = vmatmul.mubr.msk.f32.vlgmr.msra.gmra.mrb[28].mxu1 %vm12717_vm7, %v11354_v63 }
 0x26e   :  { %8482 = vmatprep.mubr.msk.f32.mxu1 %vm12717_vm7, %v11401_v60  ;;  %9529 = vmatpush3.bf16.msk.msra.mxu1 %vm12870_vm8, %v12801_v11 }
 0x26f   :  { %9531 = vmatprep.subr.msk.bf16.mxu1 %vm12872_vm3, %v12801_v11 }
 0x271   :  { %8483 = vmatmul.mubr.msk.f32.gmra.mrb[30].mxu1 %vm12717_vm7, %v11394_v29 }
 0x272   :  { %8485 = vmatprep.mubr.msk.f32.mxu1 %vm12717_vm7, %v1323_v43  ;;  %9533 = vmatpush3.bf16.msk.msra.mxu1 %vm12872_vm3, %v12801_v11 }
 0x273   :  { %9535 = vmatprep.subr.msk.bf16.mxu1 %vm12874_vm0, %v12801_v11 }
 0x275   :  { %8486 = vmatmul.mubr.msk.f32.gmra.mrb[32].mxu1 %vm12717_vm7, %v11443_v20 }
 0x276   :  { %8488 = vmatprep.mubr.msk.f32.mxu1 %vm12717_vm7, %v1325_v15  ;;  %9537 = vmatpush3.bf16.msk.msra.mxu1 %vm12874_vm0, %v12801_v11  ;;  %v6959_v15 = vld [vmem:[%s12604_s3 + $0x70] sm:$0xff] }
 0x277   :  { %9539 = vmatprep.subr.msk.bf16.mxu1 %vm12876_vm2, %v12801_v11 }
 0x279   :  { %8489 = vmatmul.mubr.msk.f32.gmra.mrb[34].mxu1 %vm12717_vm7, %v1326_v5 }
 0x27a   :  { %9541 = vmatpush3.bf16.msk.msra.mxu1 %vm12876_vm2, %v12801_v11  ;;  %vm12889_vm2 = vcmp.eq.s32.totalorder %v10151_v16, %v10127_v10 }
 0x27b   :  { %9543 = vmatprep.subr.msk.bf16.mxu1 %vm12878_vm1, %v12801_v11 }
 0x320   :  { %v8285_v45 = vpop.f32.mrb[12].mxu0  ;;  %v8313_v46 = vpop.f32.mrb[12].mxu1 }
 0x321   :  { %v1446_v51 = vpop.f32.mrb[13].mxu0  ;;  %v1586_v8 = vpop.f32.mrb[13].mxu1 }
 0x322   :  { %v9430_v17 = vpack.c.bf16 %v8285_v45, %v1446_v51  ;;  %v9414_v1 = vpack.c.bf16 %v8313_v46, %v1586_v8  ;;  %v1486_v45 = vld [vmem:[%s12604_s3 + $0x8] sm:$0xff]  ;;  %v1487_v51 = vld [vmem:[%s12604_s3 + $0x10] sm:$0xff] }
 0x324   :  { %v8288_v12 = vpop.f32.mrb[14].mxu0  ;;  %v8316_v27 = vpop.f32.mrb[14].mxu1  ;;  %9415 = vmatprep.subr.bf16.mxu0 %v9414_v1 }
 0x325   :  { %v1456_v54 = vpop.f32.mrb[15].mxu0  ;;  %v1596_v63 = vpop.f32.mrb[15].mxu1  ;;  %9417 = vmatpush3.bf16.msra.mxu0 %v9414_v1  ;;  %v1488_v1 = vld [vmem:[%s12604_s3 + $0x18] sm:$0xff] }
 0x326   :  { %v9434_v18 = vpack.c.bf16 %v8288_v12, %v1456_v54  ;;  %v9418_v23 = vpack.c.bf16 %v8316_v27, %v1596_v63  ;;  %v1489_v27 = vld [vmem:[%s12604_s3 + $0x20] sm:$0xff]  ;;  %v1490_v63 = vld [vmem:[%s12604_s3 + $0x28] sm:$0xff] }
 0x328   :  { %v8291_v40 = vpop.f32.mrb[16].mxu0  ;;  %v8319_v41 = vpop.f32.mrb[16].mxu1  ;;  %9419 = vmatprep.subr.bf16.mxu0 %v9418_v23 }
 0x329   :  { %v1466_v42 = vpop.f32.mrb[17].mxu0  ;;  %v1606_v49 = vpop.f32.mrb[17].mxu1  ;;  %9421 = vmatpush3.bf16.msra.mxu0 %v9418_v23  ;;  %v1491_v23 = vld [vmem:[%s12604_s3 + $0x30] sm:$0xff] }
 0x32a   :  { %v9438_v2 = vpack.c.bf16 %v8291_v40, %v1466_v42  ;;  %v9422_v21 = vpack.c.bf16 %v8319_v41, %v1606_v49  ;;  %v1492_v41 = vld [vmem:[%s12604_s3 + $0x38] sm:$0xff]  ;;  %v6977_v49 = vld [vmem:[%s12604_s3 + $0x80] sm:$0xff] }
 0x32c   :  { %v8294_v29 = vpop.f32.mrb[18].mxu0  ;;  %v8322_v53 = vpop.f32.mrb[18].mxu1  ;;  %9423 = vmatprep.subr.bf16.mxu0 %v9422_v21 }
 0x32d   :  { %v1476_v7 = vpop.f32.mrb[19].mxu0  ;;  %v1616_v28 = vpop.f32.mrb[19].mxu1  ;;  %9425 = vmatpush3.bf16.msra.mxu0 %v9422_v21  ;;  %v6981_v21 = vld [vmem:[%s12604_s3 + $0xa0] sm:$0xff] }
 0x32e   :  { %v9442_v60 = vpack.c.bf16 %v8294_v29, %v1476_v7  ;;  %v9426_v31 = vpack.c.bf16 %v8322_v53, %v1616_v28  ;;  %v6982_v29 = vld [vmem:[%s12604_s3 + $0xa8] sm:$0xff]  ;;  %v6983_v53 = vld [vmem:[%s12604_s3 + $0xb0] sm:$0xff]  ;;  %v6984_v7 = vld [vmem:[%s12604_s3 + $0xb8] sm:$0xff] }
 0x32f   :  { %v7009_v28 = vld [vmem:[%s12604_s3 + $0xc0] sm:$0xff] }
 0x330   :  { %9427 = vmatprep.subr.bf16.mxu0 %v9426_v31  ;;  %v8425_v34 = vpop.f32.mrb[20].mxu1 }
 0x331   :  { %9429 = vmatpush3.bf16.msra.mxu0 %v9426_v31  ;;  %v2131_v61 = vpop.f32.mrb[21].mxu1  ;;  %v7011_v31 = vld [vmem:[%s12604_s3 + $0xd0] sm:$0xff] }
 0x332   :  { %v11633_v20 = vpack.c.bf16 %v8425_v34, %v2131_v61  ;;  %9431 = vmatprep.subr.bf16.mxu0 %v9430_v17  ;;  %v7012_v34 = vld [vmem:[%s12604_s3 + $0xd8] sm:$0xff]  ;;  %v7013_v61 = vld [vmem:[%s12604_s3 + $0xe0] sm:$0xff] }
 0x334   :  { %8340 = vmatmul.mubr.msk.f32.vlgmr.msra.gmra.mrb[20].mxu0 %vm12717_vm7, %v6954_v0  ;;  %v8428_v6 = vpop.f32.mrb[22].mxu1  ;;  %v7014_v0 = vld [vmem:[%s12604_s3 + $0xe8] sm:$0xff] }
 0x335   :  { %9433 = vmatpush3.bf16.msra.mxu0 %v9430_v17  ;;  %v2141_v43 = vpop.f32.mrb[23].mxu1  ;;  %8342 = vmatprep.mubr.msk.f32.mxu0 %vm12717_vm7, %v6955_v32  ;;  %v7016_v32 = vld [vmem:[%s12604_s3 + $0xf8] sm:$0xff] }
 0x336   :  { %v11643_v30 = vpack.c.bf16 %v8428_v6, %v2141_v43  ;;  %9435 = vmatprep.subr.bf16.mxu0 %v9434_v18  ;;  %v7041_v6 = vld [vmem:[%s12604_s3 + $0x100] sm:$0xff]  ;;  %v7042_v43 = vld [vmem:[%s12604_s3 + $0x108] sm:$0xff] }
 0x338   :  { %8343 = vmatmul.mubr.msk.f32.gmra.mrb[22].mxu0 %vm12717_vm7, %v6956_v62  ;;  %v8431_v5 = vpop.f32.mrb[24].mxu1  ;;  %v7043_v62 = vld [vmem:[%s12604_s3 + $0x110] sm:$0xff] }
 0x339   :  { %9437 = vmatpush3.bf16.msra.mxu0 %v9434_v18  ;;  %v2151_v47 = vpop.f32.mrb[25].mxu1  ;;  %8345 = vmatprep.mubr.msk.f32.mxu0 %vm12717_vm7, %v6957_v13  ;;  %v7045_v13 = vld [vmem:[%s12604_s3 + $0x120] sm:$0xff] }
 0x33a   :  { %v11653_v57 = vpack.c.bf16 %v8431_v5, %v2151_v47  ;;  %9439 = vmatprep.subr.bf16.mxu0 %v9438_v2  ;;  %v7046_v5 = vld [vmem:[%s12604_s3 + $0x128] sm:$0xff]  ;;  %v7047_v47 = vld [vmem:[%s12604_s3 + $0x130] sm:$0xff] }
 0x33c   :  { %8346 = vmatmul.mubr.msk.f32.gmra.mrb[24].mxu0 %vm12717_vm7, %v6958_v36  ;;  %v8434_v22 = vpop.f32.mrb[26].mxu1  ;;  %v7048_v36 = vld [vmem:[%s12604_s3 + $0x138] sm:$0xff] }
 0x33d   :  { %9441 = vmatpush3.bf16.msra.mxu0 %v9438_v2  ;;  %v2161_v44 = vpop.f32.mrb[27].mxu1  ;;  %8348 = vmatprep.mubr.msk.f32.mxu0 %vm12717_vm7, %v6959_v15  ;;  %v6979_v2 = vld [vmem:[%s12604_s3 + $0x90] sm:$0xff]  ;;  %v2605_v15 = vpop.permute.xlu0 %2604 }
 0x33e   :  { %v11663_v58 = vpack.c.bf16 %v8434_v22, %v2161_v44  ;;  %9443 = vmatprep.subr.bf16.mxu0 %v9442_v60 }
 0x340   :  { %8349 = vmatmul.mubr.msk.f32.gmra.mrb[26].mxu0 %vm12717_vm7, %v6960_v33  ;;  %v8481_v26 = vpop.f32.mrb[28].mxu1 }
 0x341   :  { %9445 = vmatpush3.bf16.msra.mxu0 %v9442_v60  ;;  %v2409_v39 = vpop.f32.mrb[29].mxu1  ;;  %8367 = vmatprep.mubr.msk.f32.mxu0 %vm12717_vm7, %v1485_v37  ;;  %v7010_v60 = vld [vmem:[%s12604_s3 + $0xc8] sm:$0xff]  ;;  %v2615_v33 = vpop.permute.xlu0 %2614 }
 0x342   :  { %v9510_v46 = vpack.c.bf16 %v8481_v26, %v2409_v39  ;;  %9447 = vmatprep.subr.bf16.mxu0 %v11392_v56 }
 0x344   :  { %8368 = vmatmul.mubr.msk.f32.vlgmr.msra.gmra.mrb[20].mxu0 %vm12717_vm7, %v1486_v45  ;;  %v8484_v8 = vpop.f32.mrb[30].mxu1 }
 0x345   :  { %9449 = vmatpush3.bf16.msra.mxu0 %v11392_v56  ;;  %v2419_v17 = vpop.f32.mrb[31].mxu1  ;;  %8370 = vmatprep.mubr.msk.f32.mxu0 %vm12717_vm7, %v1487_v51 }
 0x346   :  { %v9514_v12 = vpack.c.bf16 %v8484_v8, %v2419_v17  ;;  %9451 = vmatprep.subr.bf16.mxu0 %v11441_v4 }
 0x348   :  { %8371 = vmatmul.mubr.msk.f32.gmra.mrb[22].mxu0 %vm12717_vm7, %v1488_v1  ;;  %v8487_v54 = vpop.f32.mrb[32].mxu1 }
 0x349   :  { %9453 = vmatpush3.bf16.msra.mxu0 %v11441_v4  ;;  %v2429_v56 = vpop.f32.mrb[33].mxu1  ;;  %8373 = vmatprep.mubr.msk.f32.mxu0 %vm12717_vm7, %v1489_v27 }
 0x34a   :  { %v9518_v18 = vpack.c.bf16 %v8487_v54, %v2429_v56  ;;  %9455 = vmatprep.subr.bf16.mxu0 %v11475_v59 }
 0x34c   :  { %8374 = vmatmul.mubr.msk.f32.gmra.mrb[24].mxu0 %vm12717_vm7, %v1490_v63  ;;  %v8490_v40 = vpop.f32.mrb[34].mxu1 }
 0x34d   :  { %9457 = vmatpush3.bf16.msra.mxu0 %v11475_v59  ;;  %v2439_v4 = vpop.f32.mrb[35].mxu1  ;;  %8376 = vmatprep.mubr.msk.f32.mxu0 %vm12717_vm7, %v1491_v23  ;;  %v6978_v59 = vld [vmem:[%s12604_s3 + $0x88] sm:$0xff] }
 0x34e   :  { %v9522_v42 = vpack.c.bf16 %v8490_v40, %v2439_v4  ;;  %9459 = vmatprep.subr.bf16.mxu0 %v11523_v38  ;;  %v12879_v23 = vld [vmem:[#allocation22_spill] sm:$0xff] }
 0x34f   :  { %vm12880_vm10 = vnez %v12879_v23 }
 0x350   :  { %8377 = vmatmul.mubr.msk.f32.gmra.mrb[26].mxu0 %vm12717_vm7, %v1492_v41 }
 0x351   :  { %9461 = vmatpush3.bf16.msra.mxu0 %v11523_v38  ;;  %8395 = vmatprep.mubr.msk.f32.mxu0 %vm12717_vm7, %v6977_v49  ;;  %v6980_v38 = vld [vmem:[%s12604_s3 + $0x98] sm:$0xff] }
 0x352   :  { %9479 = vmatprep.subr.bf16.mxu0 %v11633_v20 }
 0x354   :  { %8396 = vmatmul.mubr.msk.f32.vlgmr.msra.gmra.mrb[20].mxu0 %vm12717_vm7, %v6978_v59 }
 0x355   :  { %9481 = vmatpush3.bf16.msra.mxu0 %v11633_v20  ;;  %8398 = vmatprep.mubr.msk.f32.mxu0 %vm12717_vm7, %v6979_v2  ;;  %v7015_v20 = vld [vmem:[%s12604_s3 + $0xf0] sm:$0xff] }
 0x356   :  { %9483 = vmatprep.subr.bf16.mxu0 %v11643_v30 }
 0x358   :  { %8399 = vmatmul.mubr.msk.f32.gmra.mrb[22].mxu0 %vm12717_vm7, %v6980_v38 }
 0x359   :  { %9485 = vmatpush3.bf16.msra.mxu0 %v11643_v30  ;;  %8401 = vmatprep.mubr.msk.f32.mxu0 %vm12717_vm7, %v6981_v21  ;;  %v7044_v30 = vld [vmem:[%s12604_s3 + $0x118] sm:$0xff] }
 0x35a   :  { %9487 = vmatprep.subr.bf16.mxu0 %v11653_v57  ;;  %v12881_v21 = vld [vmem:[#allocation24_spill] sm:$0xff] }
 0x35b   :  { %vm12882_vm15 = vnez %v12881_v21 }
 0x35c   :  { %8402 = vmatmul.mubr.msk.f32.gmra.mrb[24].mxu0 %vm12717_vm7, %v6982_v29 }
 0x35d   :  { %9489 = vmatpush3.bf16.msra.mxu0 %v11653_v57  ;;  %8404 = vmatprep.mubr.msk.f32.mxu0 %vm12717_vm7, %v6983_v53  ;;  %v2610_v57 = vpop.permute.xlu1 %2609 }
 0x35e   :  { %9491 = vmatprep.subr.bf16.mxu0 %v11663_v58 }
 0x360   :  { %8405 = vmatmul.mubr.msk.f32.gmra.mrb[26].mxu0 %vm12717_vm7, %v6984_v7 }
 0x361   :  { %9493 = vmatpush3.bf16.msra.mxu0 %v11663_v58  ;;  %8451 = vmatprep.mubr.msk.f32.mxu0 %vm12717_vm7, %v7009_v28  ;;  %v2620_v22 = vpop.permute.xlu1 %2619  ;;  %v12883_v28 = vld [vmem:[#allocation26_spill] sm:$0xff] }
 0x362   :  { %9511 = vmatprep.subr.bf16.mxu0 %v9510_v46  ;;  %vm12884_vm6 = vnez %v12883_v28 }
 0x364   :  { %8452 = vmatmul.mubr.msk.f32.vlgmr.msra.gmra.mrb[20].mxu0 %vm12717_vm7, %v7010_v60  ;;  %v12885_v60 = vld [vmem:[#allocation9_spill] sm:$0xff] }
 0x365   :  { %9513 = vmatpush3.bf16.msra.mxu0 %v9510_v46  ;;  %8454 = vmatprep.mubr.msk.f32.mxu0 %vm12717_vm7, %v7011_v31  ;;  %v2630_v17 = vpop.permute.xlu1 %2629  ;;  %v2900_v31 = vand.u32 15, %v12885_v60 }
 0x366   :  { %9515 = vmatprep.subr.bf16.mxu0 %v9514_v12 }
 0x368   :  { %8455 = vmatmul.mubr.msk.f32.gmra.mrb[22].mxu0 %vm12717_vm7, %v7012_v34  ;;  %v3054_v34 = vadd.s32 4294967295, %v2900_v31 }
 0x369   :  { %9517 = vmatpush3.bf16.msra.mxu0 %v9514_v12  ;;  %8457 = vmatprep.mubr.msk.f32.mxu0 %vm12717_vm7, %v7013_v61  ;;  %v2625_v12 = vpop.permute.xlu0 %2624  ;;  %v2640_v4 = vpop.permute.xlu1 %2639  ;;  %v12886_v61 = vld [vmem:[#allocation12_spill] sm:$0xff] }
 0x36a   :  { %9519 = vmatprep.subr.bf16.mxu0 %v9518_v18  ;;  %vm3055_vm9 = vcmp.ge.s32.totalorder %v3054_v34, 0  ;;  %vm12887_vm5 = vnez %v12886_v61 }
 0x36b   :  { %vm3056_vm14 = vmand %vm12887_vm5, %vm3055_vm9 }
 0x36c   :  { %8458 = vmatmul.mubr.msk.f32.gmra.mrb[24].mxu0 %vm12717_vm7, %v7014_v0  ;;  %vm3057_vm11 = vmand %vm12888_vm4, %vm3055_vm9  ;;  %v2901_v0 = vadd.s32 4294967294, %v2900_v31 }
 0x36d   :  { %9521 = vmatpush3.bf16.msra.mxu0 %v9518_v18  ;;  %8460 = vmatprep.mubr.msk.f32.mxu0 %vm12717_vm7, %v7015_v20  ;;  %v2635_v49 = vpop.permute.xlu0 %2634  ;;  %vm9566_vm0 = vmpackc.low %vm3057_vm11, %vm3056_vm14  ;;  %v12891_v20 = vld [vmem:[#allocation11_spill] sm:$0xff]  ;;  %vm12893_vm14 = vcmp.eq.s32.totalorder %v12824_v52, %v10124_v9 }
 0x36e   :  { %9523 = vmatprep.subr.bf16.mxu0 %v9522_v42 }
 0x370   :  { %8461 = vmatmul.mubr.msk.f32.gmra.mrb[26].mxu0 %vm12717_vm7, %v7016_v32  ;;  %v3587_v32 = vadd.s32 1, %v2900_v31 }
 0x371   :  { %9525 = vmatpush3.bf16.msra.mxu0 %v9522_v42  ;;  %8507 = vmatprep.mubr.msk.f32.mxu0 %vm12717_vm7, %v7041_v6 }
 0x372   :  { %9567 = vmatprep.subr.msk.bf16.mxu0 %vm9566_vm0, %v12801_v11 }
 0x374   :  { %8508 = vmatmul.mubr.msk.f32.vlgmr.msra.gmra.mrb[20].mxu0 %vm12717_vm7, %v7042_v43 }
 0x375   :  { %8510 = vmatprep.mubr.msk.f32.mxu0 %vm12717_vm7, %v7043_v62  ;;  %9569 = vmatpush3.bf16.msk.msra.mxu0 %vm9566_vm0, %v12801_v11  ;;  %vm12894_vm0 = vcmp.eq.s32.totalorder %v10151_v16, %v10124_v9 }
 0x378   :  { %8511 = vmatmul.mubr.msk.f32.gmra.mrb[22].mxu0 %vm12717_vm7, %v7044_v30 }
 0x379   :  { %8513 = vmatprep.mubr.msk.f32.mxu0 %vm12717_vm7, %v7045_v13 }
 0x37c   :  { %8514 = vmatmul.mubr.msk.f32.gmra.mrb[24].mxu0 %vm12717_vm7, %v7046_v5 }
 0x37d   :  { %8516 = vmatprep.mubr.msk.f32.mxu0 %vm12717_vm7, %v7047_v47 }
 0x380   :  { %8517 = vmatmul.mubr.msk.f32.gmra.mrb[26].mxu0 %vm12717_vm7, %v7048_v36 }
 0x447   :  { %v8509_v44 = vpop.f32.mrb[20].mxu0 }
 0x448   :  { %v2643_v58 = vadd.f32 %v8509_v44, %v2610_v57  ;;  %v2547_v37 = vpop.f32.mrb[21].mxu0 }
 0x449   :  { %v2642_v26 = vadd.f32 %v2605_v15, %v2547_v37 }
 0x44a   :  { %v2651_v46 = vmax.f32 %v2643_v58, 0.0  ;;  %v7114_v58 = vld [vmem:[%s12606_s5 + $0x48] sm:$0xff] }
 0x44b   :  { %v2650_v39 = vmax.f32 %v2642_v26, 0.0  ;;  %v8512_v45 = vpop.f32.mrb[22].mxu0 }
 0x44c   :  { %v2645_v51 = vadd.f32 %v8512_v45, %v2620_v22  ;;  %v2557_v8 = vpop.f32.mrb[23].mxu0  ;;  %v3853_v22 = vadd.s32 2, %v2900_v31 }
 0x44d   :  { %v2644_v1 = vadd.f32 %v2615_v33, %v2557_v8  ;;  %8535 = vmatprep.mubr.msk.f32.mxu1 %vm12717_vm7, %v2650_v39 }
 0x44e   :  { %8536 = vmatmul.mubr.msk.f32.vlgmr.msra.gmra.mrb[36].mxu1 %vm12717_vm7, %v2651_v46  ;;  %v2653_v56 = vmax.f32 %v2645_v51, 0.0 }
 0x44f   :  { %v2652_v27 = vmax.f32 %v2644_v1, 0.0  ;;  %v8515_v54 = vpop.f32.mrb[24].mxu0  ;;  %9545 = vmatpush3.bf16.msk.msra.mxu1 %vm12878_vm1, %v12801_v11  ;;  %vm12892_vm1 = vnez %v12891_v20 }
 0x450   :  { %v2647_v63 = vadd.f32 %v8515_v54, %v2630_v17  ;;  %v2567_v18 = vpop.f32.mrb[25].mxu0  ;;  %9547 = vmatprep.subr.msk.bf16.mxu1 %vm12880_vm10, %v12801_v11 }
 0x451   :  { %v2646_v40 = vadd.f32 %v2625_v12, %v2567_v18  ;;  %8538 = vmatprep.mubr.msk.f32.mxu1 %vm12717_vm7, %v2652_v27 }
 0x452   :  { %8539 = vmatmul.mubr.msk.f32.gmra.mrb[38].mxu1 %vm12717_vm7, %v2653_v56  ;;  %v2655_v59 = vmax.f32 %v2647_v63, 0.0 }
 0x453   :  { %v2654_v41 = vmax.f32 %v2646_v40, 0.0  ;;  %v8518_v42 = vpop.f32.mrb[26].mxu0  ;;  %9549 = vmatpush3.bf16.msk.msra.mxu1 %vm12880_vm10, %v12801_v11  ;;  %vm2902_vm10 = vcmp.ge.s32.totalorder %v2901_v0, 0 }
 0x454   :  { %v2649_v2 = vadd.f32 %v8518_v42, %v2640_v4  ;;  %v2577_v38 = vpop.f32.mrb[27].mxu0  ;;  %9551 = vmatprep.subr.msk.bf16.mxu1 %vm12882_vm15, %v12801_v11  ;;  %vm2903_vm3 = vmand %vm12892_vm1, %vm2902_vm10 }
 0x455   :  { %v2648_v29 = vadd.f32 %v2635_v49, %v2577_v38  ;;  %8541 = vmatprep.mubr.msk.f32.mxu1 %vm12717_vm7, %v2654_v41  ;;  %vm2904_vm4 = vmand %vm12893_vm14, %vm2902_vm10 }
 0x456   :  { %8542 = vmatmul.mubr.msk.f32.gmra.mrb[40].mxu1 %vm12717_vm7, %v2655_v59  ;;  %v2657_v7 = vmax.f32 %v2649_v2, 0.0  ;;  %vm9558_vm11 = vmpackc.low %vm2904_vm4, %vm2903_vm3  ;;  %vm3593_vm3 = vcmp.lt.s32.totalorder %v3587_v32, 16  ;;  %vm12901_vm4 = vcmp.eq.s32.totalorder %v10151_v16, %v12825_v48 }
 0x457   :  { %v2656_v53 = vmax.f32 %v2648_v29, 0.0  ;;  %9553 = vmatpush3.bf16.msk.msra.mxu1 %vm12882_vm15, %v12801_v11  ;;  %vm3058_vm15 = vmand %vm12889_vm2, %vm3055_vm9 }
 0x458   :  { %9555 = vmatprep.subr.msk.bf16.mxu1 %vm12884_vm6, %v12801_v11 }
 0x459   :  { %8544 = vmatprep.mubr.msk.f32.mxu1 %vm12717_vm7, %v2656_v53 }
 0x45a   :  { %8545 = vmatmul.mubr.msk.f32.gmra.mrb[42].mxu1 %vm12717_vm7, %v2657_v7 }
 0x45b   :  { %9557 = vmatpush3.bf16.msk.msra.mxu1 %vm12884_vm6, %v12801_v11  ;;  %8563 = vmatprep.mubr.msk.f32.mxu1 %vm12717_vm7, %v2650_v39  ;;  %vm12890_vm6 = vcmp.eq.s32.totalorder %v10168_v19, %v10127_v10 }
 0x45c   :  { %9559 = vmatprep.subr.msk.bf16.mxu1 %vm9558_vm11, %v12801_v11 }
 0x45e   :  { %8564 = vmatmul.mubr.msk.f32.vlgmr.msra.gmra.mrb[44].mxu1 %vm12717_vm7, %v2651_v46  ;;  %v7116_v46 = vld [vmem:[%s12606_s5 + $0x58] sm:$0xff] }
 0x45f   :  { %8566 = vmatprep.mubr.msk.f32.mxu1 %vm12717_vm7, %v2652_v27  ;;  %9561 = vmatpush3.bf16.msk.msra.mxu1 %vm9558_vm11, %v12801_v11  ;;  %vm11907_vm11 = vmand %vm12901_vm4, %vm3593_vm3 }
 0x462   :  { %8567 = vmatmul.mubr.msk.f32.gmra.mrb[46].mxu1 %vm12717_vm7, %v2653_v56 }
 0x463   :  { %8569 = vmatprep.mubr.msk.f32.mxu1 %vm12717_vm7, %v2654_v41 }
 0x466   :  { %8570 = vmatmul.mubr.msk.f32.gmra.mrb[48].mxu1 %vm12717_vm7, %v2655_v59 }
 0x467   :  { %8572 = vmatprep.mubr.msk.f32.mxu1 %vm12717_vm7, %v2656_v53 }
 0x46a   :  { %8573 = vmatmul.mubr.msk.f32.gmra.mrb[50].mxu1 %vm12717_vm7, %v2657_v7  ;;  %vm3059_vm7 = vmand %vm12890_vm6, %vm3055_vm9  ;;  %vm12898_vm6 = vcmp.eq.s32.totalorder %v12824_v52, %v12825_v48 }
 0x46b   :  { %vm9570_vm5 = vmpackc.low %vm3059_vm7, %vm3058_vm15  ;;  %vm12895_vm7 = vcmp.eq.s32.totalorder %v10168_v19, %v10124_v9 }
 0x46c   :  { %9571 = vmatprep.subr.msk.bf16.mxu0 %vm9570_vm5, %v12801_v11  ;;  %vm2905_vm9 = vmand %vm12894_vm0, %vm2902_vm10  ;;  %vm12904_vm0 = vcmp.eq.s32.totalorder %v10168_v19, %v12825_v48 }
 0x46d   :  { %9573 = vmatpush3.bf16.msk.msra.mxu0 %vm9570_vm5, %v12801_v11  ;;  %vm2906_vm2 = vmand %vm12895_vm7, %vm2902_vm10  ;;  %vm2916_vm7 = vcmask 261120  }
 0x46e   :  { %vm9562_vm15 = vmpackc.low %vm2906_vm2, %vm2905_vm9  ;;  %vm3859_vm2 = vcmp.lt.s32.totalorder %v3853_v22, 16 }
 0x46f   :  { %9563 = vmatprep.subr.msk.bf16.mxu1 %vm9562_vm15, %v12801_v11  ;;  %vm11881_vm5 = vmand %vm12821_vm13, %vm3593_vm3 }
 0x470   :  { %9565 = vmatpush3.bf16.msk.msra.mxu1 %vm9562_vm15, %v12801_v11  ;;  %vm11889_vm14 = vmand %vm12898_vm6, %vm3593_vm3  ;;  %vm12909_vm6 = vcmp.eq.s32.totalorder %v12824_v52, %v12851_v55 }
 0x471   :  { %vm9622_vm10 = vmpackc.low %vm11889_vm14, %vm11881_vm5  ;;  %vm12912_vm5 = vcmp.eq.s32.totalorder %v10151_v16, %v12851_v55  ;;  %v7113_v16 = vld [vmem:[%s12606_s5 + $0x40] sm:$0xff] }
 0x472   :  { %9623 = vmatprep.subr.msk.bf16.mxu0 %vm9622_vm10, %v12801_v11  ;;  %vm11915_vm9 = vmand %vm12904_vm0, %vm3593_vm3 }
 0x473   :  { %vm9626_vm15 = vmpackc.low %vm11915_vm9, %vm11907_vm11 }
 0x474   :  { %vm11928_vm3 = vmand %vm12848_vm12, %vm3859_vm2 }
 0x475   :  { %vm11940_vm4 = vmand %vm12909_vm6, %vm3859_vm2 }
 0x476   :  { %vm9646_vm0 = vmpackc.low %vm11940_vm4, %vm11928_vm3  ;;  %vm12916_vm3 = vcmask 523264  }
 0x477   :  { %vm3862_vm14 = vmand %vm12912_vm5, %vm3859_vm2 }
 0x478   :  { %vm12917_vm6 = vmmov %vm12916_vm3 }
 0x479   :  { %vm12918_vm4 = vmmov %vm12916_vm3 }
 0x521   :  { %v8537_v62 = vpop.f32.mrb[36].mxu1 }
 0x522   :  { %v2748_v30 = vpop.f32.mrb[37].mxu1 }
 0x525   :  { %v8540_v13 = vpop.f32.mrb[38].mxu1 }
 0x526   :  { %v2758_v5 = vpop.f32.mrb[39].mxu1 }
 0x529   :  { %v8543_v47 = vpop.f32.mrb[40].mxu1 }
 0x52a   :  { %v2768_v36 = vpop.f32.mrb[41].mxu1 }
 0x52d   :  { %v8546_v57 = vpop.f32.mrb[42].mxu1 }
 0x52e   :  { %v2778_v15 = vpop.f32.mrb[43].mxu1 }
 0x531   :  { %v8565_v33 = vpop.f32.mrb[44].mxu1 }
 0x532   :  { %v2893_v37 = vmax.f32 %v8537_v62, %v8565_v33  ;;  %v2853_v26 = vpop.f32.mrb[45].mxu1 }
 0x533   :  { %v2892_v39 = vmax.f32 %v2748_v30, %v2853_v26  ;;  %v7115_v26 = vld [vmem:[%s12606_s5 + $0x50] sm:$0xff] }
 0x535   :  { %v8568_v45 = vpop.f32.mrb[46].mxu1  ;;  %8583 = vmatprep.mubr.msk.f32.mxu1 %vm2916_vm7, %v2892_v39  ;;  %8603 = vmatprep.mubr.msk.f32.mxu0 %vm2916_vm7, %v2892_v39  ;;  %v11932_v51 = vpack.c.bf16 %v2893_v37, %v2892_v39 }
 0x536   :  { %v2895_v8 = vmax.f32 %v8540_v13, %v8568_v45  ;;  %v2863_v17 = vpop.f32.mrb[47].mxu1  ;;  %8584 = vmatmul.mubr.msk.f32.vlgmr.msra.gmra.mrb[52].mxu1 %vm2916_vm7, %v2893_v37  ;;  %8604 = vmatmul.mubr.msk.f32.vlgmr.msra.gmra.mrb[28].mxu0 %vm2916_vm7, %v2893_v37 }
 0x537   :  { %v2894_v12 = vmax.f32 %v2758_v5, %v2863_v17  ;;  %9625 = vmatpush3.bf16.msk.msra.mxu0 %vm9622_vm10, %v12801_v11  ;;  %vm12913_vm10 = vcmp.eq.s32.totalorder %v10168_v19, %v12851_v55  ;;  %v7117_v17 = vld [vmem:[%s12606_s5 + $0x60] sm:$0xff] }
 0x538   :  { %9627 = vmatprep.subr.msk.bf16.mxu0 %vm9626_vm15, %v12801_v11  ;;  %vm3863_vm11 = vmand %vm12913_vm10, %vm3859_vm2  ;;  %vm12914_vm2 = vnez %v12871_v25 }
 0x539   :  { %v8571_v27 = vpop.f32.mrb[48].mxu1  ;;  %8586 = vmatprep.mubr.msk.f32.mxu1 %vm2916_vm7, %v2894_v12  ;;  %8606 = vmatprep.mubr.msk.f32.mxu0 %vm2916_vm7, %v2894_v12  ;;  %v11962_v54 = vpack.c.bf16 %v2895_v8, %v2894_v12  ;;  %vm9650_vm9 = vmpackc.low %vm3863_vm11, %vm3862_vm14 }
 0x53a   :  { %v2897_v56 = vmax.f32 %v8543_v47, %v8571_v27  ;;  %v2873_v63 = vpop.f32.mrb[49].mxu1  ;;  %8587 = vmatmul.mubr.msk.f32.gmra.mrb[54].mxu1 %vm2916_vm7, %v2895_v8  ;;  %8607 = vmatmul.mubr.msk.f32.gmra.mrb[30].mxu0 %vm2916_vm7, %v2895_v8  ;;  %v7118_v27 = vld [vmem:[%s12606_s5 + $0x68] sm:$0xff] }
 0x53b   :  { %v2896_v18 = vmax.f32 %v2768_v36, %v2873_v63  ;;  %9629 = vmatpush3.bf16.msk.msra.mxu0 %vm9626_vm15, %v12801_v11  ;;  %vm12915_vm15 = vnez %v12877_v35  ;;  %v7119_v63 = vld [vmem:[%s12606_s5 + $0x70] sm:$0xff] }
 0x53c   :  { %9647 = vmatprep.subr.msk.bf16.mxu0 %vm9646_vm0, %v12801_v11 }
 0x53d   :  { %v8574_v40 = vpop.f32.mrb[50].mxu1  ;;  %8589 = vmatprep.mubr.msk.f32.mxu1 %vm2916_vm7, %v2896_v18  ;;  %8609 = vmatprep.mubr.msk.f32.mxu0 %vm2916_vm7, %v2896_v18  ;;  %v11980_v4 = vpack.c.bf16 %v2897_v56, %v2896_v18 }
 0x53e   :  { %v2899_v41 = vmax.f32 %v8546_v57, %v8574_v40  ;;  %v2883_v42 = vpop.f32.mrb[51].mxu1  ;;  %8590 = vmatmul.mubr.msk.f32.gmra.mrb[56].mxu1 %vm2916_vm7, %v2897_v56  ;;  %8610 = vmatmul.mubr.msk.f32.gmra.mrb[32].mxu0 %vm2916_vm7, %v2897_v56 }
 0x53f   :  { %v2898_v49 = vmax.f32 %v2778_v15, %v2883_v42 }
 0x541   :  { %8592 = vmatprep.mubr.msk.f32.mxu1 %vm2916_vm7, %v2898_v49  ;;  %8612 = vmatprep.mubr.msk.f32.mxu0 %vm2916_vm7, %v2898_v49  ;;  %v11990_v59 = vpack.c.bf16 %v2899_v41, %v2898_v49 }
 0x542   :  { %8593 = vmatmul.mubr.msk.f32.gmra.mrb[58].mxu1 %vm2916_vm7, %v2899_v41  ;;  %8613 = vmatmul.mubr.msk.f32.gmra.mrb[34].mxu0 %vm2916_vm7, %v2899_v41 }
 0x543   :  { %8707 = vmatprep.mubr.msk.f32.mxu0 %vm2916_vm7, %v2892_v39  ;;  %8631 = vmatprep.mubr.msk.f32.mxu1 %vm12916_vm3, %v7113_v16 }
 0x546   :  { %8708 = vmatmul.mubr.msk.f32.vlgmr.msra.gmra.mrb[36].mxu0 %vm2916_vm7, %v2893_v37 }
 0x547   :  { %8710 = vmatprep.mubr.msk.f32.mxu0 %vm2916_vm7, %v2894_v12  ;;  %9649 = vmatpush3.bf16.msk.msra.mxu0 %vm9646_vm0, %v12801_v11  ;;  %vm12919_vm0 = vmmov %vm12916_vm3 }
 0x548   :  { %9651 = vmatprep.subr.msk.bf16.mxu0 %vm9650_vm9, %v12801_v11  ;;  %vm12920_vm5 = vmmov %vm12919_vm0 }
 0x549   :  { %vm12921_vm14 = vmmov %vm12919_vm0 }
 0x54a   :  { %8711 = vmatmul.mubr.msk.f32.gmra.mrb[38].mxu0 %vm2916_vm7, %v2895_v8  ;;  %vm12922_vm10 = vmmov %vm12919_vm0 }
 0x54b   :  { %8713 = vmatprep.mubr.msk.f32.mxu0 %vm2916_vm7, %v2896_v18  ;;  %9653 = vmatpush3.bf16.msk.msra.mxu0 %vm9650_vm9, %v12801_v11  ;;  %vm12923_vm11 = vmmov %vm12919_vm0 }
 0x54c   :  { %9671 = vmatprep.subr.msk.bf16.mxu0 %vm12870_vm8, %v12801_v11  ;;  %vm12924_vm9 = vmmov %vm12919_vm0 }
 0x54d   :  { %vm12926_vm3 = vmmov %vm12919_vm0 }
 0x54e   :  { %8714 = vmatmul.mubr.msk.f32.gmra.mrb[40].mxu0 %vm2916_vm7, %v2897_v56 }
 0x54f   :  { %8716 = vmatprep.mubr.msk.f32.mxu0 %vm2916_vm7, %v2898_v49 }
 0x552   :  { %8717 = vmatmul.mubr.msk.f32.gmra.mrb[42].mxu0 %vm2916_vm7, %v2899_v41 }
 0x553   :  { %8755 = vmatprep.mubr.msk.f32.mxu0 %vm2916_vm7, %v2892_v39 }
 0x556   :  { %8756 = vmatmul.mubr.msk.f32.vlgmr.msra.gmra.mrb[44].mxu0 %vm2916_vm7, %v2893_v37 }
 0x557   :  { %8758 = vmatprep.mubr.msk.f32.mxu0 %vm2916_vm7, %v2894_v12  ;;  %9673 = vmatpush3.bf16.msk.msra.mxu0 %vm12870_vm8, %v12801_v11 }
 0x558   :  { %9675 = vmatprep.subr.msk.bf16.mxu0 %vm12914_vm2, %v12801_v11 }
 0x55a   :  { %8759 = vmatmul.mubr.msk.f32.gmra.mrb[46].mxu0 %vm2916_vm7, %v2895_v8 }
 0x55b   :  { %8761 = vmatprep.mubr.msk.f32.mxu0 %vm2916_vm7, %v2896_v18  ;;  %9677 = vmatpush3.bf16.msk.msra.mxu0 %vm12914_vm2, %v12801_v11  ;;  %vm12925_vm2 = vmmov %vm12919_vm0 }
 0x55c   :  { %9679 = vmatprep.subr.msk.bf16.mxu0 %vm12915_vm15, %v12801_v11 }
 0x55e   :  { %8762 = vmatmul.mubr.msk.f32.gmra.mrb[48].mxu0 %vm2916_vm7, %v2897_v56 }
 0x55f   :  { %8764 = vmatprep.mubr.msk.f32.mxu0 %vm2916_vm7, %v2898_v49  ;;  %v3046_v49 = vld [vmem:[%s12606_s5] sm:$0xff] }
 0x562   :  { %8765 = vmatmul.mubr.msk.f32.gmra.mrb[50].mxu0 %vm2916_vm7, %v2899_v41  ;;  %v7120_v41 = vld [vmem:[%s12606_s5 + $0x78] sm:$0xff] }
 0x609   :  { %v8585_v19 = vpop.f32.mrb[52].mxu1  ;;  %v8605_v2 = vpop.f32.mrb[28].mxu0 }
 0x60a   :  { %v3007_v25 = vpop.f32.mrb[53].mxu1  ;;  %v3135_v38 = vpop.f32.mrb[29].mxu0 }
 0x60b   :  { %v9590_v21 = vpack.c.bf16 %v8585_v19, %v3007_v25  ;;  %v9574_v29 = vpack.c.bf16 %v8605_v2, %v3135_v38  ;;  %v3047_v2 = vld [vmem:[%s12606_s5 + $0x8] sm:$0xff]  ;;  %v3048_v38 = vld [vmem:[%s12606_s5 + $0x10] sm:$0xff] }
 0x60d   :  { %v8588_v53 = vpop.f32.mrb[54].mxu1  ;;  %v8608_v7 = vpop.f32.mrb[30].mxu0  ;;  %9575 = vmatprep.subr.bf16.mxu1 %v9574_v29 }
 0x60e   :  { %v3017_v28 = vpop.f32.mrb[55].mxu1  ;;  %v3145_v31 = vpop.f32.mrb[31].mxu0  ;;  %9577 = vmatpush3.bf16.msra.mxu1 %v9574_v29 }
 0x60f   :  { %v9594_v34 = vpack.c.bf16 %v8588_v53, %v3017_v28  ;;  %v9578_v0 = vpack.c.bf16 %v8608_v7, %v3145_v31  ;;  %v3049_v53 = vld [vmem:[%s12606_s5 + $0x18] sm:$0xff]  ;;  %v3050_v28 = vld [vmem:[%s12606_s5 + $0x20] sm:$0xff] }
 0x611   :  { %v8591_v32 = vpop.f32.mrb[56].mxu1  ;;  %v8611_v6 = vpop.f32.mrb[32].mxu0  ;;  %9579 = vmatprep.subr.bf16.mxu1 %v9578_v0 }
 0x612   :  { %v3027_v43 = vpop.f32.mrb[57].mxu1  ;;  %v3155_v62 = vpop.f32.mrb[33].mxu0  ;;  %9581 = vmatpush3.bf16.msra.mxu1 %v9578_v0 }
 0x613   :  { %v9598_v30 = vpack.c.bf16 %v8591_v32, %v3027_v43  ;;  %v9582_v13 = vpack.c.bf16 %v8611_v6, %v3155_v62  ;;  %v3052_v32 = vld [vmem:[%s12606_s5 + $0x30] sm:$0xff]  ;;  %v3053_v43 = vld [vmem:[%s12606_s5 + $0x38] sm:$0xff] }
 0x615   :  { %v8594_v5 = vpop.f32.mrb[58].mxu1  ;;  %v8614_v47 = vpop.f32.mrb[34].mxu0  ;;  %9583 = vmatprep.subr.bf16.mxu1 %v9582_v13 }
 0x616   :  { %v3037_v36 = vpop.f32.mrb[59].mxu1  ;;  %v3165_v57 = vpop.f32.mrb[35].mxu0  ;;  %9585 = vmatpush3.bf16.msra.mxu1 %v9582_v13  ;;  %v7139_v13 = vld [vmem:[%s12606_s5 + $0x90] sm:$0xff] }
 0x617   :  { %v9602_v15 = vpack.c.bf16 %v8594_v5, %v3037_v36  ;;  %v9586_v22 = vpack.c.bf16 %v8614_v47, %v3165_v57  ;;  %v7141_v5 = vld [vmem:[%s12606_s5 + $0xa0] sm:$0xff]  ;;  %v7142_v47 = vld [vmem:[%s12606_s5 + $0xa8] sm:$0xff]  ;;  %v7143_v36 = vld [vmem:[%s12606_s5 + $0xb0] sm:$0xff] }
 0x618   :  { %v7144_v57 = vld [vmem:[%s12606_s5 + $0xb8] sm:$0xff] }
 0x619   :  { %9587 = vmatprep.subr.bf16.mxu1 %v9586_v22  ;;  %v8709_v44 = vpop.f32.mrb[36].mxu0 }
 0x61a   :  { %9589 = vmatpush3.bf16.msra.mxu1 %v9586_v22  ;;  %v3668_v33 = vpop.f32.mrb[37].mxu0  ;;  %v7166_v22 = vld [vmem:[%s12606_s5 + $0xc8] sm:$0xff] }
 0x61b   :  { %v12044_v37 = vpack.c.bf16 %v8709_v44, %v3668_v33  ;;  %9591 = vmatprep.subr.bf16.mxu1 %v9590_v21  ;;  %v7167_v44 = vld [vmem:[%s12606_s5 + $0xd0] sm:$0xff]  ;;  %v7168_v33 = vld [vmem:[%s12606_s5 + $0xd8] sm:$0xff] }
 0x61d   :  { %8632 = vmatmul.mubr.msk.f32.vlgmr.msra.gmra.mrb[60].mxu1 %vm12917_vm6, %v7114_v58  ;;  %v8712_v39 = vpop.f32.mrb[38].mxu0  ;;  %vm12927_vm6 = vmmov %vm12919_vm0  ;;  %v7169_v58 = vld [vmem:[%s12606_s5 + $0xe0] sm:$0xff] }
 0x61e   :  { %9593 = vmatpush3.bf16.msra.mxu1 %v9590_v21  ;;  %v3678_v45 = vpop.f32.mrb[39].mxu0  ;;  %8634 = vmatprep.mubr.msk.f32.mxu1 %vm12918_vm4, %v7115_v26  ;;  %vm12928_vm4 = vmmov %vm12919_vm0  ;;  %v7171_v26 = vld [vmem:[%s12606_s5 + $0xf0] sm:$0xff] }
 0x61f   :  { %v12054_v8 = vpack.c.bf16 %v8712_v39, %v3678_v45  ;;  %9595 = vmatprep.subr.bf16.mxu1 %v9594_v34  ;;  %v7172_v39 = vld [vmem:[%s12606_s5 + $0xf8] sm:$0xff]  ;;  %v7193_v45 = vld [vmem:[%s12606_s5 + $0x100] sm:$0xff] }
 0x621   :  { %8635 = vmatmul.mubr.msk.f32.gmra.mrb[62].mxu1 %vm12919_vm0, %v7116_v46  ;;  %v8715_v1 = vpop.f32.mrb[40].mxu0  ;;  %v7194_v46 = vld [vmem:[%s12606_s5 + $0x108] sm:$0xff] }
 0x622   :  { %9597 = vmatpush3.bf16.msra.mxu1 %v9594_v34  ;;  %v3688_v12 = vpop.f32.mrb[41].mxu0  ;;  %8637 = vmatprep.mubr.msk.f32.mxu1 %vm12920_vm5, %v7117_v17  ;;  %v3051_v34 = vld [vmem:[%s12606_s5 + $0x28] sm:$0xff]  ;;  %vm12929_vm5 = vmmov %vm12919_vm0  ;;  %v7196_v17 = vld [vmem:[%s12606_s5 + $0x118] sm:$0xff] }
 0x623   :  { %v12064_v56 = vpack.c.bf16 %v8715_v1, %v3688_v12  ;;  %9599 = vmatprep.subr.bf16.mxu1 %v9598_v30  ;;  %v7197_v1 = vld [vmem:[%s12606_s5 + $0x120] sm:$0xff]  ;;  %v7198_v12 = vld [vmem:[%s12606_s5 + $0x128] sm:$0xff] }
 0x625   :  { %8638 = vmatmul.mubr.msk.f32.gmra.mrb[64].mxu1 %vm12921_vm14, %v7118_v27  ;;  %v8718_v18 = vpop.f32.mrb[42].mxu0  ;;  %vm12930_vm14 = vmmov %vm12919_vm0  ;;  %v7199_v27 = vld [vmem:[%s12606_s5 + $0x130] sm:$0xff] }
 0x626   :  { %9601 = vmatpush3.bf16.msra.mxu1 %v9598_v30  ;;  %v3698_v40 = vpop.f32.mrb[43].mxu0  ;;  %8640 = vmatprep.mubr.msk.f32.mxu1 %vm12922_vm10, %v7119_v63  ;;  %v7137_v30 = vld [vmem:[%s12606_s5 + $0x80] sm:$0xff]  ;;  %vm12931_vm10 = vmmov %vm12919_vm0  ;;  %v4135_v63 = vpop.permute.xlu1 %4134 }
 0x627   :  { %v12074_v42 = vpack.c.bf16 %v8718_v18, %v3698_v40  ;;  %9603 = vmatprep.subr.bf16.mxu1 %v9602_v15  ;;  %v4130_v18 = vpop.permute.xlu0 %4129 }
 0x629   :  { %8641 = vmatmul.mubr.msk.f32.gmra.mrb[66].mxu1 %vm12923_vm11, %v7120_v41  ;;  %v8757_v16 = vpop.f32.mrb[44].mxu0  ;;  %vm12932_vm11 = vmmov %vm12919_vm0 }
 0x62a   :  { %9605 = vmatpush3.bf16.msra.mxu1 %v9602_v15  ;;  %v3934_v19 = vpop.f32.mrb[45].mxu0  ;;  %8659 = vmatprep.mubr.msk.f32.mxu1 %vm12924_vm9, %v3046_v49  ;;  %vm12933_vm9 = vmmov %vm12919_vm0  ;;  %v7165_v15 = vld [vmem:[%s12606_s5 + $0xc0] sm:$0xff]  ;;  %v4145_v40 = vpop.permute.xlu1 %4144 }
 0x62b   :  { %v9654_v25 = vpack.c.bf16 %v8757_v16, %v3934_v19  ;;  %9607 = vmatprep.subr.bf16.mxu1 %v11932_v51 }
 0x62d   :  { %8660 = vmatmul.mubr.msk.f32.vlgmr.msra.gmra.mrb[60].mxu1 %vm12925_vm2, %v3047_v2  ;;  %v8760_v21 = vpop.f32.mrb[46].mxu0  ;;  %vm12934_vm2 = vmmov %vm12919_vm0 }
 0x62e   :  { %9609 = vmatpush3.bf16.msra.mxu1 %v11932_v51  ;;  %v3944_v29 = vpop.f32.mrb[47].mxu0  ;;  %8662 = vmatprep.mubr.msk.f32.mxu1 %vm12926_vm3, %v3048_v38  ;;  %vm12935_vm3 = vmmov %vm12919_vm0 }
 0x62f   :  { %v9658_v7 = vpack.c.bf16 %v8760_v21, %v3944_v29  ;;  %9611 = vmatprep.subr.bf16.mxu1 %v11962_v54 }
 0x631   :  { %8663 = vmatmul.mubr.msk.f32.gmra.mrb[62].mxu1 %vm12927_vm6, %v3049_v53  ;;  %v8763_v31 = vpop.f32.mrb[48].mxu0  ;;  %vm12936_vm6 = vmmov %vm12919_vm0  ;;  %v4155_v53 = vpop.permute.xlu1 %4154 }
 0x632   :  { %9613 = vmatpush3.bf16.msra.mxu1 %v11962_v54  ;;  %v3954_v51 = vpop.f32.mrb[49].mxu0  ;;  %8665 = vmatprep.mubr.msk.f32.mxu1 %vm12928_vm4, %v3050_v28  ;;  %vm12937_vm4 = vmmov %vm12919_vm0 }
 0x633   :  { %v9662_v0 = vpack.c.bf16 %v8763_v31, %v3954_v51  ;;  %9615 = vmatprep.subr.bf16.mxu1 %v11980_v4 }
 0x635   :  { %8666 = vmatmul.mubr.msk.f32.gmra.mrb[64].mxu1 %vm12919_vm0, %v3051_v34  ;;  %v8766_v6 = vpop.f32.mrb[50].mxu0 }
 0x636   :  { %9617 = vmatpush3.bf16.msra.mxu1 %v11980_v4  ;;  %v3964_v54 = vpop.f32.mrb[51].mxu0  ;;  %8668 = vmatprep.mubr.msk.f32.mxu1 %vm12929_vm5, %v3052_v32  ;;  %v7138_v4 = vld [vmem:[%s12606_s5 + $0x88] sm:$0xff]  ;;  %vm12938_vm5 = vmmov %vm12919_vm0 }
 0x637   :  { %v9666_v62 = vpack.c.bf16 %v8766_v6, %v3964_v54  ;;  %9619 = vmatprep.subr.bf16.mxu1 %v11990_v59  ;;  %v4165_v54 = vpop.permute.xlu1 %4164 }
 0x639   :  { %8669 = vmatmul.mubr.msk.f32.gmra.mrb[66].mxu1 %vm12930_vm14, %v3053_v43  ;;  %vm12939_vm14 = vmmov %vm12919_vm0 }
 0x63a   :  { %9621 = vmatpush3.bf16.msra.mxu1 %v11990_v59  ;;  %8687 = vmatprep.mubr.msk.f32.mxu1 %vm12931_vm10, %v7137_v30  ;;  %v7140_v59 = vld [vmem:[%s12606_s5 + $0x98] sm:$0xff]  ;;  %vm12940_vm10 = vmmov %vm12919_vm0 }
 0x63b   :  { %9631 = vmatprep.subr.bf16.mxu1 %v12044_v37 }
 0x63d   :  { %8688 = vmatmul.mubr.msk.f32.vlgmr.msra.gmra.mrb[60].mxu1 %vm12932_vm11, %v7138_v4  ;;  %vm12941_vm11 = vmmov %vm12919_vm0 }
 0x63e   :  { %9633 = vmatpush3.bf16.msra.mxu1 %v12044_v37  ;;  %8690 = vmatprep.mubr.msk.f32.mxu1 %vm12933_vm9, %v7139_v13  ;;  %vm12942_vm9 = vmmov %vm12919_vm0  ;;  %v7170_v37 = vld [vmem:[%s12606_s5 + $0xe8] sm:$0xff] }
 0x63f   :  { %9635 = vmatprep.subr.bf16.mxu1 %v12054_v8 }
 0x641   :  { %8691 = vmatmul.mubr.msk.f32.gmra.mrb[62].mxu1 %vm12934_vm2, %v7140_v59  ;;  %vm12943_vm2 = vmmov %vm12919_vm0 }
 0x642   :  { %9637 = vmatpush3.bf16.msra.mxu1 %v12054_v8  ;;  %8693 = vmatprep.mubr.msk.f32.mxu1 %vm12935_vm3, %v7141_v5  ;;  %vm12944_vm3 = vmmov %vm12919_vm0  ;;  %v7195_v8 = vld [vmem:[%s12606_s5 + $0x110] sm:$0xff] }
 0x643   :  { %9639 = vmatprep.subr.bf16.mxu1 %v12064_v56 }
 0x645   :  { %8694 = vmatmul.mubr.msk.f32.gmra.mrb[64].mxu1 %vm12936_vm6, %v7142_v47  ;;  %vm12945_vm6 = vmmov %vm12919_vm0 }
 0x646   :  { %9641 = vmatpush3.bf16.msra.mxu1 %v12064_v56  ;;  %8696 = vmatprep.mubr.msk.f32.mxu1 %vm12937_vm4, %v7143_v36  ;;  %vm12946_vm4 = vmmov %vm12919_vm0  ;;  %v7200_v56 = vld [vmem:[%s12606_s5 + $0x138] sm:$0xff] }
 0x647   :  { %9643 = vmatprep.subr.bf16.mxu1 %v12074_v42 }
 0x649   :  { %8697 = vmatmul.mubr.msk.f32.gmra.mrb[66].mxu1 %vm12919_vm0, %v7144_v57 }
 0x64a   :  { %9645 = vmatpush3.bf16.msra.mxu1 %v12074_v42  ;;  %8735 = vmatprep.mubr.msk.f32.mxu1 %vm12938_vm5, %v7165_v15  ;;  %vm12947_vm5 = vmmov %vm12919_vm0  ;;  %v4140_v42 = vpop.permute.xlu0 %4139 }
 0x64b   :  { %9655 = vmatprep.subr.bf16.mxu1 %v9654_v25 }
 0x64d   :  { %8736 = vmatmul.mubr.msk.f32.vlgmr.msra.gmra.mrb[60].mxu1 %vm12939_vm14, %v7166_v22  ;;  %vm12948_vm14 = vmmov %vm12919_vm0 }
 0x64e   :  { %9657 = vmatpush3.bf16.msra.mxu1 %v9654_v25  ;;  %8738 = vmatprep.mubr.msk.f32.mxu1 %vm12940_vm10, %v7167_v44  ;;  %vm12949_vm10 = vmmov %vm12919_vm0  ;;  %v4150_v28 = vpop.permute.xlu0 %4149 }
 0x64f   :  { %9659 = vmatprep.subr.bf16.mxu1 %v9658_v7 }
 0x651   :  { %8739 = vmatmul.mubr.msk.f32.gmra.mrb[62].mxu1 %vm12941_vm11, %v7168_v33  ;;  %vm12950_vm11 = vmmov %vm12919_vm0 }
 0x652   :  { %9661 = vmatpush3.bf16.msra.mxu1 %v9658_v7  ;;  %8741 = vmatprep.mubr.msk.f32.mxu1 %vm12942_vm9, %v7169_v58  ;;  %vm12951_vm9 = vmmov %vm12919_vm0  ;;  %v4160_v30 = vpop.permute.xlu0 %4159 }
 0x653   :  { %9663 = vmatprep.subr.bf16.mxu1 %v9662_v0 }
 0x655   :  { %8742 = vmatmul.mubr.msk.f32.gmra.mrb[64].mxu1 %vm12943_vm2, %v7170_v37  ;;  %vm12952_vm2 = vmmov %vm12919_vm0 }
 0x656   :  { %9665 = vmatpush3.bf16.msra.mxu1 %v9662_v0  ;;  %8744 = vmatprep.mubr.msk.f32.mxu1 %vm12944_vm3, %v7171_v26  ;;  %vm12953_vm3 = vnez %v12879_v23  ;;  %v4425_v23 = vand.u32 7, %v12885_v60 }
 0x657   :  { %9667 = vmatprep.subr.bf16.mxu1 %v9666_v62 }
 0x658   :  { %v4573_v57 = vadd.s32 4294967295, %v4425_v23  ;;  %v4426_v15 = vadd.s32 4294967294, %v4425_v23 }
 0x659   :  { %8745 = vmatmul.mubr.msk.f32.gmra.mrb[66].mxu1 %vm12945_vm6, %v7172_v39  ;;  %v5360_v39 = vadd.s32 2, %v4425_v23 }
 0x65a   :  { %9669 = vmatpush3.bf16.msra.mxu1 %v9666_v62  ;;  %8783 = vmatprep.mubr.msk.f32.mxu1 %vm12946_vm4, %v7193_v45  ;;  %vm4574_vm6 = vcmp.ge.s32.totalorder %v4573_v57, 0  ;;  %vm12954_vm4 = vnez %v12886_v61 }
 0x65d   :  { %8784 = vmatmul.mubr.msk.f32.vlgmr.msra.gmra.mrb[60].mxu1 %vm12919_vm0, %v7194_v46  ;;  %vm4575_vm0 = vmand %vm12954_vm4, %vm4574_vm6 }
 0x65e   :  { %8786 = vmatprep.mubr.msk.f32.mxu1 %vm12947_vm5, %v7195_v8  ;;  %vm12955_vm5 = vcmp.eq.s32.totalorder %v12824_v52, %v10127_v10  ;;  %v5100_v10 = vadd.s32 1, %v4425_v23 }
 0x661   :  { %8787 = vmatmul.mubr.msk.f32.gmra.mrb[62].mxu1 %vm12948_vm14, %v7196_v17  ;;  %vm4576_vm14 = vmand %vm12955_vm5, %vm4574_vm6  ;;  %vm5104_vm6 = vcmp.lt.s32.totalorder %v5100_v10, 8  ;;  %vm12959_vm5 = vcmp.eq.s32.totalorder %v12824_v52, %v12825_v48 }
 0x662   :  { %8789 = vmatprep.mubr.msk.f32.mxu1 %vm12949_vm10, %v7197_v1  ;;  %vm9690_vm10 = vmpackc.low %vm4576_vm14, %vm4575_vm0 }
 0x663   :  { %9691 = vmatprep.subr.msk.bf16.mxu1 %vm9690_vm10, %v12801_v11  ;;  %vm12263_vm0 = vmand %vm12821_vm13, %vm5104_vm6 }
 0x664   :  { %9693 = vmatpush3.bf16.msk.msra.mxu1 %vm9690_vm10, %v12801_v11  ;;  %vm12270_vm14 = vmand %vm12959_vm5, %vm5104_vm6 }
 0x665   :  { %8790 = vmatmul.mubr.msk.f32.gmra.mrb[64].mxu1 %vm12950_vm11, %v7198_v12  ;;  %vm4427_vm11 = vcmp.ge.s32.totalorder %v4426_v15, 0  ;;  %vm9742_vm10 = vmpackc.low %vm12270_vm14, %vm12263_vm0  ;;  %vm12967_vm0 = vcmask 523264  }
 0x666   :  { %8792 = vmatprep.mubr.msk.f32.mxu1 %vm12951_vm9, %v7199_v27  ;;  %vm12956_vm9 = vcmp.eq.s32.totalorder %v12824_v52, %v10124_v9  ;;  %9743 = vmatprep.subr.msk.bf16.mxu1 %vm9742_vm10, %v12801_v11  ;;  %vm12969_vm5 = vmmov %vm12967_vm0 }
 0x667   :  { %vm12970_vm14 = vmmov %vm12967_vm0 }
 0x669   :  { %8793 = vmatmul.mubr.msk.f32.gmra.mrb[66].mxu1 %vm12952_vm2, %v7200_v56  ;;  %vm4429_vm2 = vmand %vm12956_vm9, %vm4427_vm11  ;;  %vm4435_vm9 = vcmask 130048  }
 0x730   :  { %v8785_v41 = vpop.f32.mrb[60].mxu1 }
 0x731   :  { %v4168_v49 = vadd.f32 %v8785_v41, %v4135_v63  ;;  %v4072_v16 = vpop.f32.mrb[61].mxu1 }
 0x732   :  { %v4167_v19 = vadd.f32 %v4130_v18, %v4072_v16 }
 0x733   :  { %v4176_v38 = vmax.f32 %v4168_v49, 0.0 }
 0x734   :  { %v4175_v2 = vmax.f32 %v4167_v19, 0.0  ;;  %v8788_v25 = vpop.f32.mrb[62].mxu1 }
 0x735   :  { %v4170_v21 = vadd.f32 %v8788_v25, %v4145_v40  ;;  %v4082_v29 = vpop.f32.mrb[63].mxu1 }
 0x736   :  { %v4169_v7 = vadd.f32 %v4140_v42, %v4082_v29  ;;  %8803 = vmatprep.mubr.msk.f32.mxu0 %vm2916_vm7, %v4175_v2 }
 0x737   :  { %8804 = vmatmul.mubr.msk.f32.vlgmr.msra.gmra.mrb[52].mxu0 %vm2916_vm7, %v4176_v38  ;;  %v4178_v34 = vmax.f32 %v4170_v21, 0.0 }
 0x738   :  { %v4177_v31 = vmax.f32 %v4169_v7, 0.0  ;;  %v8791_v51 = vpop.f32.mrb[64].mxu1  ;;  %9681 = vmatpush3.bf16.msk.msra.mxu0 %vm12915_vm15, %v12801_v11  ;;  %v4688_v7 = vld [vmem:[#allocation3 + $0x40] sm:$0xff] }
 0x739   :  { %v4172_v0 = vadd.f32 %v8791_v51, %v4155_v53  ;;  %v4092_v32 = vpop.f32.mrb[65].mxu1  ;;  %9683 = vmatprep.subr.msk.bf16.mxu0 %vm12953_vm3, %v12801_v11 }
 0x73a   :  { %v4171_v6 = vadd.f32 %v4150_v28, %v4092_v32  ;;  %8806 = vmatprep.mubr.msk.f32.mxu0 %vm2916_vm7, %v4177_v31 }
 0x73b   :  { %8807 = vmatmul.mubr.msk.f32.gmra.mrb[54].mxu0 %vm2916_vm7, %v4178_v34  ;;  %v4180_v4 = vmax.f32 %v4172_v0, 0.0 }
 0x73c   :  { %v4179_v43 = vmax.f32 %v4171_v6, 0.0  ;;  %v8794_v62 = vpop.f32.mrb[66].mxu1  ;;  %9685 = vmatpush3.bf16.msk.msra.mxu0 %vm12953_vm3, %v12801_v11 }
 0x73d   :  { %v4174_v13 = vadd.f32 %v8794_v62, %v4165_v54  ;;  %v4102_v59 = vpop.f32.mrb[67].mxu1 }
 0x73e   :  { %v4173_v5 = vadd.f32 %v4160_v30, %v4102_v59  ;;  %8809 = vmatprep.mubr.msk.f32.mxu0 %vm2916_vm7, %v4179_v43 }
 0x73f   :  { %8810 = vmatmul.mubr.msk.f32.gmra.mrb[56].mxu0 %vm2916_vm7, %v4180_v4  ;;  %v4182_v36 = vmax.f32 %v4174_v13, 0.0 }
 0x740   :  { %v4181_v47 = vmax.f32 %v4173_v5, 0.0 }
 0x742   :  { %8812 = vmatprep.mubr.msk.f32.mxu0 %vm2916_vm7, %v4181_v47 }
 0x743   :  { %8813 = vmatmul.mubr.msk.f32.gmra.mrb[58].mxu0 %vm2916_vm7, %v4182_v36 }
 0x744   :  { %8823 = vmatprep.mubr.msk.f32.mxu0 %vm2916_vm7, %v4175_v2 }
 0x747   :  { %8824 = vmatmul.mubr.msk.f32.vlgmr.msra.gmra.mrb[60].mxu0 %vm2916_vm7, %v4176_v38 }
 0x748   :  { %8826 = vmatprep.mubr.msk.f32.mxu0 %vm2916_vm7, %v4177_v31 }
 0x74b   :  { %8827 = vmatmul.mubr.msk.f32.gmra.mrb[62].mxu0 %vm2916_vm7, %v4178_v34 }
 0x74c   :  { %8829 = vmatprep.mubr.msk.f32.mxu0 %vm2916_vm7, %v4179_v43 }
 0x74f   :  { %8830 = vmatmul.mubr.msk.f32.gmra.mrb[64].mxu0 %vm2916_vm7, %v4180_v4 }
 0x750   :  { %8832 = vmatprep.mubr.msk.f32.mxu0 %vm2916_vm7, %v4181_v47 }
 0x753   :  { %8833 = vmatmul.mubr.msk.f32.gmra.mrb[66].mxu0 %vm2916_vm7, %v4182_v36  ;;  %vm4428_vm7 = vmand %vm12892_vm1, %vm4427_vm11  ;;  %vm5364_vm11 = vcmp.lt.s32.totalorder %v5360_v39, 8 }
 0x754   :  { %vm9686_vm3 = vmpackc.low %vm4429_vm2, %vm4428_vm7  ;;  %vm12964_vm2 = vcmp.eq.s32.totalorder %v12824_v52, %v12851_v55 }
 0x755   :  { %9687 = vmatprep.subr.msk.bf16.mxu0 %vm9686_vm3, %v12801_v11  ;;  %vm12286_vm7 = vmand %vm12848_vm12, %vm5364_vm11 }
 0x756   :  { %9689 = vmatpush3.bf16.msk.msra.mxu0 %vm9686_vm3, %v12801_v11  ;;  %vm12293_vm3 = vmand %vm12964_vm2, %vm5364_vm11 }
 0x757   :  { %vm9762_vm6 = vmpackc.low %vm12293_vm3, %vm12286_vm7 }
 0x758   :  { %vm12972_vm11 = vmmov %vm12967_vm0 }
 0x759   :  { %vm12973_vm7 = vmmov %vm12967_vm0 }
 0x75a   :  { %vm12974_vm2 = vmmov %vm12967_vm0 }
 0x75b   :  { %vm12975_vm3 = vmmov %vm12967_vm0 }
 0x80a   :  { %v8805_v9 = vpop.f32.mrb[52].mxu0 }
 0x80b   :  { %v4273_v33 = vpop.f32.mrb[53].mxu0 }
 0x80e   :  { %v8808_v58 = vpop.f32.mrb[54].mxu0 }
 0x80f   :  { %v4283_v48 = vpop.f32.mrb[55].mxu0 }
 0x812   :  { %v8811_v37 = vpop.f32.mrb[56].mxu0 }
 0x813   :  { %v4293_v26 = vpop.f32.mrb[57].mxu0 }
 0x816   :  { %v8814_v45 = vpop.f32.mrb[58].mxu0 }
 0x817   :  { %v4303_v46 = vpop.f32.mrb[59].mxu0 }
 0x81a   :  { %v8825_v8 = vpop.f32.mrb[60].mxu0 }
 0x81b   :  { %v4418_v1 = vmax.f32 %v8805_v9, %v8825_v8  ;;  %v4378_v12 = vpop.f32.mrb[61].mxu0  ;;  %v4692_v8 = vld [vmem:[#allocation3 + $0x60] sm:$0xff] }
 0x81c   :  { %v4417_v56 = vmax.f32 %v4273_v33, %v4378_v12  ;;  %v4693_v12 = vld [vmem:[#allocation3 + $0x68] sm:$0xff] }
 0x81e   :  { %v8828_v63 = vpop.f32.mrb[62].mxu0  ;;  %8839 = vmatprep.mubr.msk.f32.mxu0 %vm4435_vm9, %v4417_v56  ;;  %8855 = vmatprep.mubr.msk.f32.mxu1 %vm4435_vm9, %v4417_v56  ;;  %v12303_v18 = vpack.c.bf16 %v4418_v1, %v4417_v56 }
 0x81f   :  { %v4420_v40 = vmax.f32 %v8808_v58, %v8828_v63  ;;  %v4388_v41 = vpop.f32.mrb[63].mxu0  ;;  %8840 = vmatmul.mubr.msk.f32.vlgmr.msra.gmra.mrb[68].mxu0 %vm4435_vm9, %v4418_v1  ;;  %8856 = vmatmul.mubr.msk.f32.vlgmr.msra.gmra.mrb[68].mxu1 %vm4435_vm9, %v4418_v1  ;;  %v4689_v58 = vld [vmem:[#allocation3 + $0x48] sm:$0xff] }
 0x820   :  { %v4419_v52 = vmax.f32 %v4283_v48, %v4388_v41  ;;  %9745 = vmatpush3.bf16.msk.msra.mxu1 %vm9742_vm10, %v12801_v11  ;;  %vm12971_vm10 = vmmov %vm12967_vm0  ;;  %v4695_v41 = vld [vmem:[#allocation3 + $0x78] sm:$0xff] }
 0x821   :  { %9763 = vmatprep.subr.msk.bf16.mxu1 %vm9762_vm6, %v12801_v11 }
 0x822   :  { %v8831_v55 = vpop.f32.mrb[64].mxu0  ;;  %8842 = vmatprep.mubr.msk.f32.mxu0 %vm4435_vm9, %v4419_v52  ;;  %8858 = vmatprep.mubr.msk.f32.mxu1 %vm4435_vm9, %v4419_v52  ;;  %v12321_v42 = vpack.c.bf16 %v4420_v40, %v4419_v52 }
 0x823   :  { %v4422_v49 = vmax.f32 %v8811_v37, %v8831_v55  ;;  %v4398_v16 = vpop.f32.mrb[65].mxu0  ;;  %8843 = vmatmul.mubr.msk.f32.gmra.mrb[70].mxu0 %vm4435_vm9, %v4420_v40  ;;  %8859 = vmatmul.mubr.msk.f32.gmra.mrb[70].mxu1 %vm4435_vm9, %v4420_v40  ;;  %v4690_v37 = vld [vmem:[#allocation3 + $0x50] sm:$0xff]  ;;  %v4565_v55 = vld [vmem:[#allocation3] sm:$0xff] }
 0x824   :  { %v4421_v19 = vmax.f32 %v4293_v26, %v4398_v16 }
 0x826   :  { %v8834_v2 = vpop.f32.mrb[66].mxu0  ;;  %8845 = vmatprep.mubr.msk.f32.mxu0 %vm4435_vm9, %v4421_v19  ;;  %8861 = vmatprep.mubr.msk.f32.mxu1 %vm4435_vm9, %v4421_v19  ;;  %v12327_v25 = vpack.c.bf16 %v4422_v49, %v4421_v19 }
 0x827   :  { %v4424_v38 = vmax.f32 %v8814_v45, %v8834_v2  ;;  %v4408_v21 = vpop.f32.mrb[67].mxu0  ;;  %8846 = vmatmul.mubr.msk.f32.gmra.mrb[72].mxu0 %vm4435_vm9, %v4422_v49  ;;  %8862 = vmatmul.mubr.msk.f32.gmra.mrb[72].mxu1 %vm4435_vm9, %v4422_v49  ;;  %v4691_v45 = vld [vmem:[#allocation3 + $0x58] sm:$0xff] }
 0x828   :  { %v4423_v29 = vmax.f32 %v4303_v46, %v4408_v21 }
 0x82a   :  { %8848 = vmatprep.mubr.msk.f32.mxu0 %vm4435_vm9, %v4423_v29  ;;  %8864 = vmatprep.mubr.msk.f32.mxu1 %vm4435_vm9, %v4423_v29  ;;  %v12333_v53 = vpack.c.bf16 %v4424_v38, %v4423_v29 }
 0x82b   :  { %8849 = vmatmul.mubr.msk.f32.gmra.mrb[74].mxu0 %vm4435_vm9, %v4424_v38  ;;  %8865 = vmatmul.mubr.msk.f32.gmra.mrb[74].mxu1 %vm4435_vm9, %v4424_v38 }
 0x82c   :  { %8955 = vmatprep.mubr.msk.f32.mxu1 %vm4435_vm9, %v4417_v56  ;;  %8883 = vmatprep.mubr.msk.f32.mxu0 %vm12967_vm0, %v4688_v7  ;;  %v4568_v7 = vld [vmem:[#allocation3 + $0x18] sm:$0xff] }
 0x82f   :  { %8956 = vmatmul.mubr.msk.f32.vlgmr.msra.gmra.mrb[76].mxu1 %vm4435_vm9, %v4418_v1 }
 0x830   :  { %8958 = vmatprep.mubr.msk.f32.mxu1 %vm4435_vm9, %v4419_v52  ;;  %9765 = vmatpush3.bf16.msk.msra.mxu1 %vm9762_vm6, %v12801_v11  ;;  %vm12976_vm6 = vmmov %vm12967_vm0 }
 0x831   :  { %9783 = vmatprep.subr.msk.bf16.mxu1 %vm12870_vm8, %v12801_v11 }
 0x833   :  { %8959 = vmatmul.mubr.msk.f32.gmra.mrb[78].mxu1 %vm4435_vm9, %v4420_v40 }
 0x834   :  { %8961 = vmatprep.mubr.msk.f32.mxu1 %vm4435_vm9, %v4421_v19 }
 0x837   :  { %8962 = vmatmul.mubr.msk.f32.gmra.mrb[80].mxu1 %vm4435_vm9, %v4422_v49 }
 0x838   :  { %8964 = vmatprep.mubr.msk.f32.mxu1 %vm4435_vm9, %v4423_v29 }
 0x83b   :  { %8965 = vmatmul.mubr.msk.f32.gmra.mrb[82].mxu1 %vm4435_vm9, %v4424_v38 }
 0x83c   :  { %8999 = vmatprep.mubr.msk.f32.mxu1 %vm4435_vm9, %v4417_v56  ;;  %v4694_v56 = vld [vmem:[#allocation3 + $0x70] sm:$0xff] }
 0x83f   :  { %9000 = vmatmul.mubr.msk.f32.vlgmr.msra.gmra.mrb[84].mxu1 %vm4435_vm9, %v4418_v1 }
 0x840   :  { %9002 = vmatprep.mubr.msk.f32.mxu1 %vm4435_vm9, %v4419_v52  ;;  %9785 = vmatpush3.bf16.msk.msra.mxu1 %vm12870_vm8, %v12801_v11  ;;  %vm12968_vm8 = vmmov %vm12967_vm0 }
 0x841   :  { %9787 = vmatprep.subr.msk.bf16.mxu1 %vm12915_vm15, %v12801_v11 }
 0x843   :  { %9003 = vmatmul.mubr.msk.f32.gmra.mrb[86].mxu1 %vm4435_vm9, %v4420_v40 }
 0x844   :  { %9005 = vmatprep.mubr.msk.f32.mxu1 %vm4435_vm9, %v4421_v19  ;;  %v4566_v19 = vld [vmem:[#allocation3 + $0x8] sm:$0xff] }
 0x847   :  { %9006 = vmatmul.mubr.msk.f32.gmra.mrb[88].mxu1 %vm4435_vm9, %v4422_v49 }
 0x848   :  { %9008 = vmatprep.mubr.msk.f32.mxu1 %vm4435_vm9, %v4423_v29 }
 0x84b   :  { %9009 = vmatmul.mubr.msk.f32.gmra.mrb[90].mxu1 %vm4435_vm9, %v4424_v38  ;;  %v4567_v38 = vld [vmem:[#allocation3 + $0x10] sm:$0xff] }
 0x8f2   :  { %v8841_v28 = vpop.f32.mrb[68].mxu0  ;;  %v8857_v24 = vpop.f32.mrb[68].mxu1 }
 0x8f3   :  { %v4526_v31 = vpop.f32.mrb[69].mxu0  ;;  %v4648_v51 = vpop.f32.mrb[69].mxu1 }
 0x8f4   :  { %v9710_v34 = vpack.c.bf16 %v8841_v28, %v4526_v31  ;;  %v9694_v0 = vpack.c.bf16 %v8857_v24, %v4648_v51  ;;  %v4569_v24 = vld [vmem:[#allocation3 + $0x20] sm:$0xff] }
 0x8f6   :  { %v8844_v32 = vpop.f32.mrb[70].mxu0  ;;  %v8860_v6 = vpop.f32.mrb[70].mxu1  ;;  %9695 = vmatprep.subr.bf16.mxu0 %v9694_v0 }
 0x8f7   :  { %v4536_v54 = vpop.f32.mrb[71].mxu0  ;;  %v4658_v43 = vpop.f32.mrb[71].mxu1  ;;  %9697 = vmatpush3.bf16.msra.mxu0 %v9694_v0 }
 0x8f8   :  { %v9714_v62 = vpack.c.bf16 %v8844_v32, %v4536_v54  ;;  %v9698_v30 = vpack.c.bf16 %v8860_v6, %v4658_v43  ;;  %v4572_v54 = vld [vmem:[#allocation3 + $0x38] sm:$0xff] }
 0x8fa   :  { %v8847_v4 = vpop.f32.mrb[72].mxu0  ;;  %v8863_v13 = vpop.f32.mrb[72].mxu1  ;;  %9699 = vmatprep.subr.bf16.mxu0 %v9698_v30 }
 0x8fb   :  { %v4546_v59 = vpop.f32.mrb[73].mxu0  ;;  %v4668_v5 = vpop.f32.mrb[73].mxu1  ;;  %9701 = vmatpush3.bf16.msra.mxu0 %v9698_v30  ;;  %v4957_v30 = vld [vmem:[#allocation3 + $0x90] sm:$0xff] }
 0x8fc   :  { %v9718_v47 = vpack.c.bf16 %v8847_v4, %v4546_v59  ;;  %v9702_v36 = vpack.c.bf16 %v8863_v13, %v4668_v5  ;;  %v4959_v4 = vld [vmem:[#allocation3 + $0xa0] sm:$0xff]  ;;  %v4961_v13 = vld [vmem:[#allocation3 + $0xb0] sm:$0xff]  ;;  %v4962_v59 = vld [vmem:[#allocation3 + $0xb8] sm:$0xff] }
 0x8fd   :  { %v5215_v5 = vld [vmem:[#allocation3 + $0xc0] sm:$0xff] }
 0x8fe   :  { %v8850_v23 = vpop.f32.mrb[74].mxu0  ;;  %v8866_v57 = vpop.f32.mrb[74].mxu1  ;;  %9703 = vmatprep.subr.bf16.mxu0 %v9702_v36 }
 0x8ff   :  { %v4556_v15 = vpop.f32.mrb[75].mxu0  ;;  %v4678_v10 = vpop.f32.mrb[75].mxu1  ;;  %9705 = vmatpush3.bf16.msra.mxu0 %v9702_v36  ;;  %v5217_v36 = vld [vmem:[#allocation3 + $0xd0] sm:$0xff] }
 0x900   :  { %v9722_v22 = vpack.c.bf16 %v8850_v23, %v4556_v15  ;;  %v9706_v44 = vpack.c.bf16 %v8866_v57, %v4678_v10  ;;  %v5218_v23 = vld [vmem:[#allocation3 + $0xd8] sm:$0xff]  ;;  %v5219_v57 = vld [vmem:[#allocation3 + $0xe0] sm:$0xff]  ;;  %v5220_v15 = vld [vmem:[#allocation3 + $0xe8] sm:$0xff] }
 0x901   :  { %v5221_v10 = vld [vmem:[#allocation3 + $0xf0] sm:$0xff] }
 0x902   :  { %9707 = vmatprep.subr.bf16.mxu0 %v9706_v44  ;;  %v8957_v9 = vpop.f32.mrb[76].mxu1 }
 0x903   :  { %9709 = vmatpush3.bf16.msra.mxu0 %v9706_v44  ;;  %v5175_v33 = vpop.f32.mrb[77].mxu1  ;;  %v5475_v44 = vld [vmem:[#allocation3 + $0x100] sm:$0xff] }
 0x904   :  { %v12369_v48 = vpack.c.bf16 %v8957_v9, %v5175_v33  ;;  %9711 = vmatprep.subr.bf16.mxu0 %v9710_v34  ;;  %v5476_v9 = vld [vmem:[#allocation3 + $0x108] sm:$0xff]  ;;  %v5477_v33 = vld [vmem:[#allocation3 + $0x110] sm:$0xff] }
 0x906   :  { %8884 = vmatmul.mubr.msk.f32.vlgmr.msra.gmra.mrb[76].mxu0 %vm12968_vm8, %v4689_v58  ;;  %v8960_v26 = vpop.f32.mrb[78].mxu1  ;;  %vm12977_vm8 = vmmov %vm12967_vm0  ;;  %v5478_v58 = vld [vmem:[#allocation3 + $0x118] sm:$0xff] }
 0x907   :  { %9713 = vmatpush3.bf16.msra.mxu0 %v9710_v34  ;;  %v5185_v39 = vpop.f32.mrb[79].mxu1  ;;  %8886 = vmatprep.mubr.msk.f32.mxu0 %vm12969_vm5, %v4690_v37  ;;  %vm12978_vm5 = vmmov %vm12967_vm0  ;;  %v4570_v34 = vld [vmem:[#allocation3 + $0x28] sm:$0xff] }
 0x908   :  { %v12373_v46 = vpack.c.bf16 %v8960_v26, %v5185_v39  ;;  %9715 = vmatprep.subr.bf16.mxu0 %v9714_v62  ;;  %v5480_v37 = vld [vmem:[#allocation3 + $0x128] sm:$0xff]  ;;  %v5481_v26 = vld [vmem:[#allocation3 + $0x130] sm:$0xff]  ;;  %v5482_v39 = vld [vmem:[#allocation3 + $0x138] sm:$0xff] }
 0x90a   :  { %8887 = vmatmul.mubr.msk.f32.gmra.mrb[78].mxu0 %vm12970_vm14, %v4691_v45  ;;  %v8963_v17 = vpop.f32.mrb[80].mxu1  ;;  %vm12979_vm14 = vmmov %vm12967_vm0  ;;  %v5636_v45 = vpop.permute.xlu1 %5635 }
 0x90b   :  { %9717 = vmatpush3.bf16.msra.mxu0 %v9714_v62  ;;  %v5195_v1 = vpop.f32.mrb[81].mxu1  ;;  %8889 = vmatprep.mubr.msk.f32.mxu0 %vm12971_vm10, %v4692_v8  ;;  %vm12980_vm10 = vmmov %vm12967_vm0  ;;  %v4956_v62 = vld [vmem:[#allocation3 + $0x88] sm:$0xff] }
 0x90c   :  { %v12377_v27 = vpack.c.bf16 %v8963_v17, %v5195_v1  ;;  %9719 = vmatprep.subr.bf16.mxu0 %v9718_v47 }
 0x90e   :  { %8890 = vmatmul.mubr.msk.f32.gmra.mrb[80].mxu0 %vm12972_vm11, %v4693_v12  ;;  %v8966_v63 = vpop.f32.mrb[82].mxu1  ;;  %vm12981_vm11 = vmmov %vm12967_vm0  ;;  %v5646_v8 = vpop.permute.xlu1 %5645 }
 0x90f   :  { %9721 = vmatpush3.bf16.msra.mxu0 %v9718_v47  ;;  %v5205_v40 = vpop.f32.mrb[83].mxu1  ;;  %8892 = vmatprep.mubr.msk.f32.mxu0 %vm12973_vm7, %v4694_v56  ;;  %vm12982_vm7 = vmmov %vm12967_vm0  ;;  %v5216_v47 = vld [vmem:[#allocation3 + $0xc8] sm:$0xff] }
 0x910   :  { %v12381_v52 = vpack.c.bf16 %v8966_v63, %v5205_v40  ;;  %9723 = vmatprep.subr.bf16.mxu0 %v9722_v22 }
 0x912   :  { %8893 = vmatmul.mubr.msk.f32.gmra.mrb[82].mxu0 %vm12974_vm2, %v4695_v41  ;;  %v9001_v49 = vpop.f32.mrb[84].mxu1  ;;  %vm12983_vm2 = vmmov %vm12967_vm0 }
 0x913   :  { %9725 = vmatpush3.bf16.msra.mxu0 %v9722_v22  ;;  %v5435_v16 = vpop.f32.mrb[85].mxu1  ;;  %8911 = vmatprep.mubr.msk.f32.mxu0 %vm12975_vm3, %v4565_v55  ;;  %vm12984_vm3 = vmmov %vm12967_vm0  ;;  %v5222_v22 = vld [vmem:[#allocation3 + $0xf8] sm:$0xff] }
 0x914   :  { %v9766_v2 = vpack.c.bf16 %v9001_v49, %v5435_v16  ;;  %9727 = vmatprep.subr.bf16.mxu0 %v12303_v18  ;;  %v5656_v49 = vpop.permute.xlu1 %5655 }
 0x916   :  { %8912 = vmatmul.mubr.msk.f32.vlgmr.msra.gmra.mrb[76].mxu0 %vm12976_vm6, %v4566_v19  ;;  %v9004_v21 = vpop.f32.mrb[86].mxu1  ;;  %vm12985_vm6 = vmmov %vm12967_vm0 }
 0x917   :  { %9729 = vmatpush3.bf16.msra.mxu0 %v12303_v18  ;;  %v5445_v29 = vpop.f32.mrb[87].mxu1  ;;  %8914 = vmatprep.mubr.msk.f32.mxu0 %vm12967_vm0, %v4567_v38  ;;  %v4571_v18 = vld [vmem:[#allocation3 + $0x30] sm:$0xff] }
 0x918   :  { %v9770_v28 = vpack.c.bf16 %v9004_v21, %v5445_v29  ;;  %9731 = vmatprep.subr.bf16.mxu0 %v12321_v42 }
 0x91a   :  { %8915 = vmatmul.mubr.msk.f32.gmra.mrb[78].mxu0 %vm12977_vm8, %v4568_v7  ;;  %v9007_v31 = vpop.f32.mrb[88].mxu1  ;;  %vm12986_vm8 = vmmov %vm12967_vm0 }
 0x91b   :  { %9733 = vmatpush3.bf16.msra.mxu0 %v12321_v42  ;;  %v5455_v51 = vpop.f32.mrb[89].mxu1  ;;  %8917 = vmatprep.mubr.msk.f32.mxu0 %vm12978_vm5, %v4569_v24  ;;  %v4955_v42 = vld [vmem:[#allocation3 + $0x80] sm:$0xff]  ;;  %vm12987_vm5 = vmmov %vm12967_vm0  ;;  %v5666_v24 = vpop.permute.xlu1 %5665 }
 0x91c   :  { %v9774_v0 = vpack.c.bf16 %v9007_v31, %v5455_v51  ;;  %9735 = vmatprep.subr.bf16.mxu0 %v12327_v25 }
 0x91e   :  { %8918 = vmatmul.mubr.msk.f32.gmra.mrb[80].mxu0 %vm12979_vm14, %v4570_v34  ;;  %v9010_v32 = vpop.f32.mrb[90].mxu1  ;;  %vm12988_vm14 = vmmov %vm12967_vm0 }
 0x91f   :  { %9737 = vmatpush3.bf16.msra.mxu0 %v12327_v25  ;;  %v5465_v6 = vpop.f32.mrb[91].mxu1  ;;  %8920 = vmatprep.mubr.msk.f32.mxu0 %vm12980_vm10, %v4571_v18  ;;  %v4958_v25 = vld [vmem:[#allocation3 + $0x98] sm:$0xff]  ;;  %vm12989_vm10 = vmmov %vm12967_vm0 }
 0x920   :  { %v9778_v43 = vpack.c.bf16 %v9010_v32, %v5465_v6  ;;  %9739 = vmatprep.subr.bf16.mxu0 %v12333_v53 }
 0x922   :  { %8921 = vmatmul.mubr.msk.f32.gmra.mrb[82].mxu0 %vm12981_vm11, %v4572_v54  ;;  %vm12990_vm11 = vmmov %vm12967_vm0  ;;  %v12452_v54 = vand.u32 3, %v12885_v60 }
 0x923   :  { %9741 = vmatpush3.bf16.msra.mxu0 %v12333_v53  ;;  %8939 = vmatprep.mubr.msk.f32.mxu0 %vm12982_vm7, %v4955_v42  ;;  %v4960_v53 = vld [vmem:[#allocation3 + $0xa8] sm:$0xff]  ;;  %vm12991_vm7 = vmmov %vm12967_vm0  ;;  %v10019_v42 = vmov 1.0  }
 0x924   :  { %9747 = vmatprep.subr.bf16.mxu0 %v12369_v48 }
 0x926   :  { %8940 = vmatmul.mubr.msk.f32.vlgmr.msra.gmra.mrb[76].mxu0 %vm12983_vm2, %v4956_v62  ;;  %vm12992_vm2 = vmmov %vm12967_vm0  ;;  %v13004_v62 = vmov 0.0|0.0  }
 0x927   :  { %9749 = vmatpush3.bf16.msra.mxu0 %v12369_v48  ;;  %8942 = vmatprep.mubr.msk.f32.mxu0 %vm12984_vm3, %v4957_v30  ;;  %vm12993_vm3 = vmmov %vm12967_vm0  ;;  %v5479_v48 = vld [vmem:[#allocation3 + $0x120] sm:$0xff]  ;;  %v6064_v30 = vadd.s32 4294967295, %v12452_v54 }
 0x928   :  { %9751 = vmatprep.subr.bf16.mxu0 %v12373_v46 }
 0x92a   :  { %8943 = vmatmul.mubr.msk.f32.gmra.mrb[78].mxu0 %vm12985_vm6, %v4958_v25  ;;  %vm12994_vm6 = vmmov %vm12967_vm0 }
 0x92b   :  { %9753 = vmatpush3.bf16.msra.mxu0 %v12373_v46  ;;  %8945 = vmatprep.mubr.msk.f32.mxu0 %vm12967_vm0, %v4959_v4  ;;  %v5631_v46 = vpop.permute.xlu0 %5630 }
 0x92c   :  { %9755 = vmatprep.subr.bf16.mxu0 %v12377_v27 }
 0x92e   :  { %8946 = vmatmul.mubr.msk.f32.gmra.mrb[80].mxu0 %vm12986_vm8, %v4960_v53  ;;  %vm12995_vm8 = vmmov %vm12967_vm0 }
 0x92f   :  { %9757 = vmatpush3.bf16.msra.mxu0 %v12377_v27  ;;  %8948 = vmatprep.mubr.msk.f32.mxu0 %vm12987_vm5, %v4961_v13  ;;  %vm12996_vm5 = vmmov %vm12967_vm0  ;;  %v5641_v1 = vpop.permute.xlu0 %5640 }
 0x930   :  { %9759 = vmatprep.subr.bf16.mxu0 %v12381_v52 }
 0x932   :  { %8949 = vmatmul.mubr.msk.f32.gmra.mrb[82].mxu0 %vm12988_vm14, %v4962_v59  ;;  %vm12997_vm14 = vmmov %vm12967_vm0 }
 0x933   :  { %9761 = vmatpush3.bf16.msra.mxu0 %v12381_v52  ;;  %8983 = vmatprep.mubr.msk.f32.mxu0 %vm12989_vm10, %v5215_v5  ;;  %vm12998_vm10 = vmmov %vm12967_vm0  ;;  %v5651_v19 = vpop.permute.xlu0 %5650 }
 0x934   :  { %9767 = vmatprep.subr.bf16.mxu0 %v9766_v2 }
 0x936   :  { %8984 = vmatmul.mubr.msk.f32.vlgmr.msra.gmra.mrb[76].mxu0 %vm12990_vm11, %v5216_v47  ;;  %vm12999_vm11 = vmmov %vm12967_vm0 }
 0x937   :  { %9769 = vmatpush3.bf16.msra.mxu0 %v9766_v2  ;;  %8986 = vmatprep.mubr.msk.f32.mxu0 %vm12991_vm7, %v5217_v36  ;;  %vm13000_vm7 = vmmov %vm12967_vm0  ;;  %v5661_v34 = vpop.permute.xlu0 %5660 }
 0x938   :  { %9771 = vmatprep.subr.bf16.mxu0 %v9770_v28 }
 0x93a   :  { %8987 = vmatmul.mubr.msk.f32.gmra.mrb[78].mxu0 %vm12992_vm2, %v5218_v23  ;;  %vm13001_vm2 = vmmov %vm12967_vm0 }
 0x93b   :  { %9773 = vmatpush3.bf16.msra.mxu0 %v9770_v28  ;;  %8989 = vmatprep.mubr.msk.f32.mxu0 %vm12993_vm3, %v5219_v57  ;;  %vm13002_vm3 = vmmov %vm12967_vm0 }
 0x93c   :  { %9775 = vmatprep.subr.bf16.mxu0 %v9774_v0 }
 0x93e   :  { %8990 = vmatmul.mubr.msk.f32.gmra.mrb[80].mxu0 %vm12994_vm6, %v5220_v15  ;;  %vm13003_vm6 = vmmov %vm12967_vm0 }
 0x93f   :  { %9777 = vmatpush3.bf16.msra.mxu0 %v9774_v0  ;;  %8992 = vmatprep.mubr.msk.f32.mxu0 %vm12967_vm0, %v5221_v10 }
 0x940   :  { %9779 = vmatprep.subr.bf16.mxu0 %v9778_v43 }
 0x942   :  { %8993 = vmatmul.mubr.msk.f32.gmra.mrb[82].mxu0 %vm12995_vm8, %v5222_v22  ;;  %vm6065_vm8 = vcmp.ge.s32.totalorder %v6064_v30, 0 }
 0x943   :  { %9781 = vmatpush3.bf16.msra.mxu0 %v9778_v43  ;;  %9027 = vmatprep.mubr.msk.f32.mxu0 %vm12996_vm5, %v5475_v44  ;;  %v5927_v43 = vadd.s32 4294967294, %v12452_v54 }
 0x946   :  { %9028 = vmatmul.mubr.msk.f32.vlgmr.msra.gmra.mrb[76].mxu0 %vm12997_vm14, %v5476_v9 }
 0x947   :  { %9030 = vmatprep.mubr.msk.f32.mxu0 %vm12998_vm10, %v5477_v33 }
 0x94a   :  { %9031 = vmatmul.mubr.msk.f32.gmra.mrb[78].mxu0 %vm12999_vm11, %v5478_v58  ;;  %vm13007_vm11 = vmmov %vm13001_vm2 }
 0x94b   :  { %9033 = vmatprep.mubr.msk.f32.mxu0 %vm13000_vm7, %v5479_v48  ;;  %vm13008_vm7 = vmmov %vm13001_vm2 }
 0x94e   :  { %9034 = vmatmul.mubr.msk.f32.gmra.mrb[80].mxu0 %vm13001_vm2, %v5480_v37 }
 0x94f   :  { %9036 = vmatprep.mubr.msk.f32.mxu0 %vm13002_vm3, %v5481_v26 }
 0x952   :  { %9037 = vmatmul.mubr.msk.f32.gmra.mrb[82].mxu0 %vm13003_vm6, %v5482_v39  ;;  %vm6785_vm6 = vcmask 57344  }
 0xa19   :  { %v9029_v17 = vpop.f32.mrb[76].mxu0 }
 0xa1a   :  { %v5669_v12 = vadd.f32 %v9029_v17, %v5636_v45  ;;  %v5573_v27 = vpop.f32.mrb[77].mxu0  ;;  %v13005_v45 = vmov 0.0  }
 0xa1b   :  { %v5668_v56 = vadd.f32 %v5631_v46, %v5573_v27 }
 0xa1c   :  { %v5677_v41 = vmax.f32 %v5669_v12, 0.0 }
 0xa1d   :  { %v5676_v63 = vmax.f32 %v5668_v56, 0.0  ;;  %v9032_v40 = vpop.f32.mrb[78].mxu0 }
 0xa1e   :  { %v5671_v52 = vadd.f32 %v9032_v40, %v5646_v8  ;;  %v5583_v55 = vpop.f32.mrb[79].mxu0 }
 0xa1f   :  { %v5670_v16 = vadd.f32 %v5641_v1, %v5583_v55  ;;  %9043 = vmatprep.mubr.msk.f32.mxu1 %vm4435_vm9, %v5676_v63 }
 0xa20   :  { %9044 = vmatmul.mubr.msk.f32.vlgmr.msra.gmra.mrb[92].mxu1 %vm4435_vm9, %v5677_v41  ;;  %v5679_v21 = vmax.f32 %v5671_v52, 0.0 }
 0xa21   :  { %v5678_v2 = vmax.f32 %v5670_v16, 0.0  ;;  %v9035_v38 = vpop.f32.mrb[80].mxu0  ;;  %9789 = vmatpush3.bf16.msk.msra.mxu1 %vm12915_vm15, %v12801_v11  ;;  %vm5928_vm15 = vcmp.ge.s32.totalorder %v5927_v43, 0 }
 0xa22   :  { %v5673_v29 = vadd.f32 %v9035_v38, %v5656_v49  ;;  %v5593_v7 = vpop.f32.mrb[81].mxu0  ;;  %vm5929_vm0 = vmand %vm12892_vm1, %vm5928_vm15  ;;  %vm5933_vm1 = vcmask 64512   ;;  %v6399_v49 = vadd.s32 1, %v12452_v54 }
 0xa23   :  { %v5672_v28 = vadd.f32 %v5651_v19, %v5593_v7  ;;  %9046 = vmatprep.mubr.msk.f32.mxu1 %vm4435_vm9, %v5678_v2  ;;  %9071 = vmatprep.subr.msk.mxu1 %vm5929_vm0, %v10019_v42 }
 0xa24   :  { %9047 = vmatmul.mubr.msk.f32.gmra.mrb[94].mxu1 %vm4435_vm9, %v5679_v21  ;;  %v5681_v0 = vmax.f32 %v5673_v29, 0.0  ;;  %vm6402_vm5 = vcmp.lt.s32.totalorder %v6399_v49, 4 }
 0xa25   :  { %v5680_v31 = vmax.f32 %v5672_v28, 0.0  ;;  %v9038_v51 = vpop.f32.mrb[82].mxu0  ;;  %vm6403_vm14 = vmand %vm12821_vm13, %vm6402_vm5 }
 0xa26   :  { %v5675_v18 = vadd.f32 %v9038_v51, %v5666_v24  ;;  %v5603_v32 = vpop.f32.mrb[83].mxu0  ;;  %v6586_v24 = vadd.s32 2, %v12452_v54  ;;  %vm13009_vm13 = vmmov %vm13002_vm3 }
 0xa27   :  { %v5674_v6 = vadd.f32 %v5661_v34, %v5603_v32  ;;  %9049 = vmatprep.mubr.msk.f32.mxu1 %vm4435_vm9, %v5680_v31  ;;  %v6176_v32 = vld [vmem:[#allocation5 + $0x1] sm:$0x1] }
 0xa28   :  { %9050 = vmatmul.mubr.msk.f32.gmra.mrb[96].mxu1 %vm4435_vm9, %v5681_v0  ;;  %v5683_v35 = vmax.f32 %v5675_v18, 0.0  ;;  %v6063_v18 = vld [vmem:[#allocation5] sm:$0x1]  ;;  %vm6589_vm10 = vcmp.lt.s32.totalorder %v6586_v24, 4 }
 0xa29   :  { %v5682_v11 = vmax.f32 %v5674_v6, 0.0  ;;  %vm6590_vm2 = vmand %vm12848_vm12, %vm6589_vm10 }
 0xa2a   :  { %vm13010_vm12 = vmmov %vm13002_vm3 }
 0xa2b   :  { %9052 = vmatprep.mubr.msk.f32.mxu1 %vm4435_vm9, %v5682_v11 }
 0xa2c   :  { %9053 = vmatmul.mubr.msk.f32.gmra.mrb[98].mxu1 %vm4435_vm9, %v5683_v35 }
 0xa2d   :  { %9059 = vmatprep.mubr.msk.f32.mxu1 %vm4435_vm9, %v5676_v63 }
 0xa30   :  { %9060 = vmatmul.mubr.msk.f32.vlgmr.msra.gmra.mrb[100].mxu1 %vm4435_vm9, %v5677_v41 }
 0xa31   :  { %9062 = vmatprep.mubr.msk.f32.mxu1 %vm4435_vm9, %v5678_v2  ;;  %9072 = vmatpush3.msk.msra.mxu1 %vm5929_vm0, %v10019_v42 }
 0xa32   :  { %9790 = vmatprep.subr.bf16.mxu1 %v13004_v62 }
 0xa34   :  { %9063 = vmatmul.mubr.msk.f32.gmra.mrb[102].mxu1 %vm4435_vm9, %v5679_v21 }
 0xa35   :  { %9065 = vmatprep.mubr.msk.f32.mxu1 %vm4435_vm9, %v5680_v31 }
 0xa38   :  { %9066 = vmatmul.mubr.msk.f32.gmra.mrb[104].mxu1 %vm4435_vm9, %v5681_v0 }
 0xa39   :  { %9068 = vmatprep.mubr.msk.f32.mxu1 %vm4435_vm9, %v5682_v11 }
 0xa3c   :  { %9069 = vmatmul.mubr.msk.f32.gmra.mrb[106].mxu1 %vm4435_vm9, %v5683_v35  ;;  %vm6066_vm9 = vmand %vm12954_vm4, %vm6065_vm8  ;;  %vm13006_vm4 = vmmov 0   ;;  %v6324_v35 = vld [vmem:[#allocation5 + $0x2] sm:$0x1] }
 0xa3d   :  { %9085 = vmatprep.subr.msk.mxu0 %vm6066_vm9, %v10019_v42 }
 0xa3e   :  { %9086 = vmatpush3.msk.msra.mxu0 %vm6066_vm9, %v10019_v42 }
 0xa3f   :  { %9802 = vmatprep.subr.bf16.mxu0 %v13004_v62 }
 0xaf3   :  { %v9045_v60 = vpop.f32.mrb[92].mxu1 }
 0xaf4   :  { %v5774_v20 = vpop.f32.mrb[93].mxu1 }
 0xaf7   :  { %v9048_v25 = vpop.f32.mrb[94].mxu1 }
 0xaf8   :  { %v5784_v4 = vpop.f32.mrb[95].mxu1 }
 0xafb   :  { %v9051_v53 = vpop.f32.mrb[96].mxu1 }
 0xafc   :  { %v5794_v13 = vpop.f32.mrb[97].mxu1 }
 0xaff   :  { %v9054_v59 = vpop.f32.mrb[98].mxu1 }
 0xb00   :  { %v5804_v5 = vpop.f32.mrb[99].mxu1 }
 0xb03   :  { %v9061_v47 = vpop.f32.mrb[100].mxu1 }
 0xb04   :  { %v12466_v36 = vmax.f32 %v9045_v60, %v9061_v47  ;;  %v5879_v23 = vpop.f32.mrb[101].mxu1 }
 0xb05   :  { %v12468_v61 = vmax.f32 %v5774_v20, %v5879_v23 }
 0xb07   :  { %v9064_v57 = vpop.f32.mrb[102].mxu1  ;;  %9073 = vmatprep.mubr.msk.f32.mxu1 %vm5933_vm1, %v12468_v61  ;;  %9087 = vmatprep.mubr.msk.f32.mxu0 %vm5933_vm1, %v12468_v61  ;;  %v9815_v6 = vpack.c.bf16 %v12466_v36, %v12468_v61 }
 0xb08   :  { %v12474_v15 = vmax.f32 %v9048_v25, %v9064_v57  ;;  %v5889_v10 = vpop.f32.mrb[103].mxu1  ;;  %9074 = vmatmul.mubr.msk.f32.vlgmr.msra.gmra.mrb[108].mxu1 %vm5933_vm1, %v12466_v36  ;;  %9088 = vmatmul.mubr.msk.f32.vlgmr.msra.gmra.mrb[84].mxu0 %vm5933_vm1, %v12466_v36 }
 0xb09   :  { %v12480_v22 = vmax.f32 %v5784_v4, %v5889_v10 }
 0xb0b   :  { %v9067_v44 = vpop.f32.mrb[104].mxu1  ;;  %9076 = vmatprep.mubr.msk.f32.mxu1 %vm5933_vm1, %v12480_v22  ;;  %9090 = vmatprep.mubr.msk.f32.mxu0 %vm5933_vm1, %v12480_v22  ;;  %v9818_v14 = vpack.c.bf16 %v12474_v15, %v12480_v22 }
 0xb0c   :  { %v12486_v9 = vmax.f32 %v9051_v53, %v9067_v44  ;;  %v5899_v33 = vpop.f32.mrb[105].mxu1  ;;  %9077 = vmatmul.mubr.msk.f32.gmra.mrb[110].mxu1 %vm5933_vm1, %v12474_v15  ;;  %9091 = vmatmul.mubr.msk.f32.gmra.mrb[86].mxu0 %vm5933_vm1, %v12474_v15 }
 0xb0d   :  { %v12492_v58 = vmax.f32 %v5794_v13, %v5899_v33 }
 0xb0f   :  { %v9070_v48 = vpop.f32.mrb[106].mxu1  ;;  %9079 = vmatprep.mubr.msk.f32.mxu1 %vm5933_vm1, %v12492_v58  ;;  %9093 = vmatprep.mubr.msk.f32.mxu0 %vm5933_vm1, %v12492_v58  ;;  %v9821_v50 = vpack.c.bf16 %v12486_v9, %v12492_v58 }
 0xb10   :  { %v12498_v37 = vmax.f32 %v9054_v59, %v9070_v48  ;;  %v5909_v26 = vpop.f32.mrb[107].mxu1  ;;  %9080 = vmatmul.mubr.msk.f32.gmra.mrb[112].mxu1 %vm5933_vm1, %v12486_v9  ;;  %9094 = vmatmul.mubr.msk.f32.gmra.mrb[88].mxu0 %vm5933_vm1, %v12486_v9 }
 0xb11   :  { %v12504_v39 = vmax.f32 %v5804_v5, %v5909_v26 }
 0xb13   :  { %9082 = vmatprep.mubr.msk.f32.mxu1 %vm5933_vm1, %v12504_v39  ;;  %9096 = vmatprep.mubr.msk.f32.mxu0 %vm5933_vm1, %v12504_v39  ;;  %v9824_v11 = vpack.c.bf16 %v12498_v37, %v12504_v39 }
 0xb14   :  { %9083 = vmatmul.mubr.msk.f32.gmra.mrb[114].mxu1 %vm5933_vm1, %v12498_v37  ;;  %9097 = vmatmul.mubr.msk.f32.gmra.mrb[90].mxu0 %vm5933_vm1, %v12498_v37 }
 0xb15   :  { %9134 = vmatprep.mubr.msk.f32.mxu0 %vm13006_vm4, %v13005_v45  ;;  %9115 = vmatprep.mubr.msk.f32.mxu1 %vm13006_vm4, %v13005_v45 }
 0xbdb   :  { %v9075_v46 = vpop.f32.mrb[108].mxu1  ;;  %v9089_v8 = vpop.f32.mrb[84].mxu0 }
 0xbdc   :  { %v6024_v17 = vpop.f32.mrb[109].mxu1  ;;  %v6136_v1 = vpop.f32.mrb[85].mxu0 }
 0xbdd   :  { %v9803_v12 = vpack.c.bf16 %v9075_v46, %v6024_v17  ;;  %v9791_v27 = vpack.c.bf16 %v9089_v8, %v6136_v1 }
 0xbdf   :  { %v9078_v56 = vpop.f32.mrb[110].mxu1  ;;  %v9092_v63 = vpop.f32.mrb[86].mxu0  ;;  %9792 = vmatpush3.bf16.msra.mxu1 %v9791_v27  ;;  %9804 = vmatpush3.bf16.msra.mxu0 %v9803_v12  ;;  %v6698_v27 = vld [vmem:[#allocation5 + $0x4] sm:$0x1] }
 0xbe0   :  { %v6034_v40 = vpop.f32.mrb[111].mxu1  ;;  %v6146_v41 = vpop.f32.mrb[87].mxu0  ;;  %9793 = vmatprep.subr.bf16.mxu1 %v13004_v62  ;;  %9805 = vmatprep.subr.bf16.mxu0 %v13004_v62 }
 0xbe1   :  { %v9806_v52 = vpack.c.bf16 %v9078_v56, %v6034_v40  ;;  %v9794_v55 = vpack.c.bf16 %v9092_v63, %v6146_v41  ;;  %v6777_v40 = vpop.permute.xlu0 %6776 }
 0xbe3   :  { %v9081_v16 = vpop.f32.mrb[112].mxu1  ;;  %v9095_v19 = vpop.f32.mrb[88].mxu0  ;;  %9795 = vmatpush3.bf16.msra.mxu1 %v9794_v55  ;;  %9807 = vmatpush3.bf16.msra.mxu0 %v9806_v52  ;;  %v6782_v52 = vrot.slane %v6777_v40, %v11114_v3 }
 0xbe4   :  { %v6044_v2 = vpop.f32.mrb[113].mxu1  ;;  %v6156_v38 = vpop.f32.mrb[89].mxu0  ;;  %9796 = vmatprep.subr.bf16.mxu1 %v13004_v62  ;;  %9808 = vmatprep.subr.bf16.mxu0 %v13004_v62 }
 0xbe5   :  { %v9809_v21 = vpack.c.bf16 %v9081_v16, %v6044_v2  ;;  %v9797_v29 = vpack.c.bf16 %v9095_v19, %v6156_v38 }
 0xbe7   :  { %v9084_v7 = vpop.f32.mrb[114].mxu1  ;;  %v9098_v28 = vpop.f32.mrb[90].mxu0  ;;  %9798 = vmatpush3.bf16.msra.mxu1 %v9797_v29  ;;  %9810 = vmatpush3.bf16.msra.mxu0 %v9809_v21 }
 0xbe8   :  { %v6054_v31 = vpop.f32.mrb[115].mxu1  ;;  %v6166_v51 = vpop.f32.mrb[91].mxu0  ;;  %9799 = vmatprep.subr.bf16.mxu1 %v13004_v62  ;;  %9811 = vmatprep.subr.bf16.mxu0 %v13004_v62 }
 0xbe9   :  { %v9812_v34 = vpack.c.bf16 %v9084_v7, %v6054_v31  ;;  %v9800_v0 = vpack.c.bf16 %v9098_v28, %v6166_v51 }
 0xbeb   :  { %9801 = vmatpush3.bf16.msra.mxu1 %v9800_v0  ;;  %9813 = vmatpush3.bf16.msra.mxu0 %v9812_v34 }
 0xbec   :  { %9814 = vmatprep.subr.bf16.mxu1 %v13004_v62  ;;  %9156 = vmatprep.subr.msk.mxu0 %vm6403_vm14, %v10019_v42 }
 0xbee   :  { %9135 = vmatmul.mubr.msk.f32.vlgmr.msra.gmra.mrb[92].mxu0 %vm13007_vm11, %v6063_v18  ;;  %9116 = vmatmul.mubr.msk.f32.vlgmr.msra.gmra.mrb[116].mxu1 %vm13008_vm7, %v6176_v32 }
 0xbef   :  { %9816 = vmatpush3.bf16.msra.mxu1 %v9815_v6  ;;  %9157 = vmatpush3.msk.msra.mxu0 %vm6403_vm14, %v10019_v42 }
 0xbf0   :  { %9158 = vmatprep.mubr.msk.f32.mxu0 %vm5933_vm1, %v12468_v61  ;;  %9817 = vmatprep.subr.bf16.mxu1 %v13004_v62 }
 0xbf1   :  { %9189 = vmatprep.subr.msk.mxu0 %vm6590_vm2, %v10019_v42  ;;  %9153 = vmatprep.mubr.msk.f32.mxu1 %vm13006_vm4, %v13005_v45 }
 0xbf2   :  { %9159 = vmatmul.mubr.msk.f32.vlgmr.msra.gmra.mrb[94].mxu0 %vm5933_vm1, %v12466_v36 }
 0xbf3   :  { %9819 = vmatpush3.bf16.msra.mxu1 %v9818_v14  ;;  %9161 = vmatprep.mubr.msk.f32.mxu0 %vm5933_vm1, %v12480_v22 }
 0xbf4   :  { %9190 = vmatpush3.msk.msra.mxu0 %vm6590_vm2, %v10019_v42  ;;  %9820 = vmatprep.subr.bf16.mxu1 %v13004_v62 }
 0xbf6   :  { %9162 = vmatmul.mubr.msk.f32.gmra.mrb[96].mxu0 %vm5933_vm1, %v12474_v15 }
 0xbf7   :  { %9822 = vmatpush3.bf16.msra.mxu1 %v9821_v50  ;;  %9164 = vmatprep.mubr.msk.f32.mxu0 %vm5933_vm1, %v12492_v58 }
 0xbf8   :  { %9823 = vmatprep.subr.bf16.mxu1 %v13004_v62 }
 0xbfa   :  { %9165 = vmatmul.mubr.msk.f32.gmra.mrb[98].mxu0 %vm5933_vm1, %v12486_v9 }
 0xbfb   :  { %9825 = vmatpush3.bf16.msra.mxu1 %v9824_v11  ;;  %9167 = vmatprep.mubr.msk.f32.mxu0 %vm5933_vm1, %v12504_v39 }
 0xbfc   :  { %9826 = vmatprep.subr.bf16.mxu1 %v13004_v62 }
 0xbfe   :  { %9154 = vmatmul.mubr.msk.f32.vlgmr.msra.gmra.mrb[118].mxu1 %vm13009_vm13, %v6324_v35  ;;  %9168 = vmatmul.mubr.msk.f32.gmra.mrb[100].mxu0 %vm5933_vm1, %v12498_v37 }
 0xbff   :  { %9191 = vmatprep.mubr.msk.f32.mxu0 %vm5933_vm1, %v12468_v61  ;;  %9186 = vmatprep.mubr.msk.f32.mxu1 %vm13006_vm4, %v13005_v45 }
 0xc02   :  { %9192 = vmatmul.mubr.msk.f32.vlgmr.msra.gmra.mrb[102].mxu0 %vm5933_vm1, %v12466_v36 }
 0xc03   :  { %9194 = vmatprep.mubr.msk.f32.mxu0 %vm5933_vm1, %v12480_v22 }
 0xc06   :  { %9195 = vmatmul.mubr.msk.f32.gmra.mrb[104].mxu0 %vm5933_vm1, %v12474_v15 }
 0xc07   :  { %9197 = vmatprep.mubr.msk.f32.mxu0 %vm5933_vm1, %v12492_v58 }
 0xc0a   :  { %9198 = vmatmul.mubr.msk.f32.gmra.mrb[106].mxu0 %vm5933_vm1, %v12486_v9  ;;  %v6511_v9 = vld [vmem:[#allocation5 + $0x3] sm:$0x1] }
 0xc0b   :  { %9200 = vmatprep.mubr.msk.f32.mxu0 %vm5933_vm1, %v12504_v39 }
 0xc0e   :  { %9201 = vmatmul.mubr.msk.f32.gmra.mrb[108].mxu0 %vm5933_vm1, %v12498_v37 }
 0xcc1   :  { %v6319_v54 = vpop.f32.mrb[92].mxu0  ;;  %v6246_v43 = vpop.f32.mrb[116].mxu1 }
 0xcc2   :  { %v6320_v42 = vadd.f32 %v6319_v54, %v6246_v43  ;;  %v9136_v30 = vpop.f32.mrb[93].mxu0  ;;  %v9117_v60 = vpop.f32.mrb[117].mxu1 }
 0xcc5   :  { %v9160_v20 = vpop.f32.mrb[94].mxu0 }
 0xcc6   :  { %v6471_v25 = vpop.f32.mrb[95].mxu0 }
 0xcc7   :  { %v9827_v4 = vpack.c.bf16 %v9160_v20, %v6471_v25 }
 0xcc9   :  { %v9163_v53 = vpop.f32.mrb[96].mxu0  ;;  %9828 = vmatpush3.bf16.msra.mxu1 %v9827_v4 }
 0xcca   :  { %v6481_v13 = vpop.f32.mrb[97].mxu0  ;;  %9829 = vmatprep.subr.bf16.mxu1 %v13004_v62 }
 0xccb   :  { %v9830_v59 = vpack.c.bf16 %v9163_v53, %v6481_v13 }
 0xccd   :  { %v9166_v5 = vpop.f32.mrb[98].mxu0  ;;  %9831 = vmatpush3.bf16.msra.mxu1 %v9830_v59 }
 0xcce   :  { %v6491_v47 = vpop.f32.mrb[99].mxu0  ;;  %9832 = vmatprep.subr.bf16.mxu1 %v13004_v62 }
 0xccf   :  { %v9833_v36 = vpack.c.bf16 %v9166_v5, %v6491_v47 }
 0xcd1   :  { %v6394_v23 = vpop.f32.mrb[118].mxu1  ;;  %v9169_v61 = vpop.f32.mrb[100].mxu0  ;;  %9834 = vmatpush3.bf16.msra.mxu1 %v9833_v36 }
 0xcd2   :  { %v6398_v57 = vadd.f32 %v6394_v23, %v6320_v42  ;;  %v6501_v15 = vpop.f32.mrb[101].mxu0  ;;  %9835 = vmatprep.subr.bf16.mxu1 %v13004_v62  ;;  %v9155_v10 = vpop.f32.mrb[119].mxu1 }
 0xcd3   :  { %v9836_v22 = vpack.c.bf16 %v9169_v61, %v6501_v15 }
 0xcd5   :  { %9837 = vmatpush3.bf16.msra.mxu1 %v9836_v22  ;;  %v9193_v44 = vpop.f32.mrb[102].mxu0 }
 0xcd6   :  { %v6658_v33 = vpop.f32.mrb[103].mxu0  ;;  %9838 = vmatprep.subr.bf16.mxu1 %v13004_v62 }
 0xcd7   :  { %v9839_v58 = vpack.c.bf16 %v9193_v44, %v6658_v33 }
 0xcd8   :  { %9187 = vmatmul.mubr.msk.f32.vlgmr.msra.gmra.mrb[120].mxu1 %vm13010_vm12, %v6511_v9 }
 0xcd9   :  { %v9196_v48 = vpop.f32.mrb[104].mxu0  ;;  %9840 = vmatpush3.bf16.msra.mxu1 %v9839_v58  ;;  %9219 = vmatprep.mubr.msk.f32.mxu1 %vm13006_vm4, %v13005_v45 }
 0xcda   :  { %v6668_v37 = vpop.f32.mrb[105].mxu0  ;;  %9841 = vmatprep.subr.bf16.mxu1 %v13004_v62 }
 0xcdb   :  { %v9842_v26 = vpack.c.bf16 %v9196_v48, %v6668_v37 }
 0xcdd   :  { %v9199_v39 = vpop.f32.mrb[106].mxu0  ;;  %9843 = vmatpush3.bf16.msra.mxu1 %v9842_v26 }
 0xcde   :  { %v6678_v46 = vpop.f32.mrb[107].mxu0  ;;  %9844 = vmatprep.subr.bf16.mxu1 %v13004_v62 }
 0xcdf   :  { %v9845_v8 = vpack.c.bf16 %v9199_v39, %v6678_v46 }
 0xce1   :  { %v9202_v17 = vpop.f32.mrb[108].mxu0  ;;  %9846 = vmatpush3.bf16.msra.mxu1 %v9845_v8 }
 0xce2   :  { %v6688_v1 = vpop.f32.mrb[109].mxu0  ;;  %9847 = vmatprep.subr.bf16.mxu1 %v13004_v62 }
 0xce3   :  { %v9848_v12 = vpack.c.bf16 %v9202_v17, %v6688_v1 }
 0xce5   :  { %9849 = vmatpush3.bf16.msra.mxu1 %v9848_v12 }
 0xce8   :  { %9220 = vmatmul.mubr.msk.f32.vlgmr.msra.gmra.mrb[122].mxu1 %vm13002_vm3, %v6698_v27 }
 0xdab   :  { %v6581_v45 = vpop.f32.mrb[120].mxu1 }
 0xdac   :  { %v6585_v56 = vadd.f32 %v6581_v45, %v6398_v57  ;;  %v9188_v63 = vpop.f32.mrb[121].mxu1 }
 0xdbb   :  { %v6768_v41 = vpop.f32.mrb[122].mxu1 }
 0xdbc   :  { %v6772_v55 = vadd.f32 %v6768_v41, %v6585_v56  ;;  %v9221_v49 = vpop.f32.mrb[123].mxu1 }
 0xdbe   :  { %v6783_v16 = vadd.f32 %v6782_v52, %v6772_v55 }
 0xdc0   :  { %v6784_v19 = vmax.f32 %v6783_v16, 0.0 }
 0xdc2   :  { %6786 = vst.msk [vmem:[%s12612_s11] sm:$0x1] %vm6785_vm6, %v6784_v19 }
 0xdc3   :  { %6791 = vsyncpa [#allocation4], 1 }
 0xdc4   :  { %6792 = vsyncpa [#allocation6], 1 }

</bundles_post_ra>
